<compile_context>
chip_gen: v7x
topology: tpu7x:2x2x1
jax: 0.10.0
libtpu: 0.0.40
codegen_flags: <defaults>
</compile_context>

<pallas_src>
import numpy as np
import jax
import jax.numpy as jnp
from jax import lax
from jax.experimental import pallas as pl
from jax.experimental.pallas import tpu as pltpu

# MXU-operand dtype for the DFT matmuls and the streamed per-coil tensors.
# Accumulation and all elementwise math stay f32.
COMPUTE_DTYPE = jnp.bfloat16
STREAM_DTYPE = jnp.bfloat16


# ---------------------------------------------------------------------------
# Pallas kernel: grid = (B, C // G); the coil-group axis is a reduction
# accumulated in VMEM scratch; G coils are processed per grid step.
# ---------------------------------------------------------------------------
def gd_kernel(lam_ref, x_ref, atb_ref, mask_ref, csm_ref, fh_ref, fw_ref,
              out_ref, acc_r, acc_i):
    g = pl.program_id(1)
    ng = pl.num_programs(1)
    G = csm_ref.shape[1]               # coils handled in this grid step (static)

    @pl.when(g == 0)
    def _init():
        acc_r[...] = jnp.zeros_like(acc_r)
        acc_i[...] = jnp.zeros_like(acc_i)

    xr = x_ref[0, 0]                                  # (H, W) f32
    xi = x_ref[0, 1]
    m = mask_ref[0].astype(jnp.float32)               # (H, W) 0/1 sampling mask

    # Centered orthonormal DFT matrices (symmetric), bf16; third plane is the
    # Karatsuba operand sum re+im, precomputed on host from f64.
    fhr, fhi, fhs = fh_ref[0], fh_ref[1], fh_ref[2]   # (H, H)
    fwr, fwi, fws = fw_ref[0], fw_ref[1], fw_ref[2]   # (W, W)

    def mm(a, b):
        return jnp.dot(a, b, preferred_element_type=jnp.float32)

    def cmat2(zr, zi):
        # (F_H @ (zr + i*zi)) @ F_W via Karatsuba: 6 real MXU matmuls per
        # complex sandwich product. z* are f32; the constant matrices (and
        # their precomputed sums) are already bf16 — no redundant casts.
        zr_b = zr.astype(COMPUTE_DTYPE)
        zi_b = zi.astype(COMPUTE_DTYPE)
        zs_b = (zr + zi).astype(COMPUTE_DTYPE)
        t1 = mm(fhr, zr_b)
        t2 = mm(fhi, zi_b)
        t3 = mm(fhs, zs_b)
        tr = t1 - t2
        ti = t3 - t1 - t2
        u1 = mm(tr.astype(COMPUTE_DTYPE), fwr)
        u2 = mm(ti.astype(COMPUTE_DTYPE), fwi)
        u3 = mm((tr + ti).astype(COMPUTE_DTYPE), fws)
        return u1 - u2, u3 - u1 - u2

    def coil_body(c, carry):
        sr = csm_ref[0, c, 0].astype(jnp.float32)     # (H, W) sensitivity map
        si = csm_ref[0, c, 1].astype(jnp.float32)
        ar = atb_ref[0, c, 0].astype(jnp.float32)     # (H, W) measured k-space
        ai = atb_ref[0, c, 1].astype(jnp.float32)

        # expand_operator: coil image = csm * x  (complex multiply, f32 VPU)
        cr = sr * xr - si * xi
        ci = sr * xi + si * xr

        # forward operator: centered 2D FFT (matmul form) -> K
        kr, ki = cmat2(cr, ci)

        # fused masking: where(m==0,0, where(m==0,0,K)-A) == m*(K-A) for a
        # 0/1 sampling mask.  We form conj(D) = conj(m*(K-A)) directly because
        # the inverse centered FFT is computed by conjugation:
        #     ifft2c(D) = conj(F_H @ conj(D) @ F_W)
        dr = m * (kr - ar)
        dmi = m * (ai - ki)                           # = -imag(D)

        pr, pi = cmat2(dr, dmi)                       # P = F_H @ conj(D) @ F_W
        # img = ifft2c(D) = conj(P) = pr - i*pi.
        # reduce_operator: sum_c conj(csm) * img, conjugations folded in.
        acc_r[...] += sr * pr - si * pi
        acc_i[...] -= sr * pi + si * pr
        return carry

    lax.fori_loop(0, G, coil_body, 0, unroll=True)

    @pl.when(g == ng - 1)
    def _finalize():
        lam = lam_ref[0]                              # scalar from SMEM
        out_ref[0, 0] = xr - lam * acc_r[...]
        out_ref[0, 1] = xi - lam * acc_i[...]


# ---------------------------------------------------------------------------
# Host-side helpers
# ---------------------------------------------------------------------------
def _centered_dft_matrix(n):
    """Symmetric M with M @ v == fftshift(fft(ifftshift(v), norm='ortho'))."""
    eye = np.eye(n)
    shifted = np.fft.ifftshift(eye, axes=0)
    f = np.fft.fft(shifted, axis=0, norm="ortho")
    return np.fft.fftshift(f, axes=0)                 # complex128


def _dft_planes(n):
    """[re, im, re+im] planes of the centered DFT matrix, computed in f64."""
    mat = _centered_dft_matrix(n)
    return np.stack([mat.real, mat.imag, mat.real + mat.imag])


def _pick_vmem_limit_bytes():
    """Generation-aware scoped-VMEM budget: ~7/8 of physical, capped 110 MiB."""
    phys = 64 * 1024 * 1024                           # conservative default (v7x)
    try:
        info = pltpu.get_tpu_info()
        for attr in ("vmem_capacity_bytes", "vmem_bytes"):
            v = getattr(info, attr, None)
            if v:
                phys = int(v)
                break
    except Exception:
        pass
    return min(phys * 7 // 8, 110 * 1024 * 1024)


def _pick_coil_group(C, H, W, vmem_limit):
    """Largest divisor of C whose double-buffered bf16 atb+csm blocks use at
    most ~1/4 of the scoped-VMEM budget."""
    per_coil = 2 * 2 * 2 * H * W * jnp.dtype(STREAM_DTYPE).itemsize
    g = max(1, min(C, (vmem_limit // 4) // max(per_coil, 1)))
    while C % g:
        g -= 1
    return g


def _gd_pallas_call(B, C, H, W, G, vmem_limit, single_buffer_consts):
    n_groups = C // G
    const_kwargs = {}
    if single_buffer_consts:
        # Constant index_map -> fetched once; single-buffering recovers the
        # second, never-used VMEM copy (matters on v7x at production H, W).
        const_kwargs = dict(pipeline_mode=pl.Buffered(1))

    def const_spec(n):
        return pl.BlockSpec((3, n, n), lambda b, g: (0, 0, 0), **const_kwargs)

    grid_spec = pltpu.PrefetchScalarGridSpec(
        num_scalar_prefetch=0,
        grid=(B, n_groups),
        in_specs=[
            pl.BlockSpec(memory_space=pltpu.MemorySpace.SMEM),             # lambda
            pl.BlockSpec((1, 2, H, W), lambda b, g: (b, 0, 0, 0)),         # x (f32)
            pl.BlockSpec((1, G, 2, H, W), lambda b, g: (b, g, 0, 0, 0)),   # atb_k (bf16)
            pl.BlockSpec((1, H, W), lambda b, g: (b, 0, 0)),               # mask (bf16)
            pl.BlockSpec((1, G, 2, H, W), lambda b, g: (b, g, 0, 0, 0)),   # csm (bf16)
            const_spec(H),                                                 # DFT planes (H)
            const_spec(W),                                                 # DFT planes (W)
        ],
        out_specs=pl.BlockSpec((1, 2, H, W), lambda b, g: (b, 0, 0, 0)),
        scratch_shapes=[pltpu.VMEM((H, W), jnp.float32),
                        pltpu.VMEM((H, W), jnp.float32)],
    )

    return pl.pallas_call(
        gd_kernel,
        out_shape=jax.ShapeDtypeStruct((B, 2, H, W), jnp.float32),
        grid_spec=grid_spec,
        compiler_params=pltpu.CompilerParams(
            dimension_semantics=("parallel", "arbitrary"),
            vmem_limit_bytes=vmem_limit),
    )


def gd_pallas(x, atb_k, mask, csm, lam):
    """x:(B,H,W,2)  atb_k:(B,C,H,W,2)  mask:(B,1,H,W,1)  csm:(B,C,H,W,2)  lam:(1,)."""
    B, C, H, W, _ = atb_k.shape
    vmem_limit = _pick_vmem_limit_bytes()
    G = _pick_coil_group(C, H, W, vmem_limit)

    # kernel layout: complex dim split, spatial dims last (W on lanes).
    # Per-coil streamed tensors ship bf16 (recurring DMA); x stays f32.
    x_s = jnp.moveaxis(x, -1, 1).astype(jnp.float32)          # (B, 2, H, W)
    atb_s = jnp.moveaxis(atb_k, -1, 2).astype(STREAM_DTYPE)   # (B, C, 2, H, W)
    csm_s = jnp.moveaxis(csm, -1, 2).astype(STREAM_DTYPE)     # (B, C, 2, H, W)
    mask_s = mask[:, 0, :, :, 0].astype(STREAM_DTYPE)         # (B, H, W), 0/1 exact
    lam_s = jnp.asarray(lam, jnp.float32).reshape(1)          # scalar for SMEM

    # Centered orthonormal DFT matrices (symmetric -> used on both sides);
    # inverse == conj(forward) is realized by conjugation in-kernel, so only
    # one [re, im, re+im] plane set per axis ships (sums rounded once from f64).
    fh = jnp.asarray(_dft_planes(H), dtype=COMPUTE_DTYPE)     # (3, H, H)
    fw = jnp.asarray(_dft_planes(W), dtype=COMPUTE_DTYPE)     # (3, W, W)

    args = (lam_s, x_s, atb_s, mask_s, csm_s, fh, fw)
    try:
        out = _gd_pallas_call(B, C, H, W, G, vmem_limit, True)(*args)
    except Exception:
        # Fallback if this JAX build rejects pl.Buffered(1): default
        # double-buffering is functionally identical (slightly more VMEM).
        out = _gd_pallas_call(B, C, H, W, G, vmem_limit, False)(*args)

    return jnp.moveaxis(out, 1, -1)                           # back to (B, H, W, 2)


# ---------------------------------------------------------------------------
# Pure-JAX reference (complex arithmetic + jnp.fft) for validation
# ---------------------------------------------------------------------------
def gd_reference(x, atb_k, mask, csm, lam):
    xc = x[..., 0] + 1j * x[..., 1]
    ac = atb_k[..., 0] + 1j * atb_k[..., 1]
    sc = csm[..., 0] + 1j * csm[..., 1]
    m = mask[..., 0]                                          # (B, 1, H, W)

    def fft2c(z):
        return jnp.fft.fftshift(jnp.fft.fft2(
            jnp.fft.ifftshift(z, axes=(-2, -1)), axes=(-2, -1), norm="ortho"),
            axes=(-2, -1))

    def ifft2c(z):
        return jnp.fft.fftshift(jnp.fft.ifft2(
            jnp.fft.ifftshift(z, axes=(-2, -1)), axes=(-2, -1), norm="ortho"),
            axes=(-2, -1))

    coil = sc * xc[:, None]
    ax = jnp.where(m == 0, 0.0, fft2c(coil))
    img = ifft2c(jnp.where(m == 0, 0.0, ax - ac))
    aty = jnp.sum(jnp.conj(sc) * img, axis=1)
    r = xc - lam.reshape(-1)[0] * aty
    return jnp.stack([jnp.real(r), jnp.imag(r)], axis=-1)


if __name__ == "__main__":
    B, C, H, W = 2, 4, 16, 16
    key = jax.random.PRNGKey(0)
    k1, k2, k3, k4 = jax.random.split(key, 4)

    x = jax.random.normal(k1, (B, H, W, 2), jnp.float32)
    csm = 0.5 * jax.random.normal(k2, (B, C, H, W, 2), jnp.float32)
    atb_k = jax.random.normal(k3, (B, C, H, W, 2), jnp.float32)
    mask = (jax.random.uniform(k4, (B, 1, H, W, 1)) > 0.4).astype(jnp.float32)
    lam = jnp.array([0.5], dtype=jnp.float32)                 # nn.Parameter([0.5])

    out = jax.block_until_ready(gd_pallas(x, atb_k, mask, csm, lam))
    assert out.shape == (B, H, W, 2)

    # (a) kernel-arithmetic check: reference consumes the same bf16-quantized
    #     streamed inputs the kernel sees (isolates the bf16 MXU/matrix error).
    atb_q = atb_k.astype(STREAM_DTYPE).astype(jnp.float32)
    csm_q = csm.astype(STREAM_DTYPE).astype(jnp.float32)
    ref_q = gd_reference(x, atb_q, mask, csm_q, lam)
    assert jnp.allclose(out, ref_q, atol=5e-2, rtol=5e-2), float(
        jnp.max(jnp.abs(out - ref_q)))

    # (b) end-to-end check vs. the all-f32 module semantics; tolerance sized
    #     for bf16-streamed csm/atb plus bf16 MXU operands (f32 accumulation).
    ref = gd_reference(x, atb_k, mask, csm, lam)
    assert jnp.allclose(out, ref, atol=1e-1, rtol=1e-1), float(
        jnp.max(jnp.abs(out - ref)))

    print("KERNEL_OK")
</pallas_src>

<mosaic_0001>
module attributes {stable_mosaic.version = 11 : i64} {
  func.func @gd_kernel(%arg0: i32, %arg1: i32, %arg2: memref<1xf32, #tpu.memory_space<smem>>, %arg3: memref<1x2x16x16xf32, #tpu.memory_space<vmem>>, %arg4: memref<1x4x2x16x16xbf16, #tpu.memory_space<vmem>>, %arg5: memref<1x16x16xbf16, #tpu.memory_space<vmem>>, %arg6: memref<1x4x2x16x16xbf16, #tpu.memory_space<vmem>>, %arg7: memref<3x16x16xbf16, #tpu.memory_space<vmem>>, %arg8: memref<3x16x16xbf16, #tpu.memory_space<vmem>>, %arg9: memref<1x2x16x16xf32, #tpu.memory_space<vmem>>, %arg10: memref<16x16xf32, #tpu.memory_space<vmem>>, %arg11: memref<16x16xf32, #tpu.memory_space<vmem>>) attributes {dimension_semantics = [#tpu.dimension_semantics<parallel>, #tpu.dimension_semantics<arbitrary>], iteration_bounds = array<i64: 2, 1>, scalar_prefetch = 0 : i64, scratch_operands = 2 : i64, tpu.core_type = #tpu.core_type<tc>, window_params = [{transform_indices = @transform_0, window_bounds = array<i64: 1>}, {transform_indices = @transform_1, window_bounds = array<i64: 1, 2, 16, 16>}, {transform_indices = @transform_2, window_bounds = array<i64: 1, 4, 2, 16, 16>}, {transform_indices = @transform_3, window_bounds = array<i64: 1, 16, 16>}, {transform_indices = @transform_4, window_bounds = array<i64: 1, 4, 2, 16, 16>}, {pipeline_mode = #tpu.pipeline_mode<synchronous>, transform_indices = @transform_5, window_bounds = array<i64: 3, 16, 16>}, {pipeline_mode = #tpu.pipeline_mode<synchronous>, transform_indices = @transform_6, window_bounds = array<i64: 3, 16, 16>}, {transform_indices = @transform_7, window_bounds = array<i64: 1, 2, 16, 16>}]} {
    %c0_i32 = arith.constant 0 : i32
    %0 = arith.cmpi eq, %arg1, %c0_i32 : i32
    %1 = arith.extui %0 : i1 to i32
    %c0_i32_0 = arith.constant 0 : i32
    %2 = arith.cmpi ne, %1, %c0_i32_0 : i32
    scf.if %2 {
      %cst_173 = arith.constant 0.000000e+00 : f32
      %337 = vector.broadcast %cst_173 : f32 to vector<16x16xf32>
      %c0_174 = arith.constant 0 : index
      %c0_175 = arith.constant 0 : index
      %338 = vector.load %arg10[%c0_174, %c0_175] : memref<16x16xf32, #tpu.memory_space<vmem>>, vector<16x16xf32>
      tpu.vector_store %arg10[%c0_174, %c0_175], %337 {strides = array<i32>} : memref<16x16xf32, #tpu.memory_space<vmem>>, vector<16x16xf32>,
      %cst_176 = arith.constant 0.000000e+00 : f32
      %339 = vector.broadcast %cst_176 : f32 to vector<16x16xf32>
      %c0_177 = arith.constant 0 : index
      %c0_178 = arith.constant 0 : index
      %340 = vector.load %arg11[%c0_177, %c0_178] : memref<16x16xf32, #tpu.memory_space<vmem>>, vector<16x16xf32>
      tpu.vector_store %arg11[%c0_177, %c0_178], %339 {strides = array<i32>} : memref<16x16xf32, #tpu.memory_space<vmem>>, vector<16x16xf32>,
    } else {
    }
    %c0 = arith.constant 0 : index
    %c0_1 = arith.constant 0 : index
    %c0_2 = arith.constant 0 : index
    %c0_3 = arith.constant 0 : index
    %3 = vector.load %arg3[%c0, %c0_1, %c0_2, %c0_3] : memref<1x2x16x16xf32, #tpu.memory_space<vmem>>, vector<1x1x16x16xf32>
    %4 = vector.shape_cast %3 : vector<1x1x16x16xf32> to vector<16x16xf32>
    %c0_4 = arith.constant 0 : index
    %c1 = arith.constant 1 : index
    %c0_5 = arith.constant 0 : index
    %c0_6 = arith.constant 0 : index
    %5 = vector.load %arg3[%c0_4, %c1, %c0_5, %c0_6] : memref<1x2x16x16xf32, #tpu.memory_space<vmem>>, vector<1x1x16x16xf32>
    %6 = vector.shape_cast %5 : vector<1x1x16x16xf32> to vector<16x16xf32>
    %c0_7 = arith.constant 0 : index
    %c0_8 = arith.constant 0 : index
    %c0_9 = arith.constant 0 : index
    %7 = vector.load %arg5[%c0_7, %c0_8, %c0_9] : memref<1x16x16xbf16, #tpu.memory_space<vmem>>, vector<1x16x16xbf16>
    %8 = vector.shape_cast %7 : vector<1x16x16xbf16> to vector<16x16xbf16>
    %9 = arith.extf %8 : vector<16x16xbf16> to vector<16x16xf32>
    %c0_10 = arith.constant 0 : index
    %c0_11 = arith.constant 0 : index
    %c0_12 = arith.constant 0 : index
    %10 = vector.load %arg7[%c0_10, %c0_11, %c0_12] : memref<3x16x16xbf16, #tpu.memory_space<vmem>>, vector<1x16x16xbf16>
    %11 = vector.shape_cast %10 : vector<1x16x16xbf16> to vector<16x16xbf16>
    %c1_13 = arith.constant 1 : index
    %c0_14 = arith.constant 0 : index
    %c0_15 = arith.constant 0 : index
    %12 = vector.load %arg7[%c1_13, %c0_14, %c0_15] : memref<3x16x16xbf16, #tpu.memory_space<vmem>>, vector<1x16x16xbf16>
    %13 = vector.shape_cast %12 : vector<1x16x16xbf16> to vector<16x16xbf16>
    %c2 = arith.constant 2 : index
    %c0_16 = arith.constant 0 : index
    %c0_17 = arith.constant 0 : index
    %14 = vector.load %arg7[%c2, %c0_16, %c0_17] : memref<3x16x16xbf16, #tpu.memory_space<vmem>>, vector<1x16x16xbf16>
    %15 = vector.shape_cast %14 : vector<1x16x16xbf16> to vector<16x16xbf16>
    %c0_18 = arith.constant 0 : index
    %c0_19 = arith.constant 0 : index
    %c0_20 = arith.constant 0 : index
    %16 = vector.load %arg8[%c0_18, %c0_19, %c0_20] : memref<3x16x16xbf16, #tpu.memory_space<vmem>>, vector<1x16x16xbf16>
    %17 = vector.shape_cast %16 : vector<1x16x16xbf16> to vector<16x16xbf16>
    %c1_21 = arith.constant 1 : index
    %c0_22 = arith.constant 0 : index
    %c0_23 = arith.constant 0 : index
    %18 = vector.load %arg8[%c1_21, %c0_22, %c0_23] : memref<3x16x16xbf16, #tpu.memory_space<vmem>>, vector<1x16x16xbf16>
    %19 = vector.shape_cast %18 : vector<1x16x16xbf16> to vector<16x16xbf16>
    %c2_24 = arith.constant 2 : index
    %c0_25 = arith.constant 0 : index
    %c0_26 = arith.constant 0 : index
    %20 = vector.load %arg8[%c2_24, %c0_25, %c0_26] : memref<3x16x16xbf16, #tpu.memory_space<vmem>>, vector<1x16x16xbf16>
    %21 = vector.shape_cast %20 : vector<1x16x16xbf16> to vector<16x16xbf16>
    %c0_i32_27 = arith.constant 0 : i32
    %c0_28 = arith.constant 0 : index
    %22 = arith.index_cast %c0_i32_27 : i32 to index
    %c0_29 = arith.constant 0 : index
    %c0_30 = arith.constant 0 : index
    %c0_31 = arith.constant 0 : index
    %23 = vector.load %arg6[%c0_28, %22, %c0_29, %c0_30, %c0_31] : memref<1x4x2x16x16xbf16, #tpu.memory_space<vmem>>, vector<1x1x1x16x16xbf16>
    %24 = vector.shape_cast %23 : vector<1x1x1x16x16xbf16> to vector<16x16xbf16>
    %25 = arith.extf %24 : vector<16x16xbf16> to vector<16x16xf32>
    %c0_32 = arith.constant 0 : index
    %26 = arith.index_cast %c0_i32_27 : i32 to index
    %c1_33 = arith.constant 1 : index
    %c0_34 = arith.constant 0 : index
    %c0_35 = arith.constant 0 : index
    %27 = vector.load %arg6[%c0_32, %26, %c1_33, %c0_34, %c0_35] : memref<1x4x2x16x16xbf16, #tpu.memory_space<vmem>>, vector<1x1x1x16x16xbf16>
    %28 = vector.shape_cast %27 : vector<1x1x1x16x16xbf16> to vector<16x16xbf16>
    %29 = arith.extf %28 : vector<16x16xbf16> to vector<16x16xf32>
    %c0_36 = arith.constant 0 : index
    %30 = arith.index_cast %c0_i32_27 : i32 to index
    %c0_37 = arith.constant 0 : index
    %c0_38 = arith.constant 0 : index
    %c0_39 = arith.constant 0 : index
    %31 = vector.load %arg4[%c0_36, %30, %c0_37, %c0_38, %c0_39] : memref<1x4x2x16x16xbf16, #tpu.memory_space<vmem>>, vector<1x1x1x16x16xbf16>
    %32 = vector.shape_cast %31 : vector<1x1x1x16x16xbf16> to vector<16x16xbf16>
    %33 = arith.extf %32 : vector<16x16xbf16> to vector<16x16xf32>
    %c0_40 = arith.constant 0 : index
    %34 = arith.index_cast %c0_i32_27 : i32 to index
    %c1_41 = arith.constant 1 : index
    %c0_42 = arith.constant 0 : index
    %c0_43 = arith.constant 0 : index
    %35 = vector.load %arg4[%c0_40, %34, %c1_41, %c0_42, %c0_43] : memref<1x4x2x16x16xbf16, #tpu.memory_space<vmem>>, vector<1x1x1x16x16xbf16>
    %36 = vector.shape_cast %35 : vector<1x1x1x16x16xbf16> to vector<16x16xbf16>
    %37 = arith.extf %36 : vector<16x16xbf16> to vector<16x16xf32>
    %38 = arith.mulf %25, %4 : vector<16x16xf32>
    %39 = arith.mulf %29, %6 : vector<16x16xf32>
    %40 = arith.subf %38, %39 : vector<16x16xf32>
    %41 = arith.mulf %25, %6 : vector<16x16xf32>
    %42 = arith.mulf %29, %4 : vector<16x16xf32>
    %43 = arith.addf %41, %42 : vector<16x16xf32>
    %44 = arith.truncf %40 : vector<16x16xf32> to vector<16x16xbf16>
    %45 = arith.truncf %43 : vector<16x16xf32> to vector<16x16xbf16>
    %46 = arith.addf %40, %43 : vector<16x16xf32>
    %47 = arith.truncf %46 : vector<16x16xf32> to vector<16x16xbf16>
    %cst = arith.constant dense<0.000000e+00> : vector<16x16xf32>
    %48 = tpu.matmul %11, %44, %cst {dimension_numbers = #tpu.dot_dimension_numbers<[1], [0], [0], [1], [0, 0, 1, 1], [], []>} : vector<16x16xbf16>, vector<16x16xbf16>, vector<16x16xf32> -> vector<16x16xf32>
    %cst_44 = arith.constant dense<0.000000e+00> : vector<16x16xf32>
    %49 = tpu.matmul %13, %45, %cst_44 {dimension_numbers = #tpu.dot_dimension_numbers<[1], [0], [0], [1], [0, 0, 1, 1], [], []>} : vector<16x16xbf16>, vector<16x16xbf16>, vector<16x16xf32> -> vector<16x16xf32>
    %cst_45 = arith.constant dense<0.000000e+00> : vector<16x16xf32>
    %50 = tpu.matmul %15, %47, %cst_45 {dimension_numbers = #tpu.dot_dimension_numbers<[1], [0], [0], [1], [0, 0, 1, 1], [], []>} : vector<16x16xbf16>, vector<16x16xbf16>, vector<16x16xf32> -> vector<16x16xf32>
    %51 = arith.subf %48, %49 : vector<16x16xf32>
    %52 = arith.subf %50, %48 : vector<16x16xf32>
    %53 = arith.subf %52, %49 : vector<16x16xf32>
    %54 = arith.truncf %51 : vector<16x16xf32> to vector<16x16xbf16>
    %cst_46 = arith.constant dense<0.000000e+00> : vector<16x16xf32>
    %55 = tpu.matmul %54, %17, %cst_46 {dimension_numbers = #tpu.dot_dimension_numbers<[1], [0], [0], [1], [0, 0, 1, 1], [], []>} : vector<16x16xbf16>, vector<16x16xbf16>, vector<16x16xf32> -> vector<16x16xf32>
    %56 = arith.truncf %53 : vector<16x16xf32> to vector<16x16xbf16>
    %cst_47 = arith.constant dense<0.000000e+00> : vector<16x16xf32>
    %57 = tpu.matmul %56, %19, %cst_47 {dimension_numbers = #tpu.dot_dimension_numbers<[1], [0], [0], [1], [0, 0, 1, 1], [], []>} : vector<16x16xbf16>, vector<16x16xbf16>, vector<16x16xf32> -> vector<16x16xf32>
    %58 = arith.addf %51, %53 : vector<16x16xf32>
    %59 = arith.truncf %58 : vector<16x16xf32> to vector<16x16xbf16>
    %cst_48 = arith.constant dense<0.000000e+00> : vector<16x16xf32>
    %60 = tpu.matmul %59, %21, %cst_48 {dimension_numbers = #tpu.dot_dimension_numbers<[1], [0], [0], [1], [0, 0, 1, 1], [], []>} : vector<16x16xbf16>, vector<16x16xbf16>, vector<16x16xf32> -> vector<16x16xf32>
    %61 = arith.subf %55, %57 : vector<16x16xf32>
    %62 = arith.subf %60, %55 : vector<16x16xf32>
    %63 = arith.subf %62, %57 : vector<16x16xf32>
    %64 = arith.subf %61, %33 : vector<16x16xf32>
    %65 = arith.mulf %9, %64 : vector<16x16xf32>
    %66 = arith.subf %37, %63 : vector<16x16xf32>
    %67 = arith.mulf %9, %66 : vector<16x16xf32>
    %68 = arith.truncf %65 : vector<16x16xf32> to vector<16x16xbf16>
    %69 = arith.truncf %67 : vector<16x16xf32> to vector<16x16xbf16>
    %70 = arith.addf %65, %67 : vector<16x16xf32>
    %71 = arith.truncf %70 : vector<16x16xf32> to vector<16x16xbf16>
    %cst_49 = arith.constant dense<0.000000e+00> : vector<16x16xf32>
    %72 = tpu.matmul %11, %68, %cst_49 {dimension_numbers = #tpu.dot_dimension_numbers<[1], [0], [0], [1], [0, 0, 1, 1], [], []>} : vector<16x16xbf16>, vector<16x16xbf16>, vector<16x16xf32> -> vector<16x16xf32>
    %cst_50 = arith.constant dense<0.000000e+00> : vector<16x16xf32>
    %73 = tpu.matmul %13, %69, %cst_50 {dimension_numbers = #tpu.dot_dimension_numbers<[1], [0], [0], [1], [0, 0, 1, 1], [], []>} : vector<16x16xbf16>, vector<16x16xbf16>, vector<16x16xf32> -> vector<16x16xf32>
    %cst_51 = arith.constant dense<0.000000e+00> : vector<16x16xf32>
    %74 = tpu.matmul %15, %71, %cst_51 {dimension_numbers = #tpu.dot_dimension_numbers<[1], [0], [0], [1], [0, 0, 1, 1], [], []>} : vector<16x16xbf16>, vector<16x16xbf16>, vector<16x16xf32> -> vector<16x16xf32>
    %75 = arith.subf %72, %73 : vector<16x16xf32>
    %76 = arith.subf %74, %72 : vector<16x16xf32>
    %77 = arith.subf %76, %73 : vector<16x16xf32>
    %78 = arith.truncf %75 : vector<16x16xf32> to vector<16x16xbf16>
    %cst_52 = arith.constant dense<0.000000e+00> : vector<16x16xf32>
    %79 = tpu.matmul %78, %17, %cst_52 {dimension_numbers = #tpu.dot_dimension_numbers<[1], [0], [0], [1], [0, 0, 1, 1], [], []>} : vector<16x16xbf16>, vector<16x16xbf16>, vector<16x16xf32> -> vector<16x16xf32>
    %80 = arith.truncf %77 : vector<16x16xf32> to vector<16x16xbf16>
    %cst_53 = arith.constant dense<0.000000e+00> : vector<16x16xf32>
    %81 = tpu.matmul %80, %19, %cst_53 {dimension_numbers = #tpu.dot_dimension_numbers<[1], [0], [0], [1], [0, 0, 1, 1], [], []>} : vector<16x16xbf16>, vector<16x16xbf16>, vector<16x16xf32> -> vector<16x16xf32>
    %82 = arith.addf %75, %77 : vector<16x16xf32>
    %83 = arith.truncf %82 : vector<16x16xf32> to vector<16x16xbf16>
    %cst_54 = arith.constant dense<0.000000e+00> : vector<16x16xf32>
    %84 = tpu.matmul %83, %21, %cst_54 {dimension_numbers = #tpu.dot_dimension_numbers<[1], [0], [0], [1], [0, 0, 1, 1], [], []>} : vector<16x16xbf16>, vector<16x16xbf16>, vector<16x16xf32> -> vector<16x16xf32>
    %85 = arith.subf %79, %81 : vector<16x16xf32>
    %86 = arith.subf %84, %79 : vector<16x16xf32>
    %87 = arith.subf %86, %81 : vector<16x16xf32>
    %c0_55 = arith.constant 0 : index
    %c0_56 = arith.constant 0 : index
    %88 = vector.load %arg10[%c0_55, %c0_56] : memref<16x16xf32, #tpu.memory_space<vmem>>, vector<16x16xf32>
    %89 = arith.mulf %25, %85 : vector<16x16xf32>
    %90 = arith.mulf %29, %87 : vector<16x16xf32>
    %91 = arith.subf %89, %90 : vector<16x16xf32>
    %92 = arith.addf %88, %91 : vector<16x16xf32>
    %c0_57 = arith.constant 0 : index
    %c0_58 = arith.constant 0 : index
    %93 = vector.load %arg10[%c0_57, %c0_58] : memref<16x16xf32, #tpu.memory_space<vmem>>, vector<16x16xf32>
    tpu.vector_store %arg10[%c0_57, %c0_58], %92 {strides = array<i32>} : memref<16x16xf32, #tpu.memory_space<vmem>>, vector<16x16xf32>,
    %c0_59 = arith.constant 0 : index
    %c0_60 = arith.constant 0 : index
    %94 = vector.load %arg11[%c0_59, %c0_60] : memref<16x16xf32, #tpu.memory_space<vmem>>, vector<16x16xf32>
    %95 = arith.mulf %25, %87 : vector<16x16xf32>
    %96 = arith.mulf %29, %85 : vector<16x16xf32>
    %97 = arith.addf %95, %96 : vector<16x16xf32>
    %98 = arith.subf %94, %97 : vector<16x16xf32>
    %c0_61 = arith.constant 0 : index
    %c0_62 = arith.constant 0 : index
    %99 = vector.load %arg11[%c0_61, %c0_62] : memref<16x16xf32, #tpu.memory_space<vmem>>, vector<16x16xf32>
    tpu.vector_store %arg11[%c0_61, %c0_62], %98 {strides = array<i32>} : memref<16x16xf32, #tpu.memory_space<vmem>>, vector<16x16xf32>,
    %c1_i32 = arith.constant 1 : i32
    %c0_63 = arith.constant 0 : index
    %100 = arith.index_cast %c1_i32 : i32 to index
    %c0_64 = arith.constant 0 : index
    %c0_65 = arith.constant 0 : index
    %c0_66 = arith.constant 0 : index
    %101 = vector.load %arg6[%c0_63, %100, %c0_64, %c0_65, %c0_66] : memref<1x4x2x16x16xbf16, #tpu.memory_space<vmem>>, vector<1x1x1x16x16xbf16>
    %102 = vector.shape_cast %101 : vector<1x1x1x16x16xbf16> to vector<16x16xbf16>
    %103 = arith.extf %102 : vector<16x16xbf16> to vector<16x16xf32>
    %c0_67 = arith.constant 0 : index
    %104 = arith.index_cast %c1_i32 : i32 to index
    %c1_68 = arith.constant 1 : index
    %c0_69 = arith.constant 0 : index
    %c0_70 = arith.constant 0 : index
    %105 = vector.load %arg6[%c0_67, %104, %c1_68, %c0_69, %c0_70] : memref<1x4x2x16x16xbf16, #tpu.memory_space<vmem>>, vector<1x1x1x16x16xbf16>
    %106 = vector.shape_cast %105 : vector<1x1x1x16x16xbf16> to vector<16x16xbf16>
    %107 = arith.extf %106 : vector<16x16xbf16> to vector<16x16xf32>
    %c0_71 = arith.constant 0 : index
    %108 = arith.index_cast %c1_i32 : i32 to index
    %c0_72 = arith.constant 0 : index
    %c0_73 = arith.constant 0 : index
    %c0_74 = arith.constant 0 : index
    %109 = vector.load %arg4[%c0_71, %108, %c0_72, %c0_73, %c0_74] : memref<1x4x2x16x16xbf16, #tpu.memory_space<vmem>>, vector<1x1x1x16x16xbf16>
    %110 = vector.shape_cast %109 : vector<1x1x1x16x16xbf16> to vector<16x16xbf16>
    %111 = arith.extf %110 : vector<16x16xbf16> to vector<16x16xf32>
    %c0_75 = arith.constant 0 : index
    %112 = arith.index_cast %c1_i32 : i32 to index
    %c1_76 = arith.constant 1 : index
    %c0_77 = arith.constant 0 : index
    %c0_78 = arith.constant 0 : index
    %113 = vector.load %arg4[%c0_75, %112, %c1_76, %c0_77, %c0_78] : memref<1x4x2x16x16xbf16, #tpu.memory_space<vmem>>, vector<1x1x1x16x16xbf16>
    %114 = vector.shape_cast %113 : vector<1x1x1x16x16xbf16> to vector<16x16xbf16>
    %115 = arith.extf %114 : vector<16x16xbf16> to vector<16x16xf32>
    %116 = arith.mulf %103, %4 : vector<16x16xf32>
    %117 = arith.mulf %107, %6 : vector<16x16xf32>
    %118 = arith.subf %116, %117 : vector<16x16xf32>
    %119 = arith.mulf %103, %6 : vector<16x16xf32>
    %120 = arith.mulf %107, %4 : vector<16x16xf32>
    %121 = arith.addf %119, %120 : vector<16x16xf32>
    %122 = arith.truncf %118 : vector<16x16xf32> to vector<16x16xbf16>
    %123 = arith.truncf %121 : vector<16x16xf32> to vector<16x16xbf16>
    %124 = arith.addf %118, %121 : vector<16x16xf32>
    %125 = arith.truncf %124 : vector<16x16xf32> to vector<16x16xbf16>
    %cst_79 = arith.constant dense<0.000000e+00> : vector<16x16xf32>
    %126 = tpu.matmul %11, %122, %cst_79 {dimension_numbers = #tpu.dot_dimension_numbers<[1], [0], [0], [1], [0, 0, 1, 1], [], []>} : vector<16x16xbf16>, vector<16x16xbf16>, vector<16x16xf32> -> vector<16x16xf32>
    %cst_80 = arith.constant dense<0.000000e+00> : vector<16x16xf32>
    %127 = tpu.matmul %13, %123, %cst_80 {dimension_numbers = #tpu.dot_dimension_numbers<[1], [0], [0], [1], [0, 0, 1, 1], [], []>} : vector<16x16xbf16>, vector<16x16xbf16>, vector<16x16xf32> -> vector<16x16xf32>
    %cst_81 = arith.constant dense<0.000000e+00> : vector<16x16xf32>
    %128 = tpu.matmul %15, %125, %cst_81 {dimension_numbers = #tpu.dot_dimension_numbers<[1], [0], [0], [1], [0, 0, 1, 1], [], []>} : vector<16x16xbf16>, vector<16x16xbf16>, vector<16x16xf32> -> vector<16x16xf32>
    %129 = arith.subf %126, %127 : vector<16x16xf32>
    %130 = arith.subf %128, %126 : vector<16x16xf32>
    %131 = arith.subf %130, %127 : vector<16x16xf32>
    %132 = arith.truncf %129 : vector<16x16xf32> to vector<16x16xbf16>
    %cst_82 = arith.constant dense<0.000000e+00> : vector<16x16xf32>
    %133 = tpu.matmul %132, %17, %cst_82 {dimension_numbers = #tpu.dot_dimension_numbers<[1], [0], [0], [1], [0, 0, 1, 1], [], []>} : vector<16x16xbf16>, vector<16x16xbf16>, vector<16x16xf32> -> vector<16x16xf32>
    %134 = arith.truncf %131 : vector<16x16xf32> to vector<16x16xbf16>
    %cst_83 = arith.constant dense<0.000000e+00> : vector<16x16xf32>
    %135 = tpu.matmul %134, %19, %cst_83 {dimension_numbers = #tpu.dot_dimension_numbers<[1], [0], [0], [1], [0, 0, 1, 1], [], []>} : vector<16x16xbf16>, vector<16x16xbf16>, vector<16x16xf32> -> vector<16x16xf32>
    %136 = arith.addf %129, %131 : vector<16x16xf32>
    %137 = arith.truncf %136 : vector<16x16xf32> to vector<16x16xbf16>
    %cst_84 = arith.constant dense<0.000000e+00> : vector<16x16xf32>
    %138 = tpu.matmul %137, %21, %cst_84 {dimension_numbers = #tpu.dot_dimension_numbers<[1], [0], [0], [1], [0, 0, 1, 1], [], []>} : vector<16x16xbf16>, vector<16x16xbf16>, vector<16x16xf32> -> vector<16x16xf32>
    %139 = arith.subf %133, %135 : vector<16x16xf32>
    %140 = arith.subf %138, %133 : vector<16x16xf32>
    %141 = arith.subf %140, %135 : vector<16x16xf32>
    %142 = arith.subf %139, %111 : vector<16x16xf32>
    %143 = arith.mulf %9, %142 : vector<16x16xf32>
    %144 = arith.subf %115, %141 : vector<16x16xf32>
    %145 = arith.mulf %9, %144 : vector<16x16xf32>
    %146 = arith.truncf %143 : vector<16x16xf32> to vector<16x16xbf16>
    %147 = arith.truncf %145 : vector<16x16xf32> to vector<16x16xbf16>
    %148 = arith.addf %143, %145 : vector<16x16xf32>
    %149 = arith.truncf %148 : vector<16x16xf32> to vector<16x16xbf16>
    %cst_85 = arith.constant dense<0.000000e+00> : vector<16x16xf32>
    %150 = tpu.matmul %11, %146, %cst_85 {dimension_numbers = #tpu.dot_dimension_numbers<[1], [0], [0], [1], [0, 0, 1, 1], [], []>} : vector<16x16xbf16>, vector<16x16xbf16>, vector<16x16xf32> -> vector<16x16xf32>
    %cst_86 = arith.constant dense<0.000000e+00> : vector<16x16xf32>
    %151 = tpu.matmul %13, %147, %cst_86 {dimension_numbers = #tpu.dot_dimension_numbers<[1], [0], [0], [1], [0, 0, 1, 1], [], []>} : vector<16x16xbf16>, vector<16x16xbf16>, vector<16x16xf32> -> vector<16x16xf32>
    %cst_87 = arith.constant dense<0.000000e+00> : vector<16x16xf32>
    %152 = tpu.matmul %15, %149, %cst_87 {dimension_numbers = #tpu.dot_dimension_numbers<[1], [0], [0], [1], [0, 0, 1, 1], [], []>} : vector<16x16xbf16>, vector<16x16xbf16>, vector<16x16xf32> -> vector<16x16xf32>
    %153 = arith.subf %150, %151 : vector<16x16xf32>
    %154 = arith.subf %152, %150 : vector<16x16xf32>
    %155 = arith.subf %154, %151 : vector<16x16xf32>
    %156 = arith.truncf %153 : vector<16x16xf32> to vector<16x16xbf16>
    %cst_88 = arith.constant dense<0.000000e+00> : vector<16x16xf32>
    %157 = tpu.matmul %156, %17, %cst_88 {dimension_numbers = #tpu.dot_dimension_numbers<[1], [0], [0], [1], [0, 0, 1, 1], [], []>} : vector<16x16xbf16>, vector<16x16xbf16>, vector<16x16xf32> -> vector<16x16xf32>
    %158 = arith.truncf %155 : vector<16x16xf32> to vector<16x16xbf16>
    %cst_89 = arith.constant dense<0.000000e+00> : vector<16x16xf32>
    %159 = tpu.matmul %158, %19, %cst_89 {dimension_numbers = #tpu.dot_dimension_numbers<[1], [0], [0], [1], [0, 0, 1, 1], [], []>} : vector<16x16xbf16>, vector<16x16xbf16>, vector<16x16xf32> -> vector<16x16xf32>
    %160 = arith.addf %153, %155 : vector<16x16xf32>
    %161 = arith.truncf %160 : vector<16x16xf32> to vector<16x16xbf16>
    %cst_90 = arith.constant dense<0.000000e+00> : vector<16x16xf32>
    %162 = tpu.matmul %161, %21, %cst_90 {dimension_numbers = #tpu.dot_dimension_numbers<[1], [0], [0], [1], [0, 0, 1, 1], [], []>} : vector<16x16xbf16>, vector<16x16xbf16>, vector<16x16xf32> -> vector<16x16xf32>
    %163 = arith.subf %157, %159 : vector<16x16xf32>
    %164 = arith.subf %162, %157 : vector<16x16xf32>
    %165 = arith.subf %164, %159 : vector<16x16xf32>
    %c0_91 = arith.constant 0 : index
    %c0_92 = arith.constant 0 : index
    %166 = vector.load %arg10[%c0_91, %c0_92] : memref<16x16xf32, #tpu.memory_space<vmem>>, vector<16x16xf32>
    %167 = arith.mulf %103, %163 : vector<16x16xf32>
    %168 = arith.mulf %107, %165 : vector<16x16xf32>
    %169 = arith.subf %167, %168 : vector<16x16xf32>
    %170 = arith.addf %166, %169 : vector<16x16xf32>
    %c0_93 = arith.constant 0 : index
    %c0_94 = arith.constant 0 : index
    %171 = vector.load %arg10[%c0_93, %c0_94] : memref<16x16xf32, #tpu.memory_space<vmem>>, vector<16x16xf32>
    tpu.vector_store %arg10[%c0_93, %c0_94], %170 {strides = array<i32>} : memref<16x16xf32, #tpu.memory_space<vmem>>, vector<16x16xf32>,
    %c0_95 = arith.constant 0 : index
    %c0_96 = arith.constant 0 : index
    %172 = vector.load %arg11[%c0_95, %c0_96] : memref<16x16xf32, #tpu.memory_space<vmem>>, vector<16x16xf32>
    %173 = arith.mulf %103, %165 : vector<16x16xf32>
    %174 = arith.mulf %107, %163 : vector<16x16xf32>
    %175 = arith.addf %173, %174 : vector<16x16xf32>
    %176 = arith.subf %172, %175 : vector<16x16xf32>
    %c0_97 = arith.constant 0 : index
    %c0_98 = arith.constant 0 : index
    %177 = vector.load %arg11[%c0_97, %c0_98] : memref<16x16xf32, #tpu.memory_space<vmem>>, vector<16x16xf32>
    tpu.vector_store %arg11[%c0_97, %c0_98], %176 {strides = array<i32>} : memref<16x16xf32, #tpu.memory_space<vmem>>, vector<16x16xf32>,
    %c2_i32 = arith.constant 2 : i32
    %c0_99 = arith.constant 0 : index
    %178 = arith.index_cast %c2_i32 : i32 to index
    %c0_100 = arith.constant 0 : index
    %c0_101 = arith.constant 0 : index
    %c0_102 = arith.constant 0 : index
    %179 = vector.load %arg6[%c0_99, %178, %c0_100, %c0_101, %c0_102] : memref<1x4x2x16x16xbf16, #tpu.memory_space<vmem>>, vector<1x1x1x16x16xbf16>
    %180 = vector.shape_cast %179 : vector<1x1x1x16x16xbf16> to vector<16x16xbf16>
    %181 = arith.extf %180 : vector<16x16xbf16> to vector<16x16xf32>
    %c0_103 = arith.constant 0 : index
    %182 = arith.index_cast %c2_i32 : i32 to index
    %c1_104 = arith.constant 1 : index
    %c0_105 = arith.constant 0 : index
    %c0_106 = arith.constant 0 : index
    %183 = vector.load %arg6[%c0_103, %182, %c1_104, %c0_105, %c0_106] : memref<1x4x2x16x16xbf16, #tpu.memory_space<vmem>>, vector<1x1x1x16x16xbf16>
    %184 = vector.shape_cast %183 : vector<1x1x1x16x16xbf16> to vector<16x16xbf16>
    %185 = arith.extf %184 : vector<16x16xbf16> to vector<16x16xf32>
    %c0_107 = arith.constant 0 : index
    %186 = arith.index_cast %c2_i32 : i32 to index
    %c0_108 = arith.constant 0 : index
    %c0_109 = arith.constant 0 : index
    %c0_110 = arith.constant 0 : index
    %187 = vector.load %arg4[%c0_107, %186, %c0_108, %c0_109, %c0_110] : memref<1x4x2x16x16xbf16, #tpu.memory_space<vmem>>, vector<1x1x1x16x16xbf16>
    %188 = vector.shape_cast %187 : vector<1x1x1x16x16xbf16> to vector<16x16xbf16>
    %189 = arith.extf %188 : vector<16x16xbf16> to vector<16x16xf32>
    %c0_111 = arith.constant 0 : index
    %190 = arith.index_cast %c2_i32 : i32 to index
    %c1_112 = arith.constant 1 : index
    %c0_113 = arith.constant 0 : index
    %c0_114 = arith.constant 0 : index
    %191 = vector.load %arg4[%c0_111, %190, %c1_112, %c0_113, %c0_114] : memref<1x4x2x16x16xbf16, #tpu.memory_space<vmem>>, vector<1x1x1x16x16xbf16>
    %192 = vector.shape_cast %191 : vector<1x1x1x16x16xbf16> to vector<16x16xbf16>
    %193 = arith.extf %192 : vector<16x16xbf16> to vector<16x16xf32>
    %194 = arith.mulf %181, %4 : vector<16x16xf32>
    %195 = arith.mulf %185, %6 : vector<16x16xf32>
    %196 = arith.subf %194, %195 : vector<16x16xf32>
    %197 = arith.mulf %181, %6 : vector<16x16xf32>
    %198 = arith.mulf %185, %4 : vector<16x16xf32>
    %199 = arith.addf %197, %198 : vector<16x16xf32>
    %200 = arith.truncf %196 : vector<16x16xf32> to vector<16x16xbf16>
    %201 = arith.truncf %199 : vector<16x16xf32> to vector<16x16xbf16>
    %202 = arith.addf %196, %199 : vector<16x16xf32>
    %203 = arith.truncf %202 : vector<16x16xf32> to vector<16x16xbf16>
    %cst_115 = arith.constant dense<0.000000e+00> : vector<16x16xf32>
    %204 = tpu.matmul %11, %200, %cst_115 {dimension_numbers = #tpu.dot_dimension_numbers<[1], [0], [0], [1], [0, 0, 1, 1], [], []>} : vector<16x16xbf16>, vector<16x16xbf16>, vector<16x16xf32> -> vector<16x16xf32>
    %cst_116 = arith.constant dense<0.000000e+00> : vector<16x16xf32>
    %205 = tpu.matmul %13, %201, %cst_116 {dimension_numbers = #tpu.dot_dimension_numbers<[1], [0], [0], [1], [0, 0, 1, 1], [], []>} : vector<16x16xbf16>, vector<16x16xbf16>, vector<16x16xf32> -> vector<16x16xf32>
    %cst_117 = arith.constant dense<0.000000e+00> : vector<16x16xf32>
    %206 = tpu.matmul %15, %203, %cst_117 {dimension_numbers = #tpu.dot_dimension_numbers<[1], [0], [0], [1], [0, 0, 1, 1], [], []>} : vector<16x16xbf16>, vector<16x16xbf16>, vector<16x16xf32> -> vector<16x16xf32>
    %207 = arith.subf %204, %205 : vector<16x16xf32>
    %208 = arith.subf %206, %204 : vector<16x16xf32>
    %209 = arith.subf %208, %205 : vector<16x16xf32>
    %210 = arith.truncf %207 : vector<16x16xf32> to vector<16x16xbf16>
    %cst_118 = arith.constant dense<0.000000e+00> : vector<16x16xf32>
    %211 = tpu.matmul %210, %17, %cst_118 {dimension_numbers = #tpu.dot_dimension_numbers<[1], [0], [0], [1], [0, 0, 1, 1], [], []>} : vector<16x16xbf16>, vector<16x16xbf16>, vector<16x16xf32> -> vector<16x16xf32>
    %212 = arith.truncf %209 : vector<16x16xf32> to vector<16x16xbf16>
    %cst_119 = arith.constant dense<0.000000e+00> : vector<16x16xf32>
    %213 = tpu.matmul %212, %19, %cst_119 {dimension_numbers = #tpu.dot_dimension_numbers<[1], [0], [0], [1], [0, 0, 1, 1], [], []>} : vector<16x16xbf16>, vector<16x16xbf16>, vector<16x16xf32> -> vector<16x16xf32>
    %214 = arith.addf %207, %209 : vector<16x16xf32>
    %215 = arith.truncf %214 : vector<16x16xf32> to vector<16x16xbf16>
    %cst_120 = arith.constant dense<0.000000e+00> : vector<16x16xf32>
    %216 = tpu.matmul %215, %21, %cst_120 {dimension_numbers = #tpu.dot_dimension_numbers<[1], [0], [0], [1], [0, 0, 1, 1], [], []>} : vector<16x16xbf16>, vector<16x16xbf16>, vector<16x16xf32> -> vector<16x16xf32>
    %217 = arith.subf %211, %213 : vector<16x16xf32>
    %218 = arith.subf %216, %211 : vector<16x16xf32>
    %219 = arith.subf %218, %213 : vector<16x16xf32>
    %220 = arith.subf %217, %189 : vector<16x16xf32>
    %221 = arith.mulf %9, %220 : vector<16x16xf32>
    %222 = arith.subf %193, %219 : vector<16x16xf32>
    %223 = arith.mulf %9, %222 : vector<16x16xf32>
    %224 = arith.truncf %221 : vector<16x16xf32> to vector<16x16xbf16>
    %225 = arith.truncf %223 : vector<16x16xf32> to vector<16x16xbf16>
    %226 = arith.addf %221, %223 : vector<16x16xf32>
    %227 = arith.truncf %226 : vector<16x16xf32> to vector<16x16xbf16>
    %cst_121 = arith.constant dense<0.000000e+00> : vector<16x16xf32>
    %228 = tpu.matmul %11, %224, %cst_121 {dimension_numbers = #tpu.dot_dimension_numbers<[1], [0], [0], [1], [0, 0, 1, 1], [], []>} : vector<16x16xbf16>, vector<16x16xbf16>, vector<16x16xf32> -> vector<16x16xf32>
    %cst_122 = arith.constant dense<0.000000e+00> : vector<16x16xf32>
    %229 = tpu.matmul %13, %225, %cst_122 {dimension_numbers = #tpu.dot_dimension_numbers<[1], [0], [0], [1], [0, 0, 1, 1], [], []>} : vector<16x16xbf16>, vector<16x16xbf16>, vector<16x16xf32> -> vector<16x16xf32>
    %cst_123 = arith.constant dense<0.000000e+00> : vector<16x16xf32>
    %230 = tpu.matmul %15, %227, %cst_123 {dimension_numbers = #tpu.dot_dimension_numbers<[1], [0], [0], [1], [0, 0, 1, 1], [], []>} : vector<16x16xbf16>, vector<16x16xbf16>, vector<16x16xf32> -> vector<16x16xf32>
    %231 = arith.subf %228, %229 : vector<16x16xf32>
    %232 = arith.subf %230, %228 : vector<16x16xf32>
    %233 = arith.subf %232, %229 : vector<16x16xf32>
    %234 = arith.truncf %231 : vector<16x16xf32> to vector<16x16xbf16>
    %cst_124 = arith.constant dense<0.000000e+00> : vector<16x16xf32>
    %235 = tpu.matmul %234, %17, %cst_124 {dimension_numbers = #tpu.dot_dimension_numbers<[1], [0], [0], [1], [0, 0, 1, 1], [], []>} : vector<16x16xbf16>, vector<16x16xbf16>, vector<16x16xf32> -> vector<16x16xf32>
    %236 = arith.truncf %233 : vector<16x16xf32> to vector<16x16xbf16>
    %cst_125 = arith.constant dense<0.000000e+00> : vector<16x16xf32>
    %237 = tpu.matmul %236, %19, %cst_125 {dimension_numbers = #tpu.dot_dimension_numbers<[1], [0], [0], [1], [0, 0, 1, 1], [], []>} : vector<16x16xbf16>, vector<16x16xbf16>, vector<16x16xf32> -> vector<16x16xf32>
    %238 = arith.addf %231, %233 : vector<16x16xf32>
    %239 = arith.truncf %238 : vector<16x16xf32> to vector<16x16xbf16>
    %cst_126 = arith.constant dense<0.000000e+00> : vector<16x16xf32>
    %240 = tpu.matmul %239, %21, %cst_126 {dimension_numbers = #tpu.dot_dimension_numbers<[1], [0], [0], [1], [0, 0, 1, 1], [], []>} : vector<16x16xbf16>, vector<16x16xbf16>, vector<16x16xf32> -> vector<16x16xf32>
    %241 = arith.subf %235, %237 : vector<16x16xf32>
    %242 = arith.subf %240, %235 : vector<16x16xf32>
    %243 = arith.subf %242, %237 : vector<16x16xf32>
    %c0_127 = arith.constant 0 : index
    %c0_128 = arith.constant 0 : index
    %244 = vector.load %arg10[%c0_127, %c0_128] : memref<16x16xf32, #tpu.memory_space<vmem>>, vector<16x16xf32>
    %245 = arith.mulf %181, %241 : vector<16x16xf32>
    %246 = arith.mulf %185, %243 : vector<16x16xf32>
    %247 = arith.subf %245, %246 : vector<16x16xf32>
    %248 = arith.addf %244, %247 : vector<16x16xf32>
    %c0_129 = arith.constant 0 : index
    %c0_130 = arith.constant 0 : index
    %249 = vector.load %arg10[%c0_129, %c0_130] : memref<16x16xf32, #tpu.memory_space<vmem>>, vector<16x16xf32>
    tpu.vector_store %arg10[%c0_129, %c0_130], %248 {strides = array<i32>} : memref<16x16xf32, #tpu.memory_space<vmem>>, vector<16x16xf32>,
    %c0_131 = arith.constant 0 : index
    %c0_132 = arith.constant 0 : index
    %250 = vector.load %arg11[%c0_131, %c0_132] : memref<16x16xf32, #tpu.memory_space<vmem>>, vector<16x16xf32>
    %251 = arith.mulf %181, %243 : vector<16x16xf32>
    %252 = arith.mulf %185, %241 : vector<16x16xf32>
    %253 = arith.addf %251, %252 : vector<16x16xf32>
    %254 = arith.subf %250, %253 : vector<16x16xf32>
    %c0_133 = arith.constant 0 : index
    %c0_134 = arith.constant 0 : index
    %255 = vector.load %arg11[%c0_133, %c0_134] : memref<16x16xf32, #tpu.memory_space<vmem>>, vector<16x16xf32>
    tpu.vector_store %arg11[%c0_133, %c0_134], %254 {strides = array<i32>} : memref<16x16xf32, #tpu.memory_space<vmem>>, vector<16x16xf32>,
    %c3_i32 = arith.constant 3 : i32
    %c0_135 = arith.constant 0 : index
    %256 = arith.index_cast %c3_i32 : i32 to index
    %c0_136 = arith.constant 0 : index
    %c0_137 = arith.constant 0 : index
    %c0_138 = arith.constant 0 : index
    %257 = vector.load %arg6[%c0_135, %256, %c0_136, %c0_137, %c0_138] : memref<1x4x2x16x16xbf16, #tpu.memory_space<vmem>>, vector<1x1x1x16x16xbf16>
    %258 = vector.shape_cast %257 : vector<1x1x1x16x16xbf16> to vector<16x16xbf16>
    %259 = arith.extf %258 : vector<16x16xbf16> to vector<16x16xf32>
    %c0_139 = arith.constant 0 : index
    %260 = arith.index_cast %c3_i32 : i32 to index
    %c1_140 = arith.constant 1 : index
    %c0_141 = arith.constant 0 : index
    %c0_142 = arith.constant 0 : index
    %261 = vector.load %arg6[%c0_139, %260, %c1_140, %c0_141, %c0_142] : memref<1x4x2x16x16xbf16, #tpu.memory_space<vmem>>, vector<1x1x1x16x16xbf16>
    %262 = vector.shape_cast %261 : vector<1x1x1x16x16xbf16> to vector<16x16xbf16>
    %263 = arith.extf %262 : vector<16x16xbf16> to vector<16x16xf32>
    %c0_143 = arith.constant 0 : index
    %264 = arith.index_cast %c3_i32 : i32 to index
    %c0_144 = arith.constant 0 : index
    %c0_145 = arith.constant 0 : index
    %c0_146 = arith.constant 0 : index
    %265 = vector.load %arg4[%c0_143, %264, %c0_144, %c0_145, %c0_146] : memref<1x4x2x16x16xbf16, #tpu.memory_space<vmem>>, vector<1x1x1x16x16xbf16>
    %266 = vector.shape_cast %265 : vector<1x1x1x16x16xbf16> to vector<16x16xbf16>
    %267 = arith.extf %266 : vector<16x16xbf16> to vector<16x16xf32>
    %c0_147 = arith.constant 0 : index
    %268 = arith.index_cast %c3_i32 : i32 to index
    %c1_148 = arith.constant 1 : index
    %c0_149 = arith.constant 0 : index
    %c0_150 = arith.constant 0 : index
    %269 = vector.load %arg4[%c0_147, %268, %c1_148, %c0_149, %c0_150] : memref<1x4x2x16x16xbf16, #tpu.memory_space<vmem>>, vector<1x1x1x16x16xbf16>
    %270 = vector.shape_cast %269 : vector<1x1x1x16x16xbf16> to vector<16x16xbf16>
    %271 = arith.extf %270 : vector<16x16xbf16> to vector<16x16xf32>
    %272 = arith.mulf %259, %4 : vector<16x16xf32>
    %273 = arith.mulf %263, %6 : vector<16x16xf32>
    %274 = arith.subf %272, %273 : vector<16x16xf32>
    %275 = arith.mulf %259, %6 : vector<16x16xf32>
    %276 = arith.mulf %263, %4 : vector<16x16xf32>
    %277 = arith.addf %275, %276 : vector<16x16xf32>
    %278 = arith.truncf %274 : vector<16x16xf32> to vector<16x16xbf16>
    %279 = arith.truncf %277 : vector<16x16xf32> to vector<16x16xbf16>
    %280 = arith.addf %274, %277 : vector<16x16xf32>
    %281 = arith.truncf %280 : vector<16x16xf32> to vector<16x16xbf16>
    %cst_151 = arith.constant dense<0.000000e+00> : vector<16x16xf32>
    %282 = tpu.matmul %11, %278, %cst_151 {dimension_numbers = #tpu.dot_dimension_numbers<[1], [0], [0], [1], [0, 0, 1, 1], [], []>} : vector<16x16xbf16>, vector<16x16xbf16>, vector<16x16xf32> -> vector<16x16xf32>
    %cst_152 = arith.constant dense<0.000000e+00> : vector<16x16xf32>
    %283 = tpu.matmul %13, %279, %cst_152 {dimension_numbers = #tpu.dot_dimension_numbers<[1], [0], [0], [1], [0, 0, 1, 1], [], []>} : vector<16x16xbf16>, vector<16x16xbf16>, vector<16x16xf32> -> vector<16x16xf32>
    %cst_153 = arith.constant dense<0.000000e+00> : vector<16x16xf32>
    %284 = tpu.matmul %15, %281, %cst_153 {dimension_numbers = #tpu.dot_dimension_numbers<[1], [0], [0], [1], [0, 0, 1, 1], [], []>} : vector<16x16xbf16>, vector<16x16xbf16>, vector<16x16xf32> -> vector<16x16xf32>
    %285 = arith.subf %282, %283 : vector<16x16xf32>
    %286 = arith.subf %284, %282 : vector<16x16xf32>
    %287 = arith.subf %286, %283 : vector<16x16xf32>
    %288 = arith.truncf %285 : vector<16x16xf32> to vector<16x16xbf16>
    %cst_154 = arith.constant dense<0.000000e+00> : vector<16x16xf32>
    %289 = tpu.matmul %288, %17, %cst_154 {dimension_numbers = #tpu.dot_dimension_numbers<[1], [0], [0], [1], [0, 0, 1, 1], [], []>} : vector<16x16xbf16>, vector<16x16xbf16>, vector<16x16xf32> -> vector<16x16xf32>
    %290 = arith.truncf %287 : vector<16x16xf32> to vector<16x16xbf16>
    %cst_155 = arith.constant dense<0.000000e+00> : vector<16x16xf32>
    %291 = tpu.matmul %290, %19, %cst_155 {dimension_numbers = #tpu.dot_dimension_numbers<[1], [0], [0], [1], [0, 0, 1, 1], [], []>} : vector<16x16xbf16>, vector<16x16xbf16>, vector<16x16xf32> -> vector<16x16xf32>
    %292 = arith.addf %285, %287 : vector<16x16xf32>
    %293 = arith.truncf %292 : vector<16x16xf32> to vector<16x16xbf16>
    %cst_156 = arith.constant dense<0.000000e+00> : vector<16x16xf32>
    %294 = tpu.matmul %293, %21, %cst_156 {dimension_numbers = #tpu.dot_dimension_numbers<[1], [0], [0], [1], [0, 0, 1, 1], [], []>} : vector<16x16xbf16>, vector<16x16xbf16>, vector<16x16xf32> -> vector<16x16xf32>
    %295 = arith.subf %289, %291 : vector<16x16xf32>
    %296 = arith.subf %294, %289 : vector<16x16xf32>
    %297 = arith.subf %296, %291 : vector<16x16xf32>
    %298 = arith.subf %295, %267 : vector<16x16xf32>
    %299 = arith.mulf %9, %298 : vector<16x16xf32>
    %300 = arith.subf %271, %297 : vector<16x16xf32>
    %301 = arith.mulf %9, %300 : vector<16x16xf32>
    %302 = arith.truncf %299 : vector<16x16xf32> to vector<16x16xbf16>
    %303 = arith.truncf %301 : vector<16x16xf32> to vector<16x16xbf16>
    %304 = arith.addf %299, %301 : vector<16x16xf32>
    %305 = arith.truncf %304 : vector<16x16xf32> to vector<16x16xbf16>
    %cst_157 = arith.constant dense<0.000000e+00> : vector<16x16xf32>
    %306 = tpu.matmul %11, %302, %cst_157 {dimension_numbers = #tpu.dot_dimension_numbers<[1], [0], [0], [1], [0, 0, 1, 1], [], []>} : vector<16x16xbf16>, vector<16x16xbf16>, vector<16x16xf32> -> vector<16x16xf32>
    %cst_158 = arith.constant dense<0.000000e+00> : vector<16x16xf32>
    %307 = tpu.matmul %13, %303, %cst_158 {dimension_numbers = #tpu.dot_dimension_numbers<[1], [0], [0], [1], [0, 0, 1, 1], [], []>} : vector<16x16xbf16>, vector<16x16xbf16>, vector<16x16xf32> -> vector<16x16xf32>
    %cst_159 = arith.constant dense<0.000000e+00> : vector<16x16xf32>
    %308 = tpu.matmul %15, %305, %cst_159 {dimension_numbers = #tpu.dot_dimension_numbers<[1], [0], [0], [1], [0, 0, 1, 1], [], []>} : vector<16x16xbf16>, vector<16x16xbf16>, vector<16x16xf32> -> vector<16x16xf32>
    %309 = arith.subf %306, %307 : vector<16x16xf32>
    %310 = arith.subf %308, %306 : vector<16x16xf32>
    %311 = arith.subf %310, %307 : vector<16x16xf32>
    %312 = arith.truncf %309 : vector<16x16xf32> to vector<16x16xbf16>
    %cst_160 = arith.constant dense<0.000000e+00> : vector<16x16xf32>
    %313 = tpu.matmul %312, %17, %cst_160 {dimension_numbers = #tpu.dot_dimension_numbers<[1], [0], [0], [1], [0, 0, 1, 1], [], []>} : vector<16x16xbf16>, vector<16x16xbf16>, vector<16x16xf32> -> vector<16x16xf32>
    %314 = arith.truncf %311 : vector<16x16xf32> to vector<16x16xbf16>
    %cst_161 = arith.constant dense<0.000000e+00> : vector<16x16xf32>
    %315 = tpu.matmul %314, %19, %cst_161 {dimension_numbers = #tpu.dot_dimension_numbers<[1], [0], [0], [1], [0, 0, 1, 1], [], []>} : vector<16x16xbf16>, vector<16x16xbf16>, vector<16x16xf32> -> vector<16x16xf32>
    %316 = arith.addf %309, %311 : vector<16x16xf32>
    %317 = arith.truncf %316 : vector<16x16xf32> to vector<16x16xbf16>
    %cst_162 = arith.constant dense<0.000000e+00> : vector<16x16xf32>
    %318 = tpu.matmul %317, %21, %cst_162 {dimension_numbers = #tpu.dot_dimension_numbers<[1], [0], [0], [1], [0, 0, 1, 1], [], []>} : vector<16x16xbf16>, vector<16x16xbf16>, vector<16x16xf32> -> vector<16x16xf32>
    %319 = arith.subf %313, %315 : vector<16x16xf32>
    %320 = arith.subf %318, %313 : vector<16x16xf32>
    %321 = arith.subf %320, %315 : vector<16x16xf32>
    %c0_163 = arith.constant 0 : index
    %c0_164 = arith.constant 0 : index
    %322 = vector.load %arg10[%c0_163, %c0_164] : memref<16x16xf32, #tpu.memory_space<vmem>>, vector<16x16xf32>
    %323 = arith.mulf %259, %319 : vector<16x16xf32>
    %324 = arith.mulf %263, %321 : vector<16x16xf32>
    %325 = arith.subf %323, %324 : vector<16x16xf32>
    %326 = arith.addf %322, %325 : vector<16x16xf32>
    %c0_165 = arith.constant 0 : index
    %c0_166 = arith.constant 0 : index
    %327 = vector.load %arg10[%c0_165, %c0_166] : memref<16x16xf32, #tpu.memory_space<vmem>>, vector<16x16xf32>
    tpu.vector_store %arg10[%c0_165, %c0_166], %326 {strides = array<i32>} : memref<16x16xf32, #tpu.memory_space<vmem>>, vector<16x16xf32>,
    %c0_167 = arith.constant 0 : index
    %c0_168 = arith.constant 0 : index
    %328 = vector.load %arg11[%c0_167, %c0_168] : memref<16x16xf32, #tpu.memory_space<vmem>>, vector<16x16xf32>
    %329 = arith.mulf %259, %321 : vector<16x16xf32>
    %330 = arith.mulf %263, %319 : vector<16x16xf32>
    %331 = arith.addf %329, %330 : vector<16x16xf32>
    %332 = arith.subf %328, %331 : vector<16x16xf32>
    %c0_169 = arith.constant 0 : index
    %c0_170 = arith.constant 0 : index
    %333 = vector.load %arg11[%c0_169, %c0_170] : memref<16x16xf32, #tpu.memory_space<vmem>>, vector<16x16xf32>
    tpu.vector_store %arg11[%c0_169, %c0_170], %332 {strides = array<i32>} : memref<16x16xf32, #tpu.memory_space<vmem>>, vector<16x16xf32>,
    %c4_i32 = arith.constant 4 : i32
    %c0_i32_171 = arith.constant 0 : i32
    %334 = arith.cmpi eq, %arg1, %c0_i32_171 : i32
    %335 = arith.extui %334 : i1 to i32
    %c0_i32_172 = arith.constant 0 : i32
    %336 = arith.cmpi ne, %335, %c0_i32_172 : i32
    scf.if %336 {
      %c0_173 = arith.constant 0 : index
      %337 = memref.load %arg2[%c0_173] : memref<1xf32, #tpu.memory_space<smem>>
      %c0_174 = arith.constant 0 : index
      %c0_175 = arith.constant 0 : index
      %338 = vector.load %arg10[%c0_174, %c0_175] : memref<16x16xf32, #tpu.memory_space<vmem>>, vector<16x16xf32>
      %339 = vector.broadcast %337 : f32 to vector<16x16xf32>
      %340 = arith.mulf %339, %338 : vector<16x16xf32>
      %341 = arith.subf %4, %340 : vector<16x16xf32>
      %c0_176 = arith.constant 0 : index
      %c0_177 = arith.constant 0 : index
      %c0_178 = arith.constant 0 : index
      %c0_179 = arith.constant 0 : index
      %342 = vector.load %arg9[%c0_176, %c0_177, %c0_178, %c0_179] : memref<1x2x16x16xf32, #tpu.memory_space<vmem>>, vector<1x1x16x16xf32>
      %343 = vector.shape_cast %342 : vector<1x1x16x16xf32> to vector<16x16xf32>
      %344 = vector.shape_cast %341 : vector<16x16xf32> to vector<1x1x16x16xf32>
      tpu.vector_store %arg9[%c0_176, %c0_177, %c0_178, %c0_179], %344 {strides = array<i32>} : memref<1x2x16x16xf32, #tpu.memory_space<vmem>>, vector<1x1x16x16xf32>,
      %c0_180 = arith.constant 0 : index
      %c0_181 = arith.constant 0 : index
      %345 = vector.load %arg11[%c0_180, %c0_181] : memref<16x16xf32, #tpu.memory_space<vmem>>, vector<16x16xf32>
      %346 = vector.broadcast %337 : f32 to vector<16x16xf32>
      %347 = arith.mulf %346, %345 : vector<16x16xf32>
      %348 = arith.subf %6, %347 : vector<16x16xf32>
      %c0_182 = arith.constant 0 : index
      %c1_183 = arith.constant 1 : index
      %c0_184 = arith.constant 0 : index
      %c0_185 = arith.constant 0 : index
      %349 = vector.load %arg9[%c0_182, %c1_183, %c0_184, %c0_185] : memref<1x2x16x16xf32, #tpu.memory_space<vmem>>, vector<1x1x16x16xf32>
      %350 = vector.shape_cast %349 : vector<1x1x16x16xf32> to vector<16x16xf32>
      %351 = vector.shape_cast %348 : vector<16x16xf32> to vector<1x1x16x16xf32>
      tpu.vector_store %arg9[%c0_182, %c1_183, %c0_184, %c0_185], %351 {strides = array<i32>} : memref<1x2x16x16xf32, #tpu.memory_space<vmem>>, vector<1x1x16x16xf32>,
    } else {
    }
    return
  }
  func.func @transform_0(%arg0: i32, %arg1: i32) -> i32 {
    %c0_i32 = arith.constant 0 : i32
    %c0_i32_0 = arith.constant 0 : i32
    return %c0_i32 : i32
  }
  func.func @transform_1(%arg0: i32, %arg1: i32) -> (i32, i32, i32, i32) {
    %c0_i32 = arith.constant 0 : i32
    %c0_i32_0 = arith.constant 0 : i32
    %c0_i32_1 = arith.constant 0 : i32
    %c0_i32_2 = arith.constant 0 : i32
    return %arg0, %c0_i32, %c0_i32_0, %c0_i32_1 : i32, i32, i32, i32
  }
  func.func @transform_2(%arg0: i32, %arg1: i32) -> (i32, i32, i32, i32, i32) {
    %c0_i32 = arith.constant 0 : i32
    %c0_i32_0 = arith.constant 0 : i32
    %c0_i32_1 = arith.constant 0 : i32
    %c0_i32_2 = arith.constant 0 : i32
    return %arg0, %arg1, %c0_i32, %c0_i32_0, %c0_i32_1 : i32, i32, i32, i32, i32
  }
  func.func @transform_3(%arg0: i32, %arg1: i32) -> (i32, i32, i32) {
    %c0_i32 = arith.constant 0 : i32
    %c0_i32_0 = arith.constant 0 : i32
    %c0_i32_1 = arith.constant 0 : i32
    return %arg0, %c0_i32, %c0_i32_0 : i32, i32, i32
  }
  func.func @transform_4(%arg0: i32, %arg1: i32) -> (i32, i32, i32, i32, i32) {
    %c0_i32 = arith.constant 0 : i32
    %c0_i32_0 = arith.constant 0 : i32
    %c0_i32_1 = arith.constant 0 : i32
    %c0_i32_2 = arith.constant 0 : i32
    return %arg0, %arg1, %c0_i32, %c0_i32_0, %c0_i32_1 : i32, i32, i32, i32, i32
  }
  func.func @transform_5(%arg0: i32, %arg1: i32) -> (i32, i32, i32) {
    %c0_i32 = arith.constant 0 : i32
    %c0_i32_0 = arith.constant 0 : i32
    %c0_i32_1 = arith.constant 0 : i32
    %c0_i32_2 = arith.constant 0 : i32
    return %c0_i32, %c0_i32_0, %c0_i32_1 : i32, i32, i32
  }
  func.func @transform_6(%arg0: i32, %arg1: i32) -> (i32, i32, i32) {
    %c0_i32 = arith.constant 0 : i32
    %c0_i32_0 = arith.constant 0 : i32
    %c0_i32_1 = arith.constant 0 : i32
    %c0_i32_2 = arith.constant 0 : i32
    return %c0_i32, %c0_i32_0, %c0_i32_1 : i32, i32, i32
  }
  func.func @transform_7(%arg0: i32, %arg1: i32) -> (i32, i32, i32, i32) {
    %c0_i32 = arith.constant 0 : i32
    %c0_i32_0 = arith.constant 0 : i32
    %c0_i32_1 = arith.constant 0 : i32
    %c0_i32_2 = arith.constant 0 : i32
    return %arg0, %c0_i32, %c0_i32_0, %c0_i32_1 : i32, i32, i32, i32
  }
}

module attributes {stable_mosaic.version = 11 : i64} {
  func.func @gd_kernel(%arg0: i32, %arg1: i32, %arg2: memref<1xf32, #tpu.memory_space<smem>>, %arg3: memref<1x2x16x16xf32, #tpu.memory_space<vmem>>, %arg4: memref<1x4x2x16x16xbf16, #tpu.memory_space<vmem>>, %arg5: memref<1x16x16xbf16, #tpu.memory_space<vmem>>, %arg6: memref<1x4x2x16x16xbf16, #tpu.memory_space<vmem>>, %arg7: memref<3x16x16xbf16, #tpu.memory_space<vmem>>, %arg8: memref<3x16x16xbf16, #tpu.memory_space<vmem>>, %arg9: memref<1x2x16x16xf32, #tpu.memory_space<vmem>>, %arg10: memref<16x16xf32, #tpu.memory_space<vmem>>, %arg11: memref<16x16xf32, #tpu.memory_space<vmem>>) attributes {dimension_semantics = [#tpu.dimension_semantics<parallel>, #tpu.dimension_semantics<arbitrary>], iteration_bounds = array<i64: 2, 1>, scalar_prefetch = 0 : i64, scratch_operands = 2 : i64, tpu.core_type = #tpu.core_type<tc>, window_params = [{transform_indices = @transform_0, window_bounds = array<i64: 1>}, {transform_indices = @transform_1, window_bounds = array<i64: 1, 2, 16, 16>}, {transform_indices = @transform_2, window_bounds = array<i64: 1, 4, 2, 16, 16>}, {transform_indices = @transform_3, window_bounds = array<i64: 1, 16, 16>}, {transform_indices = @transform_4, window_bounds = array<i64: 1, 4, 2, 16, 16>}, {pipeline_mode = #tpu.pipeline_mode<synchronous>, transform_indices = @transform_5, window_bounds = array<i64: 3, 16, 16>}, {pipeline_mode = #tpu.pipeline_mode<synchronous>, transform_indices = @transform_6, window_bounds = array<i64: 3, 16, 16>}, {transform_indices = @transform_7, window_bounds = array<i64: 1, 2, 16, 16>}]} {
    %c0_i32 = arith.constant 0 : i32
    %0 = arith.cmpi eq, %arg1, %c0_i32 : i32
    %1 = arith.extui %0 : i1 to i32
    %c0_i32_0 = arith.constant 0 : i32
    %2 = arith.cmpi ne, %1, %c0_i32_0 : i32
    scf.if %2 {
      %cst_173 = arith.constant 0.000000e+00 : f32
      %337 = vector.broadcast %cst_173 : f32 to vector<16x16xf32>
      %c0_174 = arith.constant 0 : index
      %c0_175 = arith.constant 0 : index
      %338 = vector.load %arg10[%c0_174, %c0_175] : memref<16x16xf32, #tpu.memory_space<vmem>>, vector<16x16xf32>
      tpu.vector_store %arg10[%c0_174, %c0_175], %337 {strides = array<i32>} : memref<16x16xf32, #tpu.memory_space<vmem>>, vector<16x16xf32>,
      %cst_176 = arith.constant 0.000000e+00 : f32
      %339 = vector.broadcast %cst_176 : f32 to vector<16x16xf32>
      %c0_177 = arith.constant 0 : index
      %c0_178 = arith.constant 0 : index
      %340 = vector.load %arg11[%c0_177, %c0_178] : memref<16x16xf32, #tpu.memory_space<vmem>>, vector<16x16xf32>
      tpu.vector_store %arg11[%c0_177, %c0_178], %339 {strides = array<i32>} : memref<16x16xf32, #tpu.memory_space<vmem>>, vector<16x16xf32>,
    } else {
    }
    %c0 = arith.constant 0 : index
    %c0_1 = arith.constant 0 : index
    %c0_2 = arith.constant 0 : index
    %c0_3 = arith.constant 0 : index
    %3 = vector.load %arg3[%c0, %c0_1, %c0_2, %c0_3] : memref<1x2x16x16xf32, #tpu.memory_space<vmem>>, vector<1x1x16x16xf32>
    %4 = vector.shape_cast %3 : vector<1x1x16x16xf32> to vector<16x16xf32>
    %c0_4 = arith.constant 0 : index
    %c1 = arith.constant 1 : index
    %c0_5 = arith.constant 0 : index
    %c0_6 = arith.constant 0 : index
    %5 = vector.load %arg3[%c0_4, %c1, %c0_5, %c0_6] : memref<1x2x16x16xf32, #tpu.memory_space<vmem>>, vector<1x1x16x16xf32>
    %6 = vector.shape_cast %5 : vector<1x1x16x16xf32> to vector<16x16xf32>
    %c0_7 = arith.constant 0 : index
    %c0_8 = arith.constant 0 : index
    %c0_9 = arith.constant 0 : index
    %7 = vector.load %arg5[%c0_7, %c0_8, %c0_9] : memref<1x16x16xbf16, #tpu.memory_space<vmem>>, vector<1x16x16xbf16>
    %8 = vector.shape_cast %7 : vector<1x16x16xbf16> to vector<16x16xbf16>
    %9 = arith.extf %8 : vector<16x16xbf16> to vector<16x16xf32>
    %c0_10 = arith.constant 0 : index
    %c0_11 = arith.constant 0 : index
    %c0_12 = arith.constant 0 : index
    %10 = vector.load %arg7[%c0_10, %c0_11, %c0_12] : memref<3x16x16xbf16, #tpu.memory_space<vmem>>, vector<1x16x16xbf16>
    %11 = vector.shape_cast %10 : vector<1x16x16xbf16> to vector<16x16xbf16>
    %c1_13 = arith.constant 1 : index
    %c0_14 = arith.constant 0 : index
    %c0_15 = arith.constant 0 : index
    %12 = vector.load %arg7[%c1_13, %c0_14, %c0_15] : memref<3x16x16xbf16, #tpu.memory_space<vmem>>, vector<1x16x16xbf16>
    %13 = vector.shape_cast %12 : vector<1x16x16xbf16> to vector<16x16xbf16>
    %c2 = arith.constant 2 : index
    %c0_16 = arith.constant 0 : index
    %c0_17 = arith.constant 0 : index
    %14 = vector.load %arg7[%c2, %c0_16, %c0_17] : memref<3x16x16xbf16, #tpu.memory_space<vmem>>, vector<1x16x16xbf16>
    %15 = vector.shape_cast %14 : vector<1x16x16xbf16> to vector<16x16xbf16>
    %c0_18 = arith.constant 0 : index
    %c0_19 = arith.constant 0 : index
    %c0_20 = arith.constant 0 : index
    %16 = vector.load %arg8[%c0_18, %c0_19, %c0_20] : memref<3x16x16xbf16, #tpu.memory_space<vmem>>, vector<1x16x16xbf16>
    %17 = vector.shape_cast %16 : vector<1x16x16xbf16> to vector<16x16xbf16>
    %c1_21 = arith.constant 1 : index
    %c0_22 = arith.constant 0 : index
    %c0_23 = arith.constant 0 : index
    %18 = vector.load %arg8[%c1_21, %c0_22, %c0_23] : memref<3x16x16xbf16, #tpu.memory_space<vmem>>, vector<1x16x16xbf16>
    %19 = vector.shape_cast %18 : vector<1x16x16xbf16> to vector<16x16xbf16>
    %c2_24 = arith.constant 2 : index
    %c0_25 = arith.constant 0 : index
    %c0_26 = arith.constant 0 : index
    %20 = vector.load %arg8[%c2_24, %c0_25, %c0_26] : memref<3x16x16xbf16, #tpu.memory_space<vmem>>, vector<1x16x16xbf16>
    %21 = vector.shape_cast %20 : vector<1x16x16xbf16> to vector<16x16xbf16>
    %c0_i32_27 = arith.constant 0 : i32
    %c0_28 = arith.constant 0 : index
    %22 = arith.index_cast %c0_i32_27 : i32 to index
    %c0_29 = arith.constant 0 : index
    %c0_30 = arith.constant 0 : index
    %c0_31 = arith.constant 0 : index
    %23 = vector.load %arg6[%c0_28, %22, %c0_29, %c0_30, %c0_31] : memref<1x4x2x16x16xbf16, #tpu.memory_space<vmem>>, vector<1x1x1x16x16xbf16>
    %24 = vector.shape_cast %23 : vector<1x1x1x16x16xbf16> to vector<16x16xbf16>
    %25 = arith.extf %24 : vector<16x16xbf16> to vector<16x16xf32>
    %c0_32 = arith.constant 0 : index
    %26 = arith.index_cast %c0_i32_27 : i32 to index
    %c1_33 = arith.constant 1 : index
    %c0_34 = arith.constant 0 : index
    %c0_35 = arith.constant 0 : index
    %27 = vector.load %arg6[%c0_32, %26, %c1_33, %c0_34, %c0_35] : memref<1x4x2x16x16xbf16, #tpu.memory_space<vmem>>, vector<1x1x1x16x16xbf16>
    %28 = vector.shape_cast %27 : vector<1x1x1x16x16xbf16> to vector<16x16xbf16>
    %29 = arith.extf %28 : vector<16x16xbf16> to vector<16x16xf32>
    %c0_36 = arith.constant 0 : index
    %30 = arith.index_cast %c0_i32_27 : i32 to index
    %c0_37 = arith.constant 0 : index
    %c0_38 = arith.constant 0 : index
    %c0_39 = arith.constant 0 : index
    %31 = vector.load %arg4[%c0_36, %30, %c0_37, %c0_38, %c0_39] : memref<1x4x2x16x16xbf16, #tpu.memory_space<vmem>>, vector<1x1x1x16x16xbf16>
    %32 = vector.shape_cast %31 : vector<1x1x1x16x16xbf16> to vector<16x16xbf16>
    %33 = arith.extf %32 : vector<16x16xbf16> to vector<16x16xf32>
    %c0_40 = arith.constant 0 : index
    %34 = arith.index_cast %c0_i32_27 : i32 to index
    %c1_41 = arith.constant 1 : index
    %c0_42 = arith.constant 0 : index
    %c0_43 = arith.constant 0 : index
    %35 = vector.load %arg4[%c0_40, %34, %c1_41, %c0_42, %c0_43] : memref<1x4x2x16x16xbf16, #tpu.memory_space<vmem>>, vector<1x1x1x16x16xbf16>
    %36 = vector.shape_cast %35 : vector<1x1x1x16x16xbf16> to vector<16x16xbf16>
    %37 = arith.extf %36 : vector<16x16xbf16> to vector<16x16xf32>
    %38 = arith.mulf %25, %4 : vector<16x16xf32>
    %39 = arith.mulf %29, %6 : vector<16x16xf32>
    %40 = arith.subf %38, %39 : vector<16x16xf32>
    %41 = arith.mulf %25, %6 : vector<16x16xf32>
    %42 = arith.mulf %29, %4 : vector<16x16xf32>
    %43 = arith.addf %41, %42 : vector<16x16xf32>
    %44 = arith.truncf %40 : vector<16x16xf32> to vector<16x16xbf16>
    %45 = arith.truncf %43 : vector<16x16xf32> to vector<16x16xbf16>
    %46 = arith.addf %40, %43 : vector<16x16xf32>
    %47 = arith.truncf %46 : vector<16x16xf32> to vector<16x16xbf16>
    %cst = arith.constant dense<0.000000e+00> : vector<16x16xf32>
    %48 = tpu.matmul %11, %44, %cst {dimension_numbers = #tpu.dot_dimension_numbers<[1], [0], [0], [1], [0, 0, 1, 1], [], []>} : vector<16x16xbf16>, vector<16x16xbf16>, vector<16x16xf32> -> vector<16x16xf32>
    %cst_44 = arith.constant dense<0.000000e+00> : vector<16x16xf32>
    %49 = tpu.matmul %13, %45, %cst_44 {dimension_numbers = #tpu.dot_dimension_numbers<[1], [0], [0], [1], [0, 0, 1, 1], [], []>} : vector<16x16xbf16>, vector<16x16xbf16>, vector<16x16xf32> -> vector<16x16xf32>
    %cst_45 = arith.constant dense<0.000000e+00> : vector<16x16xf32>
    %50 = tpu.matmul %15, %47, %cst_45 {dimension_numbers = #tpu.dot_dimension_numbers<[1], [0], [0], [1], [0, 0, 1, 1], [], []>} : vector<16x16xbf16>, vector<16x16xbf16>, vector<16x16xf32> -> vector<16x16xf32>
    %51 = arith.subf %48, %49 : vector<16x16xf32>
    %52 = arith.subf %50, %48 : vector<16x16xf32>
    %53 = arith.subf %52, %49 : vector<16x16xf32>
    %54 = arith.truncf %51 : vector<16x16xf32> to vector<16x16xbf16>
    %cst_46 = arith.constant dense<0.000000e+00> : vector<16x16xf32>
    %55 = tpu.matmul %54, %17, %cst_46 {dimension_numbers = #tpu.dot_dimension_numbers<[1], [0], [0], [1], [0, 0, 1, 1], [], []>} : vector<16x16xbf16>, vector<16x16xbf16>, vector<16x16xf32> -> vector<16x16xf32>
    %56 = arith.truncf %53 : vector<16x16xf32> to vector<16x16xbf16>
    %cst_47 = arith.constant dense<0.000000e+00> : vector<16x16xf32>
    %57 = tpu.matmul %56, %19, %cst_47 {dimension_numbers = #tpu.dot_dimension_numbers<[1], [0], [0], [1], [0, 0, 1, 1], [], []>} : vector<16x16xbf16>, vector<16x16xbf16>, vector<16x16xf32> -> vector<16x16xf32>
    %58 = arith.addf %51, %53 : vector<16x16xf32>
    %59 = arith.truncf %58 : vector<16x16xf32> to vector<16x16xbf16>
    %cst_48 = arith.constant dense<0.000000e+00> : vector<16x16xf32>
    %60 = tpu.matmul %59, %21, %cst_48 {dimension_numbers = #tpu.dot_dimension_numbers<[1], [0], [0], [1], [0, 0, 1, 1], [], []>} : vector<16x16xbf16>, vector<16x16xbf16>, vector<16x16xf32> -> vector<16x16xf32>
    %61 = arith.subf %55, %57 : vector<16x16xf32>
    %62 = arith.subf %60, %55 : vector<16x16xf32>
    %63 = arith.subf %62, %57 : vector<16x16xf32>
    %64 = arith.subf %61, %33 : vector<16x16xf32>
    %65 = arith.mulf %9, %64 : vector<16x16xf32>
    %66 = arith.subf %37, %63 : vector<16x16xf32>
    %67 = arith.mulf %9, %66 : vector<16x16xf32>
    %68 = arith.truncf %65 : vector<16x16xf32> to vector<16x16xbf16>
    %69 = arith.truncf %67 : vector<16x16xf32> to vector<16x16xbf16>
    %70 = arith.addf %65, %67 : vector<16x16xf32>
    %71 = arith.truncf %70 : vector<16x16xf32> to vector<16x16xbf16>
    %cst_49 = arith.constant dense<0.000000e+00> : vector<16x16xf32>
    %72 = tpu.matmul %11, %68, %cst_49 {dimension_numbers = #tpu.dot_dimension_numbers<[1], [0], [0], [1], [0, 0, 1, 1], [], []>} : vector<16x16xbf16>, vector<16x16xbf16>, vector<16x16xf32> -> vector<16x16xf32>
    %cst_50 = arith.constant dense<0.000000e+00> : vector<16x16xf32>
    %73 = tpu.matmul %13, %69, %cst_50 {dimension_numbers = #tpu.dot_dimension_numbers<[1], [0], [0], [1], [0, 0, 1, 1], [], []>} : vector<16x16xbf16>, vector<16x16xbf16>, vector<16x16xf32> -> vector<16x16xf32>
    %cst_51 = arith.constant dense<0.000000e+00> : vector<16x16xf32>
    %74 = tpu.matmul %15, %71, %cst_51 {dimension_numbers = #tpu.dot_dimension_numbers<[1], [0], [0], [1], [0, 0, 1, 1], [], []>} : vector<16x16xbf16>, vector<16x16xbf16>, vector<16x16xf32> -> vector<16x16xf32>
    %75 = arith.subf %72, %73 : vector<16x16xf32>
    %76 = arith.subf %74, %72 : vector<16x16xf32>
    %77 = arith.subf %76, %73 : vector<16x16xf32>
    %78 = arith.truncf %75 : vector<16x16xf32> to vector<16x16xbf16>
    %cst_52 = arith.constant dense<0.000000e+00> : vector<16x16xf32>
    %79 = tpu.matmul %78, %17, %cst_52 {dimension_numbers = #tpu.dot_dimension_numbers<[1], [0], [0], [1], [0, 0, 1, 1], [], []>} : vector<16x16xbf16>, vector<16x16xbf16>, vector<16x16xf32> -> vector<16x16xf32>
    %80 = arith.truncf %77 : vector<16x16xf32> to vector<16x16xbf16>
    %cst_53 = arith.constant dense<0.000000e+00> : vector<16x16xf32>
    %81 = tpu.matmul %80, %19, %cst_53 {dimension_numbers = #tpu.dot_dimension_numbers<[1], [0], [0], [1], [0, 0, 1, 1], [], []>} : vector<16x16xbf16>, vector<16x16xbf16>, vector<16x16xf32> -> vector<16x16xf32>
    %82 = arith.addf %75, %77 : vector<16x16xf32>
    %83 = arith.truncf %82 : vector<16x16xf32> to vector<16x16xbf16>
    %cst_54 = arith.constant dense<0.000000e+00> : vector<16x16xf32>
    %84 = tpu.matmul %83, %21, %cst_54 {dimension_numbers = #tpu.dot_dimension_numbers<[1], [0], [0], [1], [0, 0, 1, 1], [], []>} : vector<16x16xbf16>, vector<16x16xbf16>, vector<16x16xf32> -> vector<16x16xf32>
    %85 = arith.subf %79, %81 : vector<16x16xf32>
    %86 = arith.subf %84, %79 : vector<16x16xf32>
    %87 = arith.subf %86, %81 : vector<16x16xf32>
    %c0_55 = arith.constant 0 : index
    %c0_56 = arith.constant 0 : index
    %88 = vector.load %arg10[%c0_55, %c0_56] : memref<16x16xf32, #tpu.memory_space<vmem>>, vector<16x16xf32>
    %89 = arith.mulf %25, %85 : vector<16x16xf32>
    %90 = arith.mulf %29, %87 : vector<16x16xf32>
    %91 = arith.subf %89, %90 : vector<16x16xf32>
    %92 = arith.addf %88, %91 : vector<16x16xf32>
    %c0_57 = arith.constant 0 : index
    %c0_58 = arith.constant 0 : index
    %93 = vector.load %arg10[%c0_57, %c0_58] : memref<16x16xf32, #tpu.memory_space<vmem>>, vector<16x16xf32>
    tpu.vector_store %arg10[%c0_57, %c0_58], %92 {strides = array<i32>} : memref<16x16xf32, #tpu.memory_space<vmem>>, vector<16x16xf32>,
    %c0_59 = arith.constant 0 : index
    %c0_60 = arith.constant 0 : index
    %94 = vector.load %arg11[%c0_59, %c0_60] : memref<16x16xf32, #tpu.memory_space<vmem>>, vector<16x16xf32>
    %95 = arith.mulf %25, %87 : vector<16x16xf32>
    %96 = arith.mulf %29, %85 : vector<16x16xf32>
    %97 = arith.addf %95, %96 : vector<16x16xf32>
    %98 = arith.subf %94, %97 : vector<16x16xf32>
    %c0_61 = arith.constant 0 : index
    %c0_62 = arith.constant 0 : index
    %99 = vector.load %arg11[%c0_61, %c0_62] : memref<16x16xf32, #tpu.memory_space<vmem>>, vector<16x16xf32>
    tpu.vector_store %arg11[%c0_61, %c0_62], %98 {strides = array<i32>} : memref<16x16xf32, #tpu.memory_space<vmem>>, vector<16x16xf32>,
    %c1_i32 = arith.constant 1 : i32
    %c0_63 = arith.constant 0 : index
    %100 = arith.index_cast %c1_i32 : i32 to index
    %c0_64 = arith.constant 0 : index
    %c0_65 = arith.constant 0 : index
    %c0_66 = arith.constant 0 : index
    %101 = vector.load %arg6[%c0_63, %100, %c0_64, %c0_65, %c0_66] : memref<1x4x2x16x16xbf16, #tpu.memory_space<vmem>>, vector<1x1x1x16x16xbf16>
    %102 = vector.shape_cast %101 : vector<1x1x1x16x16xbf16> to vector<16x16xbf16>
    %103 = arith.extf %102 : vector<16x16xbf16> to vector<16x16xf32>
    %c0_67 = arith.constant 0 : index
    %104 = arith.index_cast %c1_i32 : i32 to index
    %c1_68 = arith.constant 1 : index
    %c0_69 = arith.constant 0 : index
    %c0_70 = arith.constant 0 : index
    %105 = vector.load %arg6[%c0_67, %104, %c1_68, %c0_69, %c0_70] : memref<1x4x2x16x16xbf16, #tpu.memory_space<vmem>>, vector<1x1x1x16x16xbf16>
    %106 = vector.shape_cast %105 : vector<1x1x1x16x16xbf16> to vector<16x16xbf16>
    %107 = arith.extf %106 : vector<16x16xbf16> to vector<16x16xf32>
    %c0_71 = arith.constant 0 : index
    %108 = arith.index_cast %c1_i32 : i32 to index
    %c0_72 = arith.constant 0 : index
    %c0_73 = arith.constant 0 : index
    %c0_74 = arith.constant 0 : index
    %109 = vector.load %arg4[%c0_71, %108, %c0_72, %c0_73, %c0_74] : memref<1x4x2x16x16xbf16, #tpu.memory_space<vmem>>, vector<1x1x1x16x16xbf16>
    %110 = vector.shape_cast %109 : vector<1x1x1x16x16xbf16> to vector<16x16xbf16>
    %111 = arith.extf %110 : vector<16x16xbf16> to vector<16x16xf32>
    %c0_75 = arith.constant 0 : index
    %112 = arith.index_cast %c1_i32 : i32 to index
    %c1_76 = arith.constant 1 : index
    %c0_77 = arith.constant 0 : index
    %c0_78 = arith.constant 0 : index
    %113 = vector.load %arg4[%c0_75, %112, %c1_76, %c0_77, %c0_78] : memref<1x4x2x16x16xbf16, #tpu.memory_space<vmem>>, vector<1x1x1x16x16xbf16>
    %114 = vector.shape_cast %113 : vector<1x1x1x16x16xbf16> to vector<16x16xbf16>
    %115 = arith.extf %114 : vector<16x16xbf16> to vector<16x16xf32>
    %116 = arith.mulf %103, %4 : vector<16x16xf32>
    %117 = arith.mulf %107, %6 : vector<16x16xf32>
    %118 = arith.subf %116, %117 : vector<16x16xf32>
    %119 = arith.mulf %103, %6 : vector<16x16xf32>
    %120 = arith.mulf %107, %4 : vector<16x16xf32>
    %121 = arith.addf %119, %120 : vector<16x16xf32>
    %122 = arith.truncf %118 : vector<16x16xf32> to vector<16x16xbf16>
    %123 = arith.truncf %121 : vector<16x16xf32> to vector<16x16xbf16>
    %124 = arith.addf %118, %121 : vector<16x16xf32>
    %125 = arith.truncf %124 : vector<16x16xf32> to vector<16x16xbf16>
    %cst_79 = arith.constant dense<0.000000e+00> : vector<16x16xf32>
    %126 = tpu.matmul %11, %122, %cst_79 {dimension_numbers = #tpu.dot_dimension_numbers<[1], [0], [0], [1], [0, 0, 1, 1], [], []>} : vector<16x16xbf16>, vector<16x16xbf16>, vector<16x16xf32> -> vector<16x16xf32>
    %cst_80 = arith.constant dense<0.000000e+00> : vector<16x16xf32>
    %127 = tpu.matmul %13, %123, %cst_80 {dimension_numbers = #tpu.dot_dimension_numbers<[1], [0], [0], [1], [0, 0, 1, 1], [], []>} : vector<16x16xbf16>, vector<16x16xbf16>, vector<16x16xf32> -> vector<16x16xf32>
    %cst_81 = arith.constant dense<0.000000e+00> : vector<16x16xf32>
    %128 = tpu.matmul %15, %125, %cst_81 {dimension_numbers = #tpu.dot_dimension_numbers<[1], [0], [0], [1], [0, 0, 1, 1], [], []>} : vector<16x16xbf16>, vector<16x16xbf16>, vector<16x16xf32> -> vector<16x16xf32>
    %129 = arith.subf %126, %127 : vector<16x16xf32>
    %130 = arith.subf %128, %126 : vector<16x16xf32>
    %131 = arith.subf %130, %127 : vector<16x16xf32>
    %132 = arith.truncf %129 : vector<16x16xf32> to vector<16x16xbf16>
    %cst_82 = arith.constant dense<0.000000e+00> : vector<16x16xf32>
    %133 = tpu.matmul %132, %17, %cst_82 {dimension_numbers = #tpu.dot_dimension_numbers<[1], [0], [0], [1], [0, 0, 1, 1], [], []>} : vector<16x16xbf16>, vector<16x16xbf16>, vector<16x16xf32> -> vector<16x16xf32>
    %134 = arith.truncf %131 : vector<16x16xf32> to vector<16x16xbf16>
    %cst_83 = arith.constant dense<0.000000e+00> : vector<16x16xf32>
    %135 = tpu.matmul %134, %19, %cst_83 {dimension_numbers = #tpu.dot_dimension_numbers<[1], [0], [0], [1], [0, 0, 1, 1], [], []>} : vector<16x16xbf16>, vector<16x16xbf16>, vector<16x16xf32> -> vector<16x16xf32>
    %136 = arith.addf %129, %131 : vector<16x16xf32>
    %137 = arith.truncf %136 : vector<16x16xf32> to vector<16x16xbf16>
    %cst_84 = arith.constant dense<0.000000e+00> : vector<16x16xf32>
    %138 = tpu.matmul %137, %21, %cst_84 {dimension_numbers = #tpu.dot_dimension_numbers<[1], [0], [0], [1], [0, 0, 1, 1], [], []>} : vector<16x16xbf16>, vector<16x16xbf16>, vector<16x16xf32> -> vector<16x16xf32>
    %139 = arith.subf %133, %135 : vector<16x16xf32>
    %140 = arith.subf %138, %133 : vector<16x16xf32>
    %141 = arith.subf %140, %135 : vector<16x16xf32>
    %142 = arith.subf %139, %111 : vector<16x16xf32>
    %143 = arith.mulf %9, %142 : vector<16x16xf32>
    %144 = arith.subf %115, %141 : vector<16x16xf32>
    %145 = arith.mulf %9, %144 : vector<16x16xf32>
    %146 = arith.truncf %143 : vector<16x16xf32> to vector<16x16xbf16>
    %147 = arith.truncf %145 : vector<16x16xf32> to vector<16x16xbf16>
    %148 = arith.addf %143, %145 : vector<16x16xf32>
    %149 = arith.truncf %148 : vector<16x16xf32> to vector<16x16xbf16>
    %cst_85 = arith.constant dense<0.000000e+00> : vector<16x16xf32>
    %150 = tpu.matmul %11, %146, %cst_85 {dimension_numbers = #tpu.dot_dimension_numbers<[1], [0], [0], [1], [0, 0, 1, 1], [], []>} : vector<16x16xbf16>, vector<16x16xbf16>, vector<16x16xf32> -> vector<16x16xf32>
    %cst_86 = arith.constant dense<0.000000e+00> : vector<16x16xf32>
    %151 = tpu.matmul %13, %147, %cst_86 {dimension_numbers = #tpu.dot_dimension_numbers<[1], [0], [0], [1], [0, 0, 1, 1], [], []>} : vector<16x16xbf16>, vector<16x16xbf16>, vector<16x16xf32> -> vector<16x16xf32>
    %cst_87 = arith.constant dense<0.000000e+00> : vector<16x16xf32>
    %152 = tpu.matmul %15, %149, %cst_87 {dimension_numbers = #tpu.dot_dimension_numbers<[1], [0], [0], [1], [0, 0, 1, 1], [], []>} : vector<16x16xbf16>, vector<16x16xbf16>, vector<16x16xf32> -> vector<16x16xf32>
    %153 = arith.subf %150, %151 : vector<16x16xf32>
    %154 = arith.subf %152, %150 : vector<16x16xf32>
    %155 = arith.subf %154, %151 : vector<16x16xf32>
    %156 = arith.truncf %153 : vector<16x16xf32> to vector<16x16xbf16>
    %cst_88 = arith.constant dense<0.000000e+00> : vector<16x16xf32>
    %157 = tpu.matmul %156, %17, %cst_88 {dimension_numbers = #tpu.dot_dimension_numbers<[1], [0], [0], [1], [0, 0, 1, 1], [], []>} : vector<16x16xbf16>, vector<16x16xbf16>, vector<16x16xf32> -> vector<16x16xf32>
    %158 = arith.truncf %155 : vector<16x16xf32> to vector<16x16xbf16>
    %cst_89 = arith.constant dense<0.000000e+00> : vector<16x16xf32>
    %159 = tpu.matmul %158, %19, %cst_89 {dimension_numbers = #tpu.dot_dimension_numbers<[1], [0], [0], [1], [0, 0, 1, 1], [], []>} : vector<16x16xbf16>, vector<16x16xbf16>, vector<16x16xf32> -> vector<16x16xf32>
    %160 = arith.addf %153, %155 : vector<16x16xf32>
    %161 = arith.truncf %160 : vector<16x16xf32> to vector<16x16xbf16>
    %cst_90 = arith.constant dense<0.000000e+00> : vector<16x16xf32>
    %162 = tpu.matmul %161, %21, %cst_90 {dimension_numbers = #tpu.dot_dimension_numbers<[1], [0], [0], [1], [0, 0, 1, 1], [], []>} : vector<16x16xbf16>, vector<16x16xbf16>, vector<16x16xf32> -> vector<16x16xf32>
    %163 = arith.subf %157, %159 : vector<16x16xf32>
    %164 = arith.subf %162, %157 : vector<16x16xf32>
    %165 = arith.subf %164, %159 : vector<16x16xf32>
    %c0_91 = arith.constant 0 : index
    %c0_92 = arith.constant 0 : index
    %166 = vector.load %arg10[%c0_91, %c0_92] : memref<16x16xf32, #tpu.memory_space<vmem>>, vector<16x16xf32>
    %167 = arith.mulf %103, %163 : vector<16x16xf32>
    %168 = arith.mulf %107, %165 : vector<16x16xf32>
    %169 = arith.subf %167, %168 : vector<16x16xf32>
    %170 = arith.addf %166, %169 : vector<16x16xf32>
    %c0_93 = arith.constant 0 : index
    %c0_94 = arith.constant 0 : index
    %171 = vector.load %arg10[%c0_93, %c0_94] : memref<16x16xf32, #tpu.memory_space<vmem>>, vector<16x16xf32>
    tpu.vector_store %arg10[%c0_93, %c0_94], %170 {strides = array<i32>} : memref<16x16xf32, #tpu.memory_space<vmem>>, vector<16x16xf32>,
    %c0_95 = arith.constant 0 : index
    %c0_96 = arith.constant 0 : index
    %172 = vector.load %arg11[%c0_95, %c0_96] : memref<16x16xf32, #tpu.memory_space<vmem>>, vector<16x16xf32>
    %173 = arith.mulf %103, %165 : vector<16x16xf32>
    %174 = arith.mulf %107, %163 : vector<16x16xf32>
    %175 = arith.addf %173, %174 : vector<16x16xf32>
    %176 = arith.subf %172, %175 : vector<16x16xf32>
    %c0_97 = arith.constant 0 : index
    %c0_98 = arith.constant 0 : index
    %177 = vector.load %arg11[%c0_97, %c0_98] : memref<16x16xf32, #tpu.memory_space<vmem>>, vector<16x16xf32>
    tpu.vector_store %arg11[%c0_97, %c0_98], %176 {strides = array<i32>} : memref<16x16xf32, #tpu.memory_space<vmem>>, vector<16x16xf32>,
    %c2_i32 = arith.constant 2 : i32
    %c0_99 = arith.constant 0 : index
    %178 = arith.index_cast %c2_i32 : i32 to index
    %c0_100 = arith.constant 0 : index
    %c0_101 = arith.constant 0 : index
    %c0_102 = arith.constant 0 : index
    %179 = vector.load %arg6[%c0_99, %178, %c0_100, %c0_101, %c0_102] : memref<1x4x2x16x16xbf16, #tpu.memory_space<vmem>>, vector<1x1x1x16x16xbf16>
    %180 = vector.shape_cast %179 : vector<1x1x1x16x16xbf16> to vector<16x16xbf16>
    %181 = arith.extf %180 : vector<16x16xbf16> to vector<16x16xf32>
    %c0_103 = arith.constant 0 : index
    %182 = arith.index_cast %c2_i32 : i32 to index
    %c1_104 = arith.constant 1 : index
    %c0_105 = arith.constant 0 : index
    %c0_106 = arith.constant 0 : index
    %183 = vector.load %arg6[%c0_103, %182, %c1_104, %c0_105, %c0_106] : memref<1x4x2x16x16xbf16, #tpu.memory_space<vmem>>, vector<1x1x1x16x16xbf16>
    %184 = vector.shape_cast %183 : vector<1x1x1x16x16xbf16> to vector<16x16xbf16>
    %185 = arith.extf %184 : vector<16x16xbf16> to vector<16x16xf32>
    %c0_107 = arith.constant 0 : index
    %186 = arith.index_cast %c2_i32 : i32 to index
    %c0_108 = arith.constant 0 : index
    %c0_109 = arith.constant 0 : index
    %c0_110 = arith.constant 0 : index
    %187 = vector.load %arg4[%c0_107, %186, %c0_108, %c0_109, %c0_110] : memref<1x4x2x16x16xbf16, #tpu.memory_space<vmem>>, vector<1x1x1x16x16xbf16>
    %188 = vector.shape_cast %187 : vector<1x1x1x16x16xbf16> to vector<16x16xbf16>
    %189 = arith.extf %188 : vector<16x16xbf16> to vector<16x16xf32>
    %c0_111 = arith.constant 0 : index
    %190 = arith.index_cast %c2_i32 : i32 to index
    %c1_112 = arith.constant 1 : index
    %c0_113 = arith.constant 0 : index
    %c0_114 = arith.constant 0 : index
    %191 = vector.load %arg4[%c0_111, %190, %c1_112, %c0_113, %c0_114] : memref<1x4x2x16x16xbf16, #tpu.memory_space<vmem>>, vector<1x1x1x16x16xbf16>
    %192 = vector.shape_cast %191 : vector<1x1x1x16x16xbf16> to vector<16x16xbf16>
    %193 = arith.extf %192 : vector<16x16xbf16> to vector<16x16xf32>
    %194 = arith.mulf %181, %4 : vector<16x16xf32>
    %195 = arith.mulf %185, %6 : vector<16x16xf32>
    %196 = arith.subf %194, %195 : vector<16x16xf32>
    %197 = arith.mulf %181, %6 : vector<16x16xf32>
    %198 = arith.mulf %185, %4 : vector<16x16xf32>
    %199 = arith.addf %197, %198 : vector<16x16xf32>
    %200 = arith.truncf %196 : vector<16x16xf32> to vector<16x16xbf16>
    %201 = arith.truncf %199 : vector<16x16xf32> to vector<16x16xbf16>
    %202 = arith.addf %196, %199 : vector<16x16xf32>
    %203 = arith.truncf %202 : vector<16x16xf32> to vector<16x16xbf16>
    %cst_115 = arith.constant dense<0.000000e+00> : vector<16x16xf32>
    %204 = tpu.matmul %11, %200, %cst_115 {dimension_numbers = #tpu.dot_dimension_numbers<[1], [0], [0], [1], [0, 0, 1, 1], [], []>} : vector<16x16xbf16>, vector<16x16xbf16>, vector<16x16xf32> -> vector<16x16xf32>
    %cst_116 = arith.constant dense<0.000000e+00> : vector<16x16xf32>
    %205 = tpu.matmul %13, %201, %cst_116 {dimension_numbers = #tpu.dot_dimension_numbers<[1], [0], [0], [1], [0, 0, 1, 1], [], []>} : vector<16x16xbf16>, vector<16x16xbf16>, vector<16x16xf32> -> vector<16x16xf32>
    %cst_117 = arith.constant dense<0.000000e+00> : vector<16x16xf32>
    %206 = tpu.matmul %15, %203, %cst_117 {dimension_numbers = #tpu.dot_dimension_numbers<[1], [0], [0], [1], [0, 0, 1, 1], [], []>} : vector<16x16xbf16>, vector<16x16xbf16>, vector<16x16xf32> -> vector<16x16xf32>
    %207 = arith.subf %204, %205 : vector<16x16xf32>
    %208 = arith.subf %206, %204 : vector<16x16xf32>
    %209 = arith.subf %208, %205 : vector<16x16xf32>
    %210 = arith.truncf %207 : vector<16x16xf32> to vector<16x16xbf16>
    %cst_118 = arith.constant dense<0.000000e+00> : vector<16x16xf32>
    %211 = tpu.matmul %210, %17, %cst_118 {dimension_numbers = #tpu.dot_dimension_numbers<[1], [0], [0], [1], [0, 0, 1, 1], [], []>} : vector<16x16xbf16>, vector<16x16xbf16>, vector<16x16xf32> -> vector<16x16xf32>
    %212 = arith.truncf %209 : vector<16x16xf32> to vector<16x16xbf16>
    %cst_119 = arith.constant dense<0.000000e+00> : vector<16x16xf32>
    %213 = tpu.matmul %212, %19, %cst_119 {dimension_numbers = #tpu.dot_dimension_numbers<[1], [0], [0], [1], [0, 0, 1, 1], [], []>} : vector<16x16xbf16>, vector<16x16xbf16>, vector<16x16xf32> -> vector<16x16xf32>
    %214 = arith.addf %207, %209 : vector<16x16xf32>
    %215 = arith.truncf %214 : vector<16x16xf32> to vector<16x16xbf16>
    %cst_120 = arith.constant dense<0.000000e+00> : vector<16x16xf32>
    %216 = tpu.matmul %215, %21, %cst_120 {dimension_numbers = #tpu.dot_dimension_numbers<[1], [0], [0], [1], [0, 0, 1, 1], [], []>} : vector<16x16xbf16>, vector<16x16xbf16>, vector<16x16xf32> -> vector<16x16xf32>
    %217 = arith.subf %211, %213 : vector<16x16xf32>
    %218 = arith.subf %216, %211 : vector<16x16xf32>
    %219 = arith.subf %218, %213 : vector<16x16xf32>
    %220 = arith.subf %217, %189 : vector<16x16xf32>
    %221 = arith.mulf %9, %220 : vector<16x16xf32>
    %222 = arith.subf %193, %219 : vector<16x16xf32>
    %223 = arith.mulf %9, %222 : vector<16x16xf32>
    %224 = arith.truncf %221 : vector<16x16xf32> to vector<16x16xbf16>
    %225 = arith.truncf %223 : vector<16x16xf32> to vector<16x16xbf16>
    %226 = arith.addf %221, %223 : vector<16x16xf32>
    %227 = arith.truncf %226 : vector<16x16xf32> to vector<16x16xbf16>
    %cst_121 = arith.constant dense<0.000000e+00> : vector<16x16xf32>
    %228 = tpu.matmul %11, %224, %cst_121 {dimension_numbers = #tpu.dot_dimension_numbers<[1], [0], [0], [1], [0, 0, 1, 1], [], []>} : vector<16x16xbf16>, vector<16x16xbf16>, vector<16x16xf32> -> vector<16x16xf32>
    %cst_122 = arith.constant dense<0.000000e+00> : vector<16x16xf32>
    %229 = tpu.matmul %13, %225, %cst_122 {dimension_numbers = #tpu.dot_dimension_numbers<[1], [0], [0], [1], [0, 0, 1, 1], [], []>} : vector<16x16xbf16>, vector<16x16xbf16>, vector<16x16xf32> -> vector<16x16xf32>
    %cst_123 = arith.constant dense<0.000000e+00> : vector<16x16xf32>
    %230 = tpu.matmul %15, %227, %cst_123 {dimension_numbers = #tpu.dot_dimension_numbers<[1], [0], [0], [1], [0, 0, 1, 1], [], []>} : vector<16x16xbf16>, vector<16x16xbf16>, vector<16x16xf32> -> vector<16x16xf32>
    %231 = arith.subf %228, %229 : vector<16x16xf32>
    %232 = arith.subf %230, %228 : vector<16x16xf32>
    %233 = arith.subf %232, %229 : vector<16x16xf32>
    %234 = arith.truncf %231 : vector<16x16xf32> to vector<16x16xbf16>
    %cst_124 = arith.constant dense<0.000000e+00> : vector<16x16xf32>
    %235 = tpu.matmul %234, %17, %cst_124 {dimension_numbers = #tpu.dot_dimension_numbers<[1], [0], [0], [1], [0, 0, 1, 1], [], []>} : vector<16x16xbf16>, vector<16x16xbf16>, vector<16x16xf32> -> vector<16x16xf32>
    %236 = arith.truncf %233 : vector<16x16xf32> to vector<16x16xbf16>
    %cst_125 = arith.constant dense<0.000000e+00> : vector<16x16xf32>
    %237 = tpu.matmul %236, %19, %cst_125 {dimension_numbers = #tpu.dot_dimension_numbers<[1], [0], [0], [1], [0, 0, 1, 1], [], []>} : vector<16x16xbf16>, vector<16x16xbf16>, vector<16x16xf32> -> vector<16x16xf32>
    %238 = arith.addf %231, %233 : vector<16x16xf32>
    %239 = arith.truncf %238 : vector<16x16xf32> to vector<16x16xbf16>
    %cst_126 = arith.constant dense<0.000000e+00> : vector<16x16xf32>
    %240 = tpu.matmul %239, %21, %cst_126 {dimension_numbers = #tpu.dot_dimension_numbers<[1], [0], [0], [1], [0, 0, 1, 1], [], []>} : vector<16x16xbf16>, vector<16x16xbf16>, vector<16x16xf32> -> vector<16x16xf32>
    %241 = arith.subf %235, %237 : vector<16x16xf32>
    %242 = arith.subf %240, %235 : vector<16x16xf32>
    %243 = arith.subf %242, %237 : vector<16x16xf32>
    %c0_127 = arith.constant 0 : index
    %c0_128 = arith.constant 0 : index
    %244 = vector.load %arg10[%c0_127, %c0_128] : memref<16x16xf32, #tpu.memory_space<vmem>>, vector<16x16xf32>
    %245 = arith.mulf %181, %241 : vector<16x16xf32>
    %246 = arith.mulf %185, %243 : vector<16x16xf32>
    %247 = arith.subf %245, %246 : vector<16x16xf32>
    %248 = arith.addf %244, %247 : vector<16x16xf32>
    %c0_129 = arith.constant 0 : index
    %c0_130 = arith.constant 0 : index
    %249 = vector.load %arg10[%c0_129, %c0_130] : memref<16x16xf32, #tpu.memory_space<vmem>>, vector<16x16xf32>
    tpu.vector_store %arg10[%c0_129, %c0_130], %248 {strides = array<i32>} : memref<16x16xf32, #tpu.memory_space<vmem>>, vector<16x16xf32>,
    %c0_131 = arith.constant 0 : index
    %c0_132 = arith.constant 0 : index
    %250 = vector.load %arg11[%c0_131, %c0_132] : memref<16x16xf32, #tpu.memory_space<vmem>>, vector<16x16xf32>
    %251 = arith.mulf %181, %243 : vector<16x16xf32>
    %252 = arith.mulf %185, %241 : vector<16x16xf32>
    %253 = arith.addf %251, %252 : vector<16x16xf32>
    %254 = arith.subf %250, %253 : vector<16x16xf32>
    %c0_133 = arith.constant 0 : index
    %c0_134 = arith.constant 0 : index
    %255 = vector.load %arg11[%c0_133, %c0_134] : memref<16x16xf32, #tpu.memory_space<vmem>>, vector<16x16xf32>
    tpu.vector_store %arg11[%c0_133, %c0_134], %254 {strides = array<i32>} : memref<16x16xf32, #tpu.memory_space<vmem>>, vector<16x16xf32>,
    %c3_i32 = arith.constant 3 : i32
    %c0_135 = arith.constant 0 : index
    %256 = arith.index_cast %c3_i32 : i32 to index
    %c0_136 = arith.constant 0 : index
    %c0_137 = arith.constant 0 : index
    %c0_138 = arith.constant 0 : index
    %257 = vector.load %arg6[%c0_135, %256, %c0_136, %c0_137, %c0_138] : memref<1x4x2x16x16xbf16, #tpu.memory_space<vmem>>, vector<1x1x1x16x16xbf16>
    %258 = vector.shape_cast %257 : vector<1x1x1x16x16xbf16> to vector<16x16xbf16>
    %259 = arith.extf %258 : vector<16x16xbf16> to vector<16x16xf32>
    %c0_139 = arith.constant 0 : index
    %260 = arith.index_cast %c3_i32 : i32 to index
    %c1_140 = arith.constant 1 : index
    %c0_141 = arith.constant 0 : index
    %c0_142 = arith.constant 0 : index
    %261 = vector.load %arg6[%c0_139, %260, %c1_140, %c0_141, %c0_142] : memref<1x4x2x16x16xbf16, #tpu.memory_space<vmem>>, vector<1x1x1x16x16xbf16>
    %262 = vector.shape_cast %261 : vector<1x1x1x16x16xbf16> to vector<16x16xbf16>
    %263 = arith.extf %262 : vector<16x16xbf16> to vector<16x16xf32>
    %c0_143 = arith.constant 0 : index
    %264 = arith.index_cast %c3_i32 : i32 to index
    %c0_144 = arith.constant 0 : index
    %c0_145 = arith.constant 0 : index
    %c0_146 = arith.constant 0 : index
    %265 = vector.load %arg4[%c0_143, %264, %c0_144, %c0_145, %c0_146] : memref<1x4x2x16x16xbf16, #tpu.memory_space<vmem>>, vector<1x1x1x16x16xbf16>
    %266 = vector.shape_cast %265 : vector<1x1x1x16x16xbf16> to vector<16x16xbf16>
    %267 = arith.extf %266 : vector<16x16xbf16> to vector<16x16xf32>
    %c0_147 = arith.constant 0 : index
    %268 = arith.index_cast %c3_i32 : i32 to index
    %c1_148 = arith.constant 1 : index
    %c0_149 = arith.constant 0 : index
    %c0_150 = arith.constant 0 : index
    %269 = vector.load %arg4[%c0_147, %268, %c1_148, %c0_149, %c0_150] : memref<1x4x2x16x16xbf16, #tpu.memory_space<vmem>>, vector<1x1x1x16x16xbf16>
    %270 = vector.shape_cast %269 : vector<1x1x1x16x16xbf16> to vector<16x16xbf16>
    %271 = arith.extf %270 : vector<16x16xbf16> to vector<16x16xf32>
    %272 = arith.mulf %259, %4 : vector<16x16xf32>
    %273 = arith.mulf %263, %6 : vector<16x16xf32>
    %274 = arith.subf %272, %273 : vector<16x16xf32>
    %275 = arith.mulf %259, %6 : vector<16x16xf32>
    %276 = arith.mulf %263, %4 : vector<16x16xf32>
    %277 = arith.addf %275, %276 : vector<16x16xf32>
    %278 = arith.truncf %274 : vector<16x16xf32> to vector<16x16xbf16>
    %279 = arith.truncf %277 : vector<16x16xf32> to vector<16x16xbf16>
    %280 = arith.addf %274, %277 : vector<16x16xf32>
    %281 = arith.truncf %280 : vector<16x16xf32> to vector<16x16xbf16>
    %cst_151 = arith.constant dense<0.000000e+00> : vector<16x16xf32>
    %282 = tpu.matmul %11, %278, %cst_151 {dimension_numbers = #tpu.dot_dimension_numbers<[1], [0], [0], [1], [0, 0, 1, 1], [], []>} : vector<16x16xbf16>, vector<16x16xbf16>, vector<16x16xf32> -> vector<16x16xf32>
    %cst_152 = arith.constant dense<0.000000e+00> : vector<16x16xf32>
    %283 = tpu.matmul %13, %279, %cst_152 {dimension_numbers = #tpu.dot_dimension_numbers<[1], [0], [0], [1], [0, 0, 1, 1], [], []>} : vector<16x16xbf16>, vector<16x16xbf16>, vector<16x16xf32> -> vector<16x16xf32>
    %cst_153 = arith.constant dense<0.000000e+00> : vector<16x16xf32>
    %284 = tpu.matmul %15, %281, %cst_153 {dimension_numbers = #tpu.dot_dimension_numbers<[1], [0], [0], [1], [0, 0, 1, 1], [], []>} : vector<16x16xbf16>, vector<16x16xbf16>, vector<16x16xf32> -> vector<16x16xf32>
    %285 = arith.subf %282, %283 : vector<16x16xf32>
    %286 = arith.subf %284, %282 : vector<16x16xf32>
    %287 = arith.subf %286, %283 : vector<16x16xf32>
    %288 = arith.truncf %285 : vector<16x16xf32> to vector<16x16xbf16>
    %cst_154 = arith.constant dense<0.000000e+00> : vector<16x16xf32>
    %289 = tpu.matmul %288, %17, %cst_154 {dimension_numbers = #tpu.dot_dimension_numbers<[1], [0], [0], [1], [0, 0, 1, 1], [], []>} : vector<16x16xbf16>, vector<16x16xbf16>, vector<16x16xf32> -> vector<16x16xf32>
    %290 = arith.truncf %287 : vector<16x16xf32> to vector<16x16xbf16>
    %cst_155 = arith.constant dense<0.000000e+00> : vector<16x16xf32>
    %291 = tpu.matmul %290, %19, %cst_155 {dimension_numbers = #tpu.dot_dimension_numbers<[1], [0], [0], [1], [0, 0, 1, 1], [], []>} : vector<16x16xbf16>, vector<16x16xbf16>, vector<16x16xf32> -> vector<16x16xf32>
    %292 = arith.addf %285, %287 : vector<16x16xf32>
    %293 = arith.truncf %292 : vector<16x16xf32> to vector<16x16xbf16>
    %cst_156 = arith.constant dense<0.000000e+00> : vector<16x16xf32>
    %294 = tpu.matmul %293, %21, %cst_156 {dimension_numbers = #tpu.dot_dimension_numbers<[1], [0], [0], [1], [0, 0, 1, 1], [], []>} : vector<16x16xbf16>, vector<16x16xbf16>, vector<16x16xf32> -> vector<16x16xf32>
    %295 = arith.subf %289, %291 : vector<16x16xf32>
    %296 = arith.subf %294, %289 : vector<16x16xf32>
    %297 = arith.subf %296, %291 : vector<16x16xf32>
    %298 = arith.subf %295, %267 : vector<16x16xf32>
    %299 = arith.mulf %9, %298 : vector<16x16xf32>
    %300 = arith.subf %271, %297 : vector<16x16xf32>
    %301 = arith.mulf %9, %300 : vector<16x16xf32>
    %302 = arith.truncf %299 : vector<16x16xf32> to vector<16x16xbf16>
    %303 = arith.truncf %301 : vector<16x16xf32> to vector<16x16xbf16>
    %304 = arith.addf %299, %301 : vector<16x16xf32>
    %305 = arith.truncf %304 : vector<16x16xf32> to vector<16x16xbf16>
    %cst_157 = arith.constant dense<0.000000e+00> : vector<16x16xf32>
    %306 = tpu.matmul %11, %302, %cst_157 {dimension_numbers = #tpu.dot_dimension_numbers<[1], [0], [0], [1], [0, 0, 1, 1], [], []>} : vector<16x16xbf16>, vector<16x16xbf16>, vector<16x16xf32> -> vector<16x16xf32>
    %cst_158 = arith.constant dense<0.000000e+00> : vector<16x16xf32>
    %307 = tpu.matmul %13, %303, %cst_158 {dimension_numbers = #tpu.dot_dimension_numbers<[1], [0], [0], [1], [0, 0, 1, 1], [], []>} : vector<16x16xbf16>, vector<16x16xbf16>, vector<16x16xf32> -> vector<16x16xf32>
    %cst_159 = arith.constant dense<0.000000e+00> : vector<16x16xf32>
    %308 = tpu.matmul %15, %305, %cst_159 {dimension_numbers = #tpu.dot_dimension_numbers<[1], [0], [0], [1], [0, 0, 1, 1], [], []>} : vector<16x16xbf16>, vector<16x16xbf16>, vector<16x16xf32> -> vector<16x16xf32>
    %309 = arith.subf %306, %307 : vector<16x16xf32>
    %310 = arith.subf %308, %306 : vector<16x16xf32>
    %311 = arith.subf %310, %307 : vector<16x16xf32>
    %312 = arith.truncf %309 : vector<16x16xf32> to vector<16x16xbf16>
    %cst_160 = arith.constant dense<0.000000e+00> : vector<16x16xf32>
    %313 = tpu.matmul %312, %17, %cst_160 {dimension_numbers = #tpu.dot_dimension_numbers<[1], [0], [0], [1], [0, 0, 1, 1], [], []>} : vector<16x16xbf16>, vector<16x16xbf16>, vector<16x16xf32> -> vector<16x16xf32>
    %314 = arith.truncf %311 : vector<16x16xf32> to vector<16x16xbf16>
    %cst_161 = arith.constant dense<0.000000e+00> : vector<16x16xf32>
    %315 = tpu.matmul %314, %19, %cst_161 {dimension_numbers = #tpu.dot_dimension_numbers<[1], [0], [0], [1], [0, 0, 1, 1], [], []>} : vector<16x16xbf16>, vector<16x16xbf16>, vector<16x16xf32> -> vector<16x16xf32>
    %316 = arith.addf %309, %311 : vector<16x16xf32>
    %317 = arith.truncf %316 : vector<16x16xf32> to vector<16x16xbf16>
    %cst_162 = arith.constant dense<0.000000e+00> : vector<16x16xf32>
    %318 = tpu.matmul %317, %21, %cst_162 {dimension_numbers = #tpu.dot_dimension_numbers<[1], [0], [0], [1], [0, 0, 1, 1], [], []>} : vector<16x16xbf16>, vector<16x16xbf16>, vector<16x16xf32> -> vector<16x16xf32>
    %319 = arith.subf %313, %315 : vector<16x16xf32>
    %320 = arith.subf %318, %313 : vector<16x16xf32>
    %321 = arith.subf %320, %315 : vector<16x16xf32>
    %c0_163 = arith.constant 0 : index
    %c0_164 = arith.constant 0 : index
    %322 = vector.load %arg10[%c0_163, %c0_164] : memref<16x16xf32, #tpu.memory_space<vmem>>, vector<16x16xf32>
    %323 = arith.mulf %259, %319 : vector<16x16xf32>
    %324 = arith.mulf %263, %321 : vector<16x16xf32>
    %325 = arith.subf %323, %324 : vector<16x16xf32>
    %326 = arith.addf %322, %325 : vector<16x16xf32>
    %c0_165 = arith.constant 0 : index
    %c0_166 = arith.constant 0 : index
    %327 = vector.load %arg10[%c0_165, %c0_166] : memref<16x16xf32, #tpu.memory_space<vmem>>, vector<16x16xf32>
    tpu.vector_store %arg10[%c0_165, %c0_166], %326 {strides = array<i32>} : memref<16x16xf32, #tpu.memory_space<vmem>>, vector<16x16xf32>,
    %c0_167 = arith.constant 0 : index
    %c0_168 = arith.constant 0 : index
    %328 = vector.load %arg11[%c0_167, %c0_168] : memref<16x16xf32, #tpu.memory_space<vmem>>, vector<16x16xf32>
    %329 = arith.mulf %259, %321 : vector<16x16xf32>
    %330 = arith.mulf %263, %319 : vector<16x16xf32>
    %331 = arith.addf %329, %330 : vector<16x16xf32>
    %332 = arith.subf %328, %331 : vector<16x16xf32>
    %c0_169 = arith.constant 0 : index
    %c0_170 = arith.constant 0 : index
    %333 = vector.load %arg11[%c0_169, %c0_170] : memref<16x16xf32, #tpu.memory_space<vmem>>, vector<16x16xf32>
    tpu.vector_store %arg11[%c0_169, %c0_170], %332 {strides = array<i32>} : memref<16x16xf32, #tpu.memory_space<vmem>>, vector<16x16xf32>,
    %c4_i32 = arith.constant 4 : i32
    %c0_i32_171 = arith.constant 0 : i32
    %334 = arith.cmpi eq, %arg1, %c0_i32_171 : i32
    %335 = arith.extui %334 : i1 to i32
    %c0_i32_172 = arith.constant 0 : i32
    %336 = arith.cmpi ne, %335, %c0_i32_172 : i32
    scf.if %336 {
      %c0_173 = arith.constant 0 : index
      %337 = memref.load %arg2[%c0_173] : memref<1xf32, #tpu.memory_space<smem>>
      %c0_174 = arith.constant 0 : index
      %c0_175 = arith.constant 0 : index
      %338 = vector.load %arg10[%c0_174, %c0_175] : memref<16x16xf32, #tpu.memory_space<vmem>>, vector<16x16xf32>
      %339 = vector.broadcast %337 : f32 to vector<16x16xf32>
      %340 = arith.mulf %339, %338 : vector<16x16xf32>
      %341 = arith.subf %4, %340 : vector<16x16xf32>
      %c0_176 = arith.constant 0 : index
      %c0_177 = arith.constant 0 : index
      %c0_178 = arith.constant 0 : index
      %c0_179 = arith.constant 0 : index
      %342 = vector.load %arg9[%c0_176, %c0_177, %c0_178, %c0_179] : memref<1x2x16x16xf32, #tpu.memory_space<vmem>>, vector<1x1x16x16xf32>
      %343 = vector.shape_cast %342 : vector<1x1x16x16xf32> to vector<16x16xf32>
      %344 = vector.shape_cast %341 : vector<16x16xf32> to vector<1x1x16x16xf32>
      tpu.vector_store %arg9[%c0_176, %c0_177, %c0_178, %c0_179], %344 {strides = array<i32>} : memref<1x2x16x16xf32, #tpu.memory_space<vmem>>, vector<1x1x16x16xf32>,
      %c0_180 = arith.constant 0 : index
      %c0_181 = arith.constant 0 : index
      %345 = vector.load %arg11[%c0_180, %c0_181] : memref<16x16xf32, #tpu.memory_space<vmem>>, vector<16x16xf32>
      %346 = vector.broadcast %337 : f32 to vector<16x16xf32>
      %347 = arith.mulf %346, %345 : vector<16x16xf32>
      %348 = arith.subf %6, %347 : vector<16x16xf32>
      %c0_182 = arith.constant 0 : index
      %c1_183 = arith.constant 1 : index
      %c0_184 = arith.constant 0 : index
      %c0_185 = arith.constant 0 : index
      %349 = vector.load %arg9[%c0_182, %c1_183, %c0_184, %c0_185] : memref<1x2x16x16xf32, #tpu.memory_space<vmem>>, vector<1x1x16x16xf32>
      %350 = vector.shape_cast %349 : vector<1x1x16x16xf32> to vector<16x16xf32>
      %351 = vector.shape_cast %348 : vector<16x16xf32> to vector<1x1x16x16xf32>
      tpu.vector_store %arg9[%c0_182, %c1_183, %c0_184, %c0_185], %351 {strides = array<i32>} : memref<1x2x16x16xf32, #tpu.memory_space<vmem>>, vector<1x1x16x16xf32>,
    } else {
    }
    return
  }
  func.func @transform_0(%arg0: i32, %arg1: i32) -> i32 {
    %c0_i32 = arith.constant 0 : i32
    %c0_i32_0 = arith.constant 0 : i32
    return %c0_i32 : i32
  }
  func.func @transform_1(%arg0: i32, %arg1: i32) -> (i32, i32, i32, i32) {
    %c0_i32 = arith.constant 0 : i32
    %c0_i32_0 = arith.constant 0 : i32
    %c0_i32_1 = arith.constant 0 : i32
    %c0_i32_2 = arith.constant 0 : i32
    return %arg0, %c0_i32, %c0_i32_0, %c0_i32_1 : i32, i32, i32, i32
  }
  func.func @transform_2(%arg0: i32, %arg1: i32) -> (i32, i32, i32, i32, i32) {
    %c0_i32 = arith.constant 0 : i32
    %c0_i32_0 = arith.constant 0 : i32
    %c0_i32_1 = arith.constant 0 : i32
    %c0_i32_2 = arith.constant 0 : i32
    return %arg0, %arg1, %c0_i32, %c0_i32_0, %c0_i32_1 : i32, i32, i32, i32, i32
  }
  func.func @transform_3(%arg0: i32, %arg1: i32) -> (i32, i32, i32) {
    %c0_i32 = arith.constant 0 : i32
    %c0_i32_0 = arith.constant 0 : i32
    %c0_i32_1 = arith.constant 0 : i32
    return %arg0, %c0_i32, %c0_i32_0 : i32, i32, i32
  }
  func.func @transform_4(%arg0: i32, %arg1: i32) -> (i32, i32, i32, i32, i32) {
    %c0_i32 = arith.constant 0 : i32
    %c0_i32_0 = arith.constant 0 : i32
    %c0_i32_1 = arith.constant 0 : i32
    %c0_i32_2 = arith.constant 0 : i32
    return %arg0, %arg1, %c0_i32, %c0_i32_0, %c0_i32_1 : i32, i32, i32, i32, i32
  }
  func.func @transform_5(%arg0: i32, %arg1: i32) -> (i32, i32, i32) {
    %c0_i32 = arith.constant 0 : i32
    %c0_i32_0 = arith.constant 0 : i32
    %c0_i32_1 = arith.constant 0 : i32
    %c0_i32_2 = arith.constant 0 : i32
    return %c0_i32, %c0_i32_0, %c0_i32_1 : i32, i32, i32
  }
  func.func @transform_6(%arg0: i32, %arg1: i32) -> (i32, i32, i32) {
    %c0_i32 = arith.constant 0 : i32
    %c0_i32_0 = arith.constant 0 : i32
    %c0_i32_1 = arith.constant 0 : i32
    %c0_i32_2 = arith.constant 0 : i32
    return %c0_i32, %c0_i32_0, %c0_i32_1 : i32, i32, i32
  }
  func.func @transform_7(%arg0: i32, %arg1: i32) -> (i32, i32, i32, i32) {
    %c0_i32 = arith.constant 0 : i32
    %c0_i32_0 = arith.constant 0 : i32
    %c0_i32_1 = arith.constant 0 : i32
    %c0_i32_2 = arith.constant 0 : i32
    return %arg0, %c0_i32, %c0_i32_0, %c0_i32_1 : i32, i32, i32, i32
  }
}

</mosaic_0001>

<bundles_post_ra>
// kernel: tpu_custom_call.1
= control target key start
LH: loop header
LB: loop body
LE: loop exit
PB: predicated region body
PF: predicated region fallthrough
CT: control target
= control target key end

     0   :  { %s5166_s0 = inlined_call_operand.<no memory space> [shape: f32[1], index: 0, kind: input, shape index: {}]   ;;  %s5167_s1 = inlined_call_operand.hbm [shape: f32[2,2,16,16], index: 1, kind: input, shape index: {}]   ;;  %s5168_s2 = inlined_call_operand.hbm [shape: bf16[2,4,2,16,16], index: 2, kind: input, shape index: {}]   ;;  %s5169_s3 = inlined_call_operand.hbm [shape: bf16[2,16,16], index: 3, kind: input, shape index: {}]   ;;  %s5170_s4 = inlined_call_operand.hbm [shape: bf16[2,4,2,16,16], index: 4, kind: input, shape index: {}]   ;;  %s5171_s5 = inlined_call_operand.hbm [shape: bf16[3,16,16], index: 5, kind: input, shape index: {}]   ;;  %s5172_s6 = inlined_call_operand.hbm [shape: bf16[3,16,16], index: 6, kind: input, shape index: {}]   ;;  %s5173_s7 = inlined_call_operand.hbm [shape: f32[2,2,16,16], index: 7, kind: output, shape index: {}]  }
   0x1   :  { %5199 = sst [smem:[#allocation31_spill]] %s5168_s2 }
   0x2   :  { %5200 = sst [smem:[#allocation32_spill]] %s5171_s5 }
   0x3   :  { %5201 = sst [smem:[#allocation33_spill]] %s5173_s7 }
   0x4   :  { %12 = sst [smem:[#allocation4]] %s5166_s0 }
   0x5   :  { %13 = vsyncpa [#allocation6], 0 }
   0x6   :  { %15 = vsyncpa [#allocation6 + $0x1], 0 }
   0x7   :  { %16 = vsyncpa [#allocation9], 0 }
   0x8   :  { %18 = vsyncpa [#allocation9 + $0x1], 0 }
   0x9   :  { %19 = vsyncpa [#allocation12], 0 }
   0xa   :  { %21 = vsyncpa [#allocation12 + $0x1], 0 }
   0xb   :  { %22 = vsyncpa [#allocation15], 0 }
   0xc   :  { %23 = vsyncpa [#allocation7], 0 }
   0xd   :  { %25 = vsyncpa [#allocation7 + $0x1], 0  ;;  %s4268_s26 = smov 0   ;;  %s4270_s27 = smov 0  }
   0xe   :  { %s4272_s28 = smov 0   ;;  %s4274_s29 = smov 0  }
   0xf   :  { %s4276_s30 = smov 0   ;;  %s4278_s0 = smov 0  }
  0x10 LB: > { %5202 = sst [smem:[#allocation23_spill]] %s4188_s26  ;;  %s4299_s8 = sadd.s32 4294967295, %s4208_s0   ;;  %s4208_s0 = sphi %s4278_s0, %s31_s0   ;;  %s4204_s30 = sphi %s4276_s30, %s5253_s30   ;;  %s4200_s29 = sphi %s4274_s29, %s5252_s29   ;;  %s4196_s28 = sphi %s4272_s28, %s5248_s28   ;;  %s4192_s27 = sphi %s4270_s27, %s5251_s27   ;;  %s4188_s26 = sphi %s4268_s26, %s5250_s26  }
  0x11   : > { %5203 = sst [smem:[#allocation24_spill]] %s4196_s28  ;;  %s3225_s9 = sadd.s32 4294967294, %s4208_s0  }
  0x12   : > { %5204 = sst [smem:[#allocation25_spill]] %s4200_s29  ;;  %p78_p0 = scmp.ne.s32.totalorder %s4196_s28, %s4192_s27 }
  0x13   : > { %5205 = sst [smem:[#allocation26_spill]] %s4299_s8  ;;  %p79_p1 = scmp.eq.s32.totalorder %s4208_s0, 0 }
  0x14   : > { %p84_p2 = scmp.ne.s32.totalorder %s4192_s27, %s4188_s26  ;;  %p5174_p3 = scmp.eq.s32.totalorder %s4299_s8, 0 }
  0x15   : > { %p232_p4 = scmp.eq.s32.totalorder %s4299_s8, 1  ;;  %p4310_p5 = por %p79_p1, %p78_p0 }
  0x16   : > { %p238_p6 = scmp.eq.s32.totalorder %s3225_s9, 1  ;;  %p4316_p7 = por %p5174_p3, %p84_p2 }
  0x17   : > { %p4320_p8 = por %p232_p4, %p78_p0  ;;  %p3226_p10 = scmp.ge.s32.totalorder %s4208_s0, 1 }
  0x18   : > { %s5207_s12 = scalar_select %p4316_p7, 1, 0 }
  0x19   : > { %s5208_s13 = scalar_select %p4320_p8, 1, 0 }
  0x1a   : > { %p4324_p9 = por %p238_p6, %p84_p2  ;;  %p245_p11 = scmp.lt.s32.totalorder %s4208_s0, 3 }
  0x1b   : > { %5209 = sst [smem:[#allocation27_spill]] %s5208_s13  ;;  %s4210_s16 = smov [#allocation13]  }
  0x1c   : > { %s5210_s14 = scalar_select %p4324_p9, 1, 0 }
  0x1d   : > { %p4330_p12 = pnand %p3226_p10, %p245_p11  ;;  %s260_s17 = sshll.u32 %s4210_s16, 4  ;;  %s4334_s17 = int_to_ptr.vmem [resolvable:$true] %s260_s17 }
  0x1e   : > { %5211 = sst [smem:[#allocation28_spill]] %s5210_s14  ;;  %s43_s19 = sadd.s32 1, %s4204_s30 }
  0x1f   : > { %s5212_s15 = scalar_select %p4330_p12, 1, 0 }
  0x20   : > { %p3830_p13 = pneg %p4330_p12  ;;  %s4348_s20 = sand.u32 1, %s4196_s28  }
  0x21   : > { %p4350_p4 = scmp.ge.s32.totalorder %s43_s19, 2  ;;  %s5215_s5 = sld [smem:[#allocation32_spill]] }
  0x22   : > { %p4342_p2 = pnand %p3830_p13, %p5174_p3 }
  0x24   : > { %s5213_s18 = scalar_select %p4342_p2, 1, 0 }
  0x25   : > { %p5188_p10 = pneg %p4342_p2 }
  0x27   : > { %s3934_s24 = scalar_lea.hbm %s5215_s5, 384 }
  0x28   : > { %p3935_p6 = scmp.ne.s32.totalorder %s5215_s5, %s3934_s24  ;;  %p3941_p0 = scmp.lt.u32.totalorder %s3934_s24, %s5215_s5 }
  0x2a   : > { %p3937_p11 = pnand %p5188_p10, %p3935_p6 }
  0x2c   : > { %p3938_p13 = pneg %p3937_p11 }
  0x2e   : > { %p3943_p3 = pnand %p3941_p0, %p3938_p13 }
  0x30   : > { %3946 = shalt.err (!%p3943_p3)
}
  0x31   : > { %s3947_s22 = scalar_lea.vmem %s4334_s17, 384  ;;  %p3955_p7 = scmp.lt.s32.totalorder %s4334_s17, %s4334_s17 }
  0x32   : > { %p3948_p1 = scmp.ne.s32.totalorder %s4334_s17, %s3947_s22  ;;  %p3956_p6 = scmp.lt.s32.totalorder %s3947_s22, %s3947_s22 }
  0x34   : > { %p3950_p9 = pnand %p3948_p1, %p5188_p10  ;;  %p3957_p11 = por %p3956_p6, %p3955_p7 }
  0x36   : > { %p3951_p8 = pneg %p3950_p9 }
  0x38   : > { %p3958_p12 = pnand %p3957_p11, %p3951_p8 }
  0x3a   : > { %3961 = shalt.err (!%p3958_p12)
}
  0x3b   : > { %s5183_s10 = smov 64   ;;  %s4212_s23 = smov 4  }
  0x3c   : > { %3833 = dma.hbm_to_vmem [thread:$0]  (!%p4342_p2), %s5215_s5, 384, %s4334_s17, [#allocation12], %s5183_s10, %s5183_s10, %s4212_s23  }
  0x3d   : > { %s5255_s19 = smov (%p4350_p4, %s43_s19), 0  ;;  %p5217_p3 = scmp.lt.s32.totalorder %s4208_s0, 2 }
  0x3e   : > { %5216 = sst [smem:[#allocation29_spill]] %s5255_s19  ;;  %s5187_s16 = sand.u32 1, %s4208_s0  }
  0x3f   : > { %p4392_p7 = pnand %p5217_p3, %p4310_p5  ;;  %s68_s22 = ssub.s32 %s4204_s30, %s5255_s19 }
  0x40   : > { %p69_p8 = scmp.eq.s32.totalorder %s68_s22, 0  ;;  %s5185_s14 = sshll.u32 %s4348_s20, 6 }
  0x41   : > { %s5218_s9 = scalar_select %p4392_p7, 1, 0 }
  0x42   : > { %s5186_s26 = sshll.u32 %s4204_s30, 10  ;;  %s5219_s7 = sadd.s32 1, %s4196_s28 }
  0x43   : > { %s4404_s13 = scalar_select %p69_p8, %s4196_s28, %s5219_s7  }
  0x44   : > { %s5221_s2 = sld [smem:[#allocation31_spill]]  ;;  %s312_s24 = scalar_lea.vmem [#allocation8], %s5185_s14 }
  0x45   : > { %5220 = sst [smem:[#allocation30_spill]] %s4404_s13  ;;  %s322_s25 = sshll.u32 %s312_s24, 4  ;;  %s4415_s25 = int_to_ptr.vmem [resolvable:$true] %s322_s25 }
  0x46   : > { %s4419_s22 = scalar_lea.sflag [#allocation9], %s5187_s16  ;;  %p4425_p9 = pneg %p4392_p7 }
  0x48   : > { %s5222_s10 = scalar_select %p4425_p9, 1, 0 }
  0x4a   : > { %s4411_s11 = scalar_lea.hbm %s5221_s2, %s5186_s26  ;;  %s3967_s24 = scalar_lea.hbm %s5221_s2, 2048 }
  0x4b   : > { %s3962_s7 = scalar_lea.hbm %s4411_s11, 1024  ;;  %p3968_p1 = scmp.lt.u32.totalorder %s4411_s11, %s5221_s2 }
  0x4c   : > { %p3963_p5 = scmp.ne.s32.totalorder %s4411_s11, %s3962_s7  ;;  %p3969_p4 = scmp.lt.u32.totalorder %s3967_s24, %s3962_s7 }
  0x4d   : > { %p3971_p6 = scmp.lt.u32.totalorder %s3962_s7, %s4411_s11 }
  0x4e   : > { %p3965_p12 = pnand %p4425_p9, %p3963_p5  ;;  %p3970_p13 = por %p3969_p4, %p3968_p1 }
  0x50   : > { %p3966_p0 = pneg %p3965_p12  ;;  %p3972_p11 = por %p3971_p6, %p3970_p13 }
  0x52   : > { %p3973_p3 = pnand %p3972_p11, %p3966_p0 }
  0x54   : > { %3976 = shalt.err (!%p3973_p3)
}
  0x55   : > { %s3977_s16 = scalar_lea.vmem %s4415_s25, 1024  ;;  %s4213_s17 = smov [#allocation8]  }
  0x56   : > { %p3978_p8 = scmp.ne.s32.totalorder %s4415_s25, %s3977_s16  ;;  %s3982_s21 = sshll.u32 %s4213_s17, 4  ;;  %s3983_s21 = int_to_ptr.vmem [resolvable:$false] %s3982_s21 }
  0x57   : > { %s3984_s26 = scalar_lea.vmem %s3983_s21, 2048  ;;  %p3985_p10 = scmp.lt.s32.totalorder %s4415_s25, %s3983_s21 }
  0x58   : > { %p3980_p5 = pnand %p3978_p8, %p4425_p9  ;;  %p3986_p2 = scmp.lt.s32.totalorder %s3984_s26, %s3977_s16 }
  0x5a   : > { %p3981_p12 = pneg %p3980_p5  ;;  %p3987_p1 = por %p3986_p2, %p3985_p10 }
  0x5c   : > { %p3988_p4 = pnand %p3987_p1, %p3981_p12 }
  0x5e   : > { %3991 = shalt.err (!%p3988_p4)
}
  0x5f   : > { %s5223_s14 = smov 64   ;;  %s5224_s7 = sshll.u32 %s4204_s30, 10 }
  0x60   : > { %3843 = dma.hbm_to_vmem [thread:$0]  (!%p4392_p7), %s4411_s11, 1024, %s4415_s25, %s4419_s22, %s5223_s14, %s5223_s14, %s4212_s23  }
  0x61   : > { %s4457_s16 = scalar_lea.hbm %s5170_s4, %s5224_s7  ;;  %s5225_s21 = sshll.u32 %s4348_s20, 6 }
  0x62   : > { %s357_s26 = scalar_lea.vmem [#allocation11], %s5225_s21  ;;  %s4214_s5 = smov [#allocation14]  }
  0x63   : > { %s367_s2 = sshll.u32 %s357_s26, 4  ;;  %s273_s19 = sshll.u32 %s4214_s5, 4  ;;  %s4461_s2 = int_to_ptr.vmem [resolvable:$true] %s367_s2  ;;  %s274_s19 = int_to_ptr.vmem [resolvable:$true] %s273_s19 }
  0x64   : > { %s3230_s13 = sshll.u32 %s4348_s20, 5  ;;  %s3992_s8 = scalar_lea.hbm %s5172_s6, 384 }
  0x65   : > { %p3993_p2 = scmp.ne.s32.totalorder %s5172_s6, %s3992_s8  ;;  %p5226_p10 = scmp.ne.s32.totalorder %s5213_s18, 0 }
  0x66   : > { %p3999_p11 = scmp.lt.u32.totalorder %s3992_s8, %s5172_s6 }
  0x67   : > { %p5227_p0 = pneg %p5226_p10 }
  0x69   : > { %p3995_p13 = pnand %p3993_p2, %p5227_p0 }
  0x6b   : > { %p3996_p6 = pneg %p3995_p13 }
  0x6d   : > { %p4001_p3 = pnand %p3999_p11, %p3996_p6 }
  0x6f   : > { %4004 = shalt.err (!%p4001_p3)
}
  0x70   : > { %s4005_s5 = scalar_lea.vmem %s274_s19, 384  ;;  %p5228_p5 = pmov %p5227_p0 }
  0x71   : > { %p4006_p8 = scmp.ne.s32.totalorder %s274_s19, %s4005_s5  ;;  %p4013_p4 = scmp.lt.s32.totalorder %s274_s19, %s274_s19 }
  0x72   : > { %p4014_p7 = scmp.lt.s32.totalorder %s4005_s5, %s4005_s5 }
  0x73   : > { %p4008_p12 = pnand %p4006_p8, %p5228_p5 }
  0x74   : > { %p4015_p9 = por %p4014_p7, %p4013_p4 }
  0x75   : > { %p4009_p1 = pneg %p4008_p12 }
  0x77   : > { %p4016_p0 = pnand %p4015_p9, %p4009_p1 }
  0x79   : > { %4019 = shalt.err (!%p4016_p0)
}
  0x7a   : > { %3836 = dma.hbm_to_vmem [thread:$0]  (!%p5226_p10), %s5172_s6, 384, %s274_s19, [#allocation15], %s5223_s14, %s5223_s14, %s4212_s23  }
  0x7b   : > { %s3341_s8 = sshll.u32 %s4204_s30, 9  ;;  %s291_s18 = scalar_lea.vmem [#allocation5], %s3230_s13 }
  0x7c   : > { %s4491_s26 = scalar_lea.hbm %s5167_s1, %s3341_s8  ;;  %s298_s11 = sshll.u32 %s291_s18, 4  ;;  %s4493_s11 = int_to_ptr.vmem [resolvable:$true] %s298_s11 }
  0x7d   : > { %s3236_s25 = sshll.u32 %s4348_s20, 3  ;;  %s288_s7 = scalar_lea.sflag [#allocation6], %s4348_s20 }
  0x7e   : > { %s4020_s24 = scalar_lea.hbm %s4491_s26, 512  ;;  %p5229_p9 = scmp.ne.s32.totalorder %s5222_s10, 0 }
  0x7f   : > { %p4021_p7 = scmp.ne.s32.totalorder %s4491_s26, %s4020_s24  ;;  %s4025_s28 = scalar_lea.hbm %s5167_s1, 1024 }
  0x80   : > { %p4026_p13 = scmp.lt.u32.totalorder %s4491_s26, %s5167_s1  ;;  %p4027_p6 = scmp.lt.u32.totalorder %s4025_s28, %s4020_s24 }
  0x81   : > { %p4023_p2 = pnand %p4021_p7, %p5229_p9  ;;  %p4029_p3 = scmp.lt.u32.totalorder %s4020_s24, %s4491_s26 }
  0x82   : > { %p4028_p11 = por %p4027_p6, %p4026_p13 }
  0x83   : > { %p4024_p10 = pneg %p4023_p2 }
  0x84   : > { %p4030_p8 = por %p4029_p3, %p4028_p11 }
  0x86   : > { %p4031_p5 = pnand %p4030_p8, %p4024_p10 }
  0x88   : > { %4034 = shalt.err (!%p4031_p5)
}
  0x89   : > { %s4035_s13 = scalar_lea.vmem %s4493_s11, 512  ;;  %s4215_s17 = smov [#allocation5]  }
  0x8a   : > { %p4036_p12 = scmp.ne.s32.totalorder %s4493_s11, %s4035_s13  ;;  %s4040_s21 = sshll.u32 %s4215_s17, 4  ;;  %s4041_s21 = int_to_ptr.vmem [resolvable:$false] %s4040_s21 }
  0x8b   : > { %s4042_s18 = scalar_lea.vmem %s4041_s21, 1024  ;;  %p4043_p0 = scmp.lt.s32.totalorder %s4493_s11, %s4041_s21 }
  0x8c   : > { %p4038_p1 = pnand %p4036_p12, %p5229_p9  ;;  %p4044_p7 = scmp.lt.s32.totalorder %s4042_s18, %s4035_s13 }
  0x8e   : > { %p4039_p4 = pneg %p4038_p1  ;;  %p4045_p2 = por %p4044_p7, %p4043_p0 }
  0x90   : > { %p4046_p13 = pnand %p4045_p2, %p4039_p4 }
  0x92   : > { %4049 = shalt.err (!%p4046_p13)
}
  0x93   : > { %s4216_s24 = smov 128   ;;  %s4217_s19 = smov 8  }
  0x94   : > { %p5230_p10 = scmp.ne.s32.totalorder %s5218_s9, 0  ;;  %s3343_s5 = sshll.u32 %s4204_s30, 7 }
  0x95   : > { %s4524_s8 = scalar_lea.hbm %s5169_s3, %s3343_s5  ;;  %s336_s13 = scalar_lea.vmem [#allocation10], %s3236_s25 }
  0x96   : > { %3840 = dma.hbm_to_vmem [thread:$0]  (!%p5230_p10), %s4491_s26, 512, %s4493_s11, %s288_s7, %s4216_s24, %s4216_s24, %s4217_s19  }
  0x97   : > { %s343_s17 = sshll.u32 %s336_s13, 4  ;;  %s4050_s21 = scalar_lea.hbm %s4524_s8, 128  ;;  %s4528_s17 = int_to_ptr.vmem [resolvable:$true] %s343_s17 }
  0x98   : > { %p4051_p6 = scmp.ne.s32.totalorder %s4524_s8, %s4050_s21  ;;  %s4055_s7 = scalar_lea.hbm %s5169_s3, 256 }
  0x99   : > { %p4056_p8 = scmp.lt.u32.totalorder %s4524_s8, %s5169_s3  ;;  %p4057_p5 = scmp.lt.u32.totalorder %s4055_s7, %s4050_s21 }
  0x9a   : > { %p4053_p11 = pnand %p4051_p6, %p5229_p9  ;;  %p4059_p1 = scmp.lt.u32.totalorder %s4050_s21, %s4524_s8 }
  0x9b   : > { %p4058_p12 = por %p4057_p5, %p4056_p8 }
  0x9c   : > { %p4054_p3 = pneg %p4053_p11 }
  0x9d   : > { %p4060_p4 = por %p4059_p1, %p4058_p12 }
  0x9f   : > { %p4061_p0 = pnand %p4060_p4, %p4054_p3 }
  0xa1   : > { %4064 = shalt.err (!%p4061_p0)
}
  0xa2   : > { %s4065_s20 = scalar_lea.vmem %s4528_s17, 128  ;;  %s4218_s25 = smov [#allocation10]  }
  0xa3   : > { %p4066_p7 = scmp.ne.s32.totalorder %s4528_s17, %s4065_s20  ;;  %s4070_s19 = sshll.u32 %s4218_s25, 4  ;;  %s4071_s19 = int_to_ptr.vmem [resolvable:$false] %s4070_s19 }
  0xa4   : > { %s4072_s5 = scalar_lea.vmem %s4071_s19, 256  ;;  %p4073_p6 = scmp.lt.s32.totalorder %s4528_s17, %s4071_s19 }
  0xa5   : > { %p4068_p2 = pnand %p4066_p7, %p5229_p9  ;;  %p4074_p11 = scmp.lt.s32.totalorder %s4072_s5, %s4065_s20 }
  0xa7   : > { %p4069_p13 = pneg %p4068_p2  ;;  %p4075_p8 = por %p4074_p11, %p4073_p6 }
  0xa9   : > { %p4076_p5 = pnand %p4075_p8, %p4069_p13 }
  0xab   : > { %4079 = shalt.err (!%p4076_p5)
}
  0xac   : > { %3846 = dma.hbm_to_vmem [thread:$0]  (!%p5230_p10), %s4524_s8, 128, %s4528_s17, %s4419_s22, %s5223_s14, %s5223_s14, %s4212_s23  }
  0xad   : > { %s5231_s28 = sand.u32 1, %s4208_s0   ;;  %s4080_s13 = scalar_lea.hbm %s4457_s16, 1024 }
  0xae   : > { %s4557_s29 = scalar_lea.sflag [#allocation12], %s5231_s28  ;;  %p4081_p3 = scmp.ne.s32.totalorder %s4457_s16, %s4080_s13 }
  0xaf   : > { %s4085_s11 = scalar_lea.hbm %s5170_s4, 2048  ;;  %p4086_p4 = scmp.lt.u32.totalorder %s4457_s16, %s5170_s4 }
  0xb0   : > { %p4083_p12 = pnand %p4081_p3, %p5229_p9  ;;  %p4087_p0 = scmp.lt.u32.totalorder %s4085_s11, %s4080_s13 }
  0xb1   : > { %p4089_p2 = scmp.lt.u32.totalorder %s4080_s13, %s4457_s16 }
  0xb2   : > { %p4084_p1 = pneg %p4083_p12  ;;  %p4088_p7 = por %p4087_p0, %p4086_p4 }
  0xb4   : > { %p4090_p13 = por %p4089_p2, %p4088_p7 }
  0xb6   : > { %p4091_p6 = pnand %p4090_p13, %p4084_p1 }
  0xb8   : > { %4094 = shalt.err (!%p4091_p6)
}
  0xb9   : > { %s4095_s22 = scalar_lea.vmem %s4461_s2, 1024  ;;  %s4219_s8 = smov [#allocation11]  }
  0xba   : > { %p4096_p11 = scmp.ne.s32.totalorder %s4461_s2, %s4095_s22  ;;  %s4100_s17 = sshll.u32 %s4219_s8, 4  ;;  %s4101_s17 = int_to_ptr.vmem [resolvable:$false] %s4100_s17 }
  0xbb   : > { %s4102_s24 = scalar_lea.vmem %s4101_s17, 2048  ;;  %p4103_p3 = scmp.lt.s32.totalorder %s4461_s2, %s4101_s17 }
  0xbc   : > { %p4098_p8 = pnand %p4096_p11, %p5229_p9  ;;  %p4104_p12 = scmp.lt.s32.totalorder %s4102_s24, %s4095_s22 }
  0xbe   : > { %p4099_p5 = pneg %p4098_p8  ;;  %p4105_p4 = por %p4104_p12, %p4103_p3 }
  0xc0   : > { %p4106_p0 = pnand %p4105_p4, %p4099_p5 }
  0xc2   : > { %4109 = shalt.err (!%p4106_p0)
}
  0xc3   : > { %3849 = dma.hbm_to_vmem [thread:$0]  (!%p5230_p10), %s4457_s16, 1024, %s4461_s2, %s4557_s29, %s5223_s14, %s5223_s14, %s4212_s23  }
  0xc4   : > { %p5232_p9 = scmp.ne.s32.totalorder %s5212_s15, 0 }
  0xc5   : > { %s4587_s10 = sand.u32 (!%p5232_p9), 1, %s4192_s27   ;;  %p5233_p1 = scmp.ne.s32.totalorder (!%p5232_p9), %s5207_s12, 0 }
  0xc6   : > { %379 = sbr.rel (%p5232_p9) target bundleno = 3240 (0xca8), region = 48  ;;  %s3243_s20 = sshll.u32 (!%p5232_p9), %s4587_s10, 5 }
  0xc7   : > { %s382_s25 = scalar_lea.sflag (!%p5232_p9), [#allocation6], %s4587_s10  ;;  %s4593_s9 = scalar_lea.vmem (!%p5232_p9), [#allocation5], %s3243_s20 }
  0xcd   : > { %4163 = dma.done.wait (%p5233_p1), %s382_s25, 512  }
  0xce   : > { %4165 = vsyncadd (%p5233_p1), %s382_s25, 4294966784  ;;  %s5234_s2 = sld [smem:[#allocation26_spill]]  ;;  %s3244_s23 = sshll.u32 %s4587_s10, 6 }
  0xcf   : > { %s4601_s16 = scalar_lea.vmem [#allocation8], %s3244_s23 }
  0xd4   : > { %s390_s15 = sand.u32 1, %s5234_s2  }
  0xd5   : > { %s391_s14 = scalar_lea.sflag [#allocation9], %s390_s15 }
  0xd6   : > { %4167 = dma.done.wait (%p5233_p1), %s391_s14, 1152  }
  0xd7   : > { %4169 = vsyncadd (%p5233_p1), %s391_s14, 4294966144  ;;  %s3245_s19 = sshll.u32 %s4587_s10, 3  ;;  %s409_s28 = scalar_lea.sflag [#allocation12], %s390_s15 }
  0xd8   : > { %s4608_s5 = scalar_lea.vmem [#allocation10], %s3245_s19  ;;  %s4610_s29 = scalar_lea.vmem [#allocation11], %s3244_s23 }
  0xd9   : > { %4171 = dma.done.wait (%p5233_p1), %s409_s28, 1024  }
  0xda   : > { %4173 = vsyncadd (%p5233_p1), %s409_s28, 4294966272  ;;  %p5235_p10 = scmp.eq.s32.totalorder %s5234_s2, 0 }
  0xdc   : > { %4175 = dma.done.wait (%p5235_p10), [#allocation12], 384   ;;  %p5236_p7 = pmov %p5235_p10 }
  0xde   : > { %4177 = vsyncadd (%p5236_p7), [#allocation12], 4294966912  ;;  %p5237_p2 = pmov %p5236_p7 }
  0xe0   : > { %4179 = dma.done.wait (%p5237_p2), [#allocation15], 384   ;;  %p5238_p13 = pmov %p5237_p2 }
  0xe1   : > { %vm473_vm0 = vcmask 130048   ;;  %v4220_v0 = vmov 0.0   ;;  %vm4221_vm1 = vmmov 0   ;;  %v4639_v1 = vld [vmem:[%s4593_s9] sm:$0xff]  ;;  %v4642_v2 = vld [vmem:[%s4593_s9 + $0x8] sm:$0xff]  ;;  %v4645_v3 = vld [vmem:[%s4593_s9 + $0x10] sm:$0xff] }
  0xe2   : > { %4181 = vsyncadd (%p5238_p13), [#allocation15], 4294966912  ;;  %3524 = vmatprep.subr.bf16.mxu0 %v4220_v0  ;;  %3530 = vmatprep.subr.bf16.mxu1 %v4220_v0  ;;  %474 = vst.msk [vmem:[#allocation2] sm:$0xff] %vm473_vm0, %v4220_v0  ;;  %v4648_v4 = vld [vmem:[%s4593_s9 + $0x18] sm:$0xff]  ;;  %v3351_v5 = vld [vmem:[%s4610_s29] sm:$0xff]   ;;  %s3019_s12 = sld [smem:[#allocation4]] }
  0xe3   : > { %475 = vst.msk [vmem:[#allocation2 + $0x8] sm:$0xff] %vm473_vm0, %v4220_v0  ;;  %476 = vst.msk [vmem:[#allocation3] sm:$0xff] %vm473_vm0, %v4220_v0  ;;  %3526 = vmatprep.mubr.msk.bf16.mxu0 %vm4221_vm1, %v4220_v0  ;;  %3532 = vmatprep.mubr.msk.bf16.mxu1 %vm4221_vm1, %v4220_v0  ;;  %v3414_v6 = vld [vmem:[%s4610_s29 + $0x8] sm:$0xff]   ;;  %v4652_v7 = vunpack.c.l.bf16 %v3351_v5  ;;  %v4654_v8 = vunpack.c.h.bf16 %v3351_v5  ;;  %v4676_v27 = vld [vmem:[#allocation13] sm:$0xff]   ;;  %s5239_s13 = sld [smem:[#allocation25_spill]]  ;;  %s465_s26 = scalar_lea.vmem [#allocation16], %s3243_s20 }
  0xe4   : > { %477 = vst.msk [vmem:[#allocation3 + $0x8] sm:$0xff] %vm473_vm0, %v4220_v0  ;;  %v4656_v9 = vunpack.c.l.bf16 %v3414_v6  ;;  %v4658_v10 = vunpack.c.h.bf16 %v3414_v6  ;;  %v4678_v28 = vld [vmem:[#allocation13 + $0x8] sm:$0xff]   ;;  %v4691_v30 = vld [vmem:[#allocation13 + $0x10] sm:$0xff]   ;;  %v4697_v31 = vld [vmem:[#allocation14] sm:$0xff]   ;;  %s3052_s11 = sshll.u32 %s465_s26, 4  ;;  %s5240_s7 = sld [smem:[#allocation27_spill]]  ;;  %s5111_s11 = int_to_ptr.vmem [resolvable:$true] %s3052_s11 }
  0xe5   : > { %v521_v11 = vmul.f32 %v4652_v7, %v4639_v1  ;;  %v522_v12 = vmul.f32 %v4654_v8, %v4642_v2  ;;  %v527_v15 = vmul.f32 %v4652_v7, %v4645_v3  ;;  %v528_v16 = vmul.f32 %v4654_v8, %v4648_v4  ;;  %v4701_v32 = vld [vmem:[#allocation14 + $0x8] sm:$0xff]   ;;  %v4705_v43 = vld [vmem:[#allocation14 + $0x10] sm:$0xff]   ;;  %v3359_v61 = vld [vmem:[%s4601_s16] sm:$0xff]   ;;  %s5241_s8 = sld [smem:[#allocation33_spill]]  ;;  %s3039_s24 = scalar_lea.sflag [#allocation7], %s4587_s10 }
  0xe6   : > { %v523_v13 = vmul.f32 %v4656_v9, %v4645_v3  ;;  %v524_v14 = vmul.f32 %v4658_v10, %v4648_v4  ;;  %v529_v17 = vmul.f32 %v4656_v9, %v4639_v1  ;;  %v530_v18 = vmul.f32 %v4658_v10, %v4642_v2  ;;  %v3347_v62 = vld [vmem:[%s4608_s5] sm:$0xff]   ;;  %s4110_s20 = scalar_lea.vmem %s5111_s11, 512  ;;  %s4222_s25 = smov [#allocation16]  }
  0xe7   : > { %v3360_v63 = vunpack.c.l.bf16 %v3359_v61  ;;  %v3415_v6 = vld [vmem:[%s4601_s16 + $0x8] sm:$0xff]   ;;  %p4111_p6 = scmp.ne.s32.totalorder %s5111_s11, %s4110_s20 }
  0xe8   : > { %v525_v19 = vsub.f32 %v521_v11, %v523_v13  ;;  %v526_v20 = vsub.f32 %v522_v12, %v524_v14  ;;  %v531_v21 = vadd.f32 %v529_v17, %v527_v15  ;;  %v532_v22 = vadd.f32 %v530_v18, %v528_v16 }
  0xe9   : > { %v3361_v13 = vunpack.c.h.bf16 %v3359_v61  ;;  %v4721_v14 = vunpack.c.l.bf16 %v3347_v62  ;;  %v4723_v15 = vunpack.c.h.bf16 %v3347_v62  ;;  %s3345_s21 = sshll.u32 %s5239_s13, 9 }
  0xea   : > { %v533_v23 = vpack.c.bf16 %v526_v20, %v525_v19  ;;  %v534_v24 = vpack.c.bf16 %v532_v22, %v531_v21  ;;  %v535_v25 = vadd.f32 %v531_v21, %v525_v19  ;;  %v536_v26 = vadd.f32 %v532_v22, %v526_v20  ;;  %p5242_p11 = scmp.ne.s32.totalorder %s5240_s7, 0 }
  0xeb   : > { %v3364_v20 = vunpack.c.l.bf16 %v3415_v6  ;;  %s5109_s17 = scalar_lea.hbm %s5241_s8, %s3345_s21 }
  0xec   : > { %3525 = vmatpush3.bf16.msra.mxu0 %v533_v23  ;;  %3531 = vmatpush3.bf16.msra.mxu1 %v534_v24  ;;  %v537_v29 = vpack.c.bf16 %v536_v26, %v535_v25  ;;  %p4112_p8 = pnand %p4111_p6, %p5242_p11 }
  0xed   : > { %3536 = vmatprep.subr.bf16.mxu0 %v4220_v0  ;;  %3542 = vmatprep.subr.bf16.mxu1 %v4220_v0 }
  0xee   : > { %p4113_p5 = pneg %p4112_p8 }
  0xef   : > { %3527 = vmatmul.mubr.msk.bf16.vlgmr.msra.gmra.mrb[0].mxu0 %vm473_vm0, %v4676_v27  ;;  %3533 = vmatmul.mubr.msk.bf16.vlgmr.msra.gmra.mrb[0].mxu1 %vm473_vm0, %v4678_v28 }
  0xf0   : > { %3537 = vmatpush3.bf16.msra.mxu0 %v537_v29  ;;  %3538 = vmatprep.mubr.msk.bf16.mxu0 %vm4221_vm1, %v4220_v0  ;;  %v3365_v29 = vunpack.c.h.bf16 %v3415_v6 }
  0xf1   : > { %3544 = vmatprep.mubr.msk.bf16.mxu1 %vm4221_vm1, %v4220_v0  ;;  %3548 = vmatprep.subr.bf16.mxu0 %v4220_v0 }
  0xf2   : > { %3543 = vmatpush3.bf16.msra.mxu1 %v4697_v31 }
  0xf3   : > { %3554 = vmatprep.subr.bf16.mxu1 %v4220_v0 }
  0xf7   : > { %3539 = vmatmul.mubr.msk.bf16.vlgmr.msra.gmra.mrb[4].mxu0 %vm473_vm0, %v4691_v30 }
  0xf8   : > { %3550 = vmatprep.mubr.msk.bf16.mxu0 %vm4221_vm1, %v4220_v0  ;;  %3549 = vmatpush3.bf16.msra.mxu0 %v4701_v32 }
  0xf9   : > { %3560 = vmatprep.subr.bf16.mxu0 %v4220_v0 }
 0x1c2   : > { %v581_v33 = vpop.f32.mrb[0].mxu0  ;;  %v630_v34 = vpop.f32.mrb[0].mxu1 }
 0x1c3   : > { %v3528_v35 = vpop.f32.mrb[1].mxu0  ;;  %v686_v36 = vsub.f32 %v581_v33, %v630_v34  ;;  %v3534_v37 = vpop.f32.mrb[1].mxu1 }
 0x1c4   : > { %v584_v38 = vpop.f32.mrb[2].mxu0  ;;  %v633_v39 = vpop.f32.mrb[2].mxu1 }
 0x1c5   : > { %v3529_v40 = vpop.f32.mrb[3].mxu0  ;;  %v687_v41 = vsub.f32 %v584_v38, %v633_v39  ;;  %v3535_v42 = vpop.f32.mrb[3].mxu1 }
 0x1c7   : > { %v692_v44 = vpack.c.bf16 %v687_v41, %v686_v36 }
 0x1c9   : > { %3545 = vmatmul.mubr.msk.bf16.vlgmr.msra.gmra.mrb[4].mxu1 %vm473_vm0, %v692_v44 }
 0x1ca   : > { %v679_v45 = vpop.f32.mrb[4].mxu0  ;;  %3555 = vmatpush3.bf16.msra.mxu1 %v4705_v43  ;;  %3556 = vmatprep.mubr.msk.bf16.mxu1 %vm4221_vm1, %v4220_v0 }
 0x1cb   : > { %v688_v46 = vsub.f32 %v679_v45, %v581_v33  ;;  %v3540_v47 = vpop.f32.mrb[5].mxu0  ;;  %3566 = vmatprep.subr.bf16.mxu1 %v4220_v0 }
 0x1cc   : > { %v682_v48 = vpop.f32.mrb[6].mxu0 }
 0x1cd   : > { %v690_v49 = vsub.f32 %v688_v46, %v630_v34  ;;  %v689_v50 = vsub.f32 %v682_v48, %v584_v38  ;;  %v3541_v51 = vpop.f32.mrb[7].mxu0  ;;  %v3416_v48 = vld [vmem:[%s4610_s29 + $0x10] sm:$0xff]  }
 0x1cf   : > { %v794_v52 = vadd.f32 %v690_v49, %v686_v36  ;;  %v691_v53 = vsub.f32 %v689_v50, %v633_v39 }
 0x1d1   : > { %v743_v54 = vpack.c.bf16 %v691_v53, %v690_v49  ;;  %v795_v55 = vadd.f32 %v691_v53, %v687_v41  ;;  %v3417_v49 = vld [vmem:[%s4610_s29 + $0x18] sm:$0xff]   ;;  %v4750_v53 = vunpack.c.l.bf16 %v3416_v48 }
 0x1d3   : > { %v796_v56 = vpack.c.bf16 %v795_v55, %v794_v52  ;;  %3551 = vmatmul.mubr.msk.bf16.vlgmr.msra.gmra.mrb[8].mxu0 %vm473_vm0, %v743_v54  ;;  %v4752_v54 = vunpack.c.h.bf16 %v3416_v48  ;;  %v4754_v55 = vunpack.c.l.bf16 %v3417_v49  ;;  %v1182_v62 = vmul.f32 %v4750_v53, %v4639_v1 }
 0x1d4   : > { %3562 = vmatprep.mubr.msk.bf16.mxu0 %vm4221_vm1, %v4220_v0 }
 0x1d5   : > { %3557 = vmatmul.mubr.msk.bf16.vlgmr.msra.gmra.mrb[8].mxu1 %vm473_vm0, %v796_v56  ;;  %v4756_v56 = vunpack.c.h.bf16 %v3417_v49 }
 0x1d6   : > { %3568 = vmatprep.mubr.msk.bf16.mxu1 %vm4221_vm1, %v4220_v0 }
 0x1d7   : > { %v1185_v6 = vmul.f32 %v4756_v56, %v4648_v4 }
 0x29c   : > { %v736_v57 = vpop.f32.mrb[4].mxu1 }
 0x29d   : > { %v3546_v58 = vpop.f32.mrb[5].mxu1 }
 0x29e   : > { %v739_v59 = vpop.f32.mrb[6].mxu1 }
 0x29f   : > { %v3547_v60 = vpop.f32.mrb[7].mxu1 }
 0x2a6   : > { %v787_v5 = vpop.f32.mrb[8].mxu0 }
 0x2a7   : > { %v847_v11 = vsub.f32 %v736_v57, %v787_v5  ;;  %v3552_v12 = vpop.f32.mrb[9].mxu0 }
 0x2a8   : > { %v790_v16 = vpop.f32.mrb[10].mxu0  ;;  %v840_v17 = vpop.f32.mrb[8].mxu1 }
 0x2a9   : > { %v853_v18 = vsub.f32 %v847_v11, %v3360_v63  ;;  %v848_v19 = vsub.f32 %v739_v59, %v790_v16  ;;  %v849_v21 = vsub.f32 %v840_v17, %v736_v57  ;;  %v3553_v22 = vpop.f32.mrb[11].mxu0  ;;  %v3558_v23 = vpop.f32.mrb[9].mxu1  ;;  %v1183_v63 = vmul.f32 %v4752_v54, %v4642_v2 }
 0x2aa   : > { %v843_v24 = vpop.f32.mrb[10].mxu1  ;;  %v1189_v17 = vmul.f32 %v4752_v54, %v4648_v4 }
 0x2ab   : > { %v854_v25 = vsub.f32 %v848_v19, %v3361_v13  ;;  %v851_v26 = vsub.f32 %v849_v21, %v787_v5  ;;  %v850_v33 = vsub.f32 %v843_v24, %v739_v59  ;;  %v3559_v34 = vpop.f32.mrb[11].mxu1  ;;  %v855_v35 = vmul.f32 %v4721_v14, %v853_v18 }
 0x2ac   : > { %v1184_v5 = vmul.f32 %v4754_v55, %v4645_v3  ;;  %v1190_v18 = vmul.f32 %v4754_v55, %v4639_v1  ;;  %v1191_v19 = vmul.f32 %v4756_v56, %v4642_v2 }
 0x2ad   : > { %v856_v36 = vmul.f32 %v4723_v15, %v854_v25  ;;  %v857_v37 = vsub.f32 %v3364_v20, %v851_v26  ;;  %v852_v38 = vsub.f32 %v850_v33, %v790_v16  ;;  %v1188_v16 = vmul.f32 %v4750_v53, %v4645_v3 }
 0x2ae   : > { %v1186_v24 = vsub.f32 %v1182_v62, %v1184_v5  ;;  %v1187_v25 = vsub.f32 %v1183_v63, %v1185_v6 }
 0x2af   : > { %v859_v39 = vmul.f32 %v4721_v14, %v857_v37  ;;  %v858_v40 = vsub.f32 %v3365_v29, %v852_v38  ;;  %v861_v41 = vpack.c.bf16 %v856_v36, %v855_v35  ;;  %v1192_v34 = vadd.f32 %v1190_v18, %v1188_v16 }
 0x2b0   : > { %v1194_v38 = vpack.c.bf16 %v1187_v25, %v1186_v24 }
 0x2b1   : > { %v863_v42 = vadd.f32 %v859_v39, %v855_v35  ;;  %v860_v44 = vmul.f32 %v4723_v15, %v858_v40  ;;  %3561 = vmatpush3.bf16.msra.mxu0 %v861_v41  ;;  %v1193_v35 = vadd.f32 %v1191_v19, %v1189_v17 }
 0x2b2   : > { %3572 = vmatprep.subr.bf16.mxu0 %v4220_v0 }
 0x2b3   : > { %v864_v45 = vadd.f32 %v860_v44, %v856_v36  ;;  %v862_v46 = vpack.c.bf16 %v860_v44, %v859_v39  ;;  %v1195_v41 = vpack.c.bf16 %v1193_v35, %v1192_v34  ;;  %v1196_v44 = vadd.f32 %v1192_v34, %v1186_v24 }
 0x2b4   : > { %3563 = vmatmul.mubr.msk.bf16.vlgmr.msra.gmra.mrb[12].mxu0 %vm473_vm0, %v4676_v27 }
 0x2b5   : > { %3567 = vmatpush3.bf16.msra.mxu1 %v862_v46  ;;  %v865_v47 = vpack.c.bf16 %v864_v45, %v863_v42  ;;  %3574 = vmatprep.mubr.msk.bf16.mxu0 %vm4221_vm1, %v4220_v0  ;;  %v1197_v45 = vadd.f32 %v1193_v35, %v1187_v25  ;;  %v1139_v35 = vld [vmem:[#allocation2 + $0x8] sm:$0xff] }
 0x2b6   : > { %3578 = vmatprep.subr.bf16.mxu1 %v4220_v0 }
 0x2b7   : > { %3573 = vmatpush3.bf16.msra.mxu0 %v865_v47  ;;  %v1198_v46 = vpack.c.bf16 %v1197_v45, %v1196_v44 }
 0x2b8   : > { %3569 = vmatmul.mubr.msk.bf16.vlgmr.msra.gmra.mrb[12].mxu1 %vm473_vm0, %v4678_v28  ;;  %3584 = vmatprep.subr.bf16.mxu0 %v4220_v0 }
 0x2b9   : > { %3579 = vmatpush3.bf16.msra.mxu1 %v4697_v31  ;;  %3580 = vmatprep.mubr.msk.bf16.mxu1 %vm4221_vm1, %v4220_v0 }
 0x2ba   : > { %3590 = vmatprep.subr.bf16.mxu1 %v4220_v0 }
 0x2bc   : > { %3575 = vmatmul.mubr.msk.bf16.vlgmr.msra.gmra.mrb[16].mxu0 %vm473_vm0, %v4691_v30 }
 0x2bd   : > { %3585 = vmatpush3.bf16.msra.mxu0 %v4701_v32  ;;  %3586 = vmatprep.mubr.msk.bf16.mxu0 %vm4221_vm1, %v4220_v0 }
 0x2be   : > { %3596 = vmatprep.subr.bf16.mxu0 %v4220_v0 }
 0x387   : > { %v900_v50 = vpop.f32.mrb[12].mxu0 }
 0x388   : > { %v3564_v51 = vpop.f32.mrb[13].mxu0 }
 0x389   : > { %v903_v52 = vpop.f32.mrb[14].mxu0 }
 0x38a   : > { %v3565_v57 = vpop.f32.mrb[15].mxu0 }
 0x38b   : > { %v941_v58 = vpop.f32.mrb[12].mxu1 }
 0x38c   : > { %v989_v59 = vsub.f32 %v900_v50, %v941_v58  ;;  %v3570_v60 = vpop.f32.mrb[13].mxu1 }
 0x38d   : > { %v944_v61 = vpop.f32.mrb[14].mxu1 }
 0x38e   : > { %v990_v11 = vsub.f32 %v903_v52, %v944_v61  ;;  %v3571_v12 = vpop.f32.mrb[15].mxu1 }
 0x38f   : > { %v982_v13 = vpop.f32.mrb[16].mxu0 }
 0x390   : > { %v995_v20 = vpack.c.bf16 %v990_v11, %v989_v59  ;;  %v991_v21 = vsub.f32 %v982_v13, %v900_v50  ;;  %v3576_v22 = vpop.f32.mrb[17].mxu0 }
 0x391   : > { %v985_v23 = vpop.f32.mrb[18].mxu0  ;;  %v1138_v22 = vld [vmem:[#allocation2] sm:$0xff] }
 0x392   : > { %v993_v26 = vsub.f32 %v991_v21, %v941_v58  ;;  %v992_v29 = vsub.f32 %v985_v23, %v903_v52  ;;  %v3577_v33 = vpop.f32.mrb[19].mxu0  ;;  %3581 = vmatmul.mubr.msk.bf16.vlgmr.msra.gmra.mrb[16].mxu1 %vm473_vm0, %v995_v20  ;;  %v1150_v23 = vld [vmem:[#allocation3] sm:$0xff] }
 0x393   : > { %3591 = vmatpush3.bf16.msra.mxu1 %v4705_v43  ;;  %3592 = vmatprep.mubr.msk.bf16.mxu1 %vm4221_vm1, %v4220_v0 }
 0x394   : > { %v1085_v36 = vadd.f32 %v993_v26, %v989_v59  ;;  %v994_v37 = vsub.f32 %v992_v29, %v944_v61  ;;  %3602 = vmatprep.subr.bf16.mxu1 %v4220_v0 }
 0x396   : > { %v1040_v39 = vpack.c.bf16 %v994_v37, %v993_v26  ;;  %v1086_v40 = vadd.f32 %v994_v37, %v990_v11 }
 0x398   : > { %v1087_v42 = vpack.c.bf16 %v1086_v40, %v1085_v36  ;;  %3587 = vmatmul.mubr.msk.bf16.vlgmr.msra.gmra.mrb[20].mxu0 %vm473_vm0, %v1040_v39  ;;  %v1151_v36 = vld [vmem:[#allocation3 + $0x8] sm:$0xff] }
 0x399   : > { %3597 = vmatpush3.bf16.msra.mxu0 %v1194_v38  ;;  %3598 = vmatprep.mubr.msk.bf16.mxu0 %vm4221_vm1, %v4220_v0 }
 0x39a   : > { %3593 = vmatmul.mubr.msk.bf16.vlgmr.msra.gmra.mrb[20].mxu1 %vm473_vm0, %v1087_v42  ;;  %3608 = vmatprep.subr.bf16.mxu0 %v4220_v0 }
 0x39b   : > { %3603 = vmatpush3.bf16.msra.mxu1 %v1195_v41  ;;  %3604 = vmatprep.mubr.msk.bf16.mxu1 %vm4221_vm1, %v4220_v0 }
 0x39c   : > { %3614 = vmatprep.subr.bf16.mxu1 %v4220_v0 }
 0x3a0   : > { %3599 = vmatmul.mubr.msk.bf16.vlgmr.msra.gmra.mrb[24].mxu0 %vm473_vm0, %v4676_v27 }
 0x3a1   : > { %3609 = vmatpush3.bf16.msra.mxu0 %v1198_v46  ;;  %3610 = vmatprep.mubr.msk.bf16.mxu0 %vm4221_vm1, %v4220_v0 }
 0x3a2   : > { %3605 = vmatmul.mubr.msk.bf16.vlgmr.msra.gmra.mrb[24].mxu1 %vm473_vm0, %v4678_v28  ;;  %3620 = vmatprep.subr.bf16.mxu0 %v4220_v0 }
 0x3a3   : > { %3615 = vmatpush3.bf16.msra.mxu1 %v4697_v31  ;;  %3616 = vmatprep.mubr.msk.bf16.mxu1 %vm4221_vm1, %v4220_v0 }
 0x3a4   : > { %3626 = vmatprep.subr.bf16.mxu1 %v4220_v0 }
 0x3a8   : > { %3611 = vmatmul.mubr.msk.bf16.vlgmr.msra.gmra.mrb[28].mxu0 %vm473_vm0, %v4691_v30 }
 0x3a9   : > { %3621 = vmatpush3.bf16.msra.mxu0 %v4701_v32  ;;  %3622 = vmatprep.mubr.msk.bf16.mxu0 %vm4221_vm1, %v4220_v0 }
 0x3aa   : > { %3632 = vmatprep.subr.bf16.mxu0 %v4220_v0 }
 0x465   : > { %v1033_v47 = vpop.f32.mrb[16].mxu1 }
 0x466   : > { %v3582_v48 = vpop.f32.mrb[17].mxu1 }
 0x467   : > { %v1036_v49 = vpop.f32.mrb[18].mxu1 }
 0x468   : > { %v3583_v50 = vpop.f32.mrb[19].mxu1 }
 0x46b   : > { %v1078_v51 = vpop.f32.mrb[20].mxu0 }
 0x46c   : > { %v1132_v52 = vsub.f32 %v1033_v47, %v1078_v51  ;;  %v3588_v57 = vpop.f32.mrb[21].mxu0 }
 0x46d   : > { %v1081_v58 = vpop.f32.mrb[22].mxu0  ;;  %v1125_v59 = vpop.f32.mrb[20].mxu1 }
 0x46e   : > { %v1133_v60 = vsub.f32 %v1036_v49, %v1081_v58  ;;  %v1134_v61 = vsub.f32 %v1125_v59, %v1033_v47  ;;  %v3589_v62 = vpop.f32.mrb[23].mxu0  ;;  %v3594_v63 = vpop.f32.mrb[21].mxu1  ;;  %v1140_v13 = vmul.f32 %v4652_v7, %v1132_v52  ;;  %v1154_v16 = vmul.f32 %v4656_v9, %v1132_v52 }
 0x46f   : > { %v1128_v5 = vpop.f32.mrb[22].mxu1 }
 0x470   : > { %v1136_v6 = vsub.f32 %v1134_v61, %v1078_v51  ;;  %v1135_v11 = vsub.f32 %v1128_v5, %v1036_v49  ;;  %v3595_v12 = vpop.f32.mrb[23].mxu1  ;;  %v1141_v20 = vmul.f32 %v4654_v8, %v1133_v60  ;;  %v1155_v21 = vmul.f32 %v4658_v10, %v1133_v60 }
 0x472   : > { %v1142_v17 = vmul.f32 %v4656_v9, %v1136_v6  ;;  %v1152_v18 = vmul.f32 %v4652_v7, %v1136_v6  ;;  %v1137_v19 = vsub.f32 %v1135_v11, %v1081_v58 }
 0x473   : > { %v1233_v24 = vpop.f32.mrb[24].mxu0 }
 0x474   : > { %v1144_v25 = vsub.f32 %v1140_v13, %v1142_v17  ;;  %v1156_v26 = vadd.f32 %v1154_v16, %v1152_v18  ;;  %v1143_v29 = vmul.f32 %v4658_v10, %v1137_v19  ;;  %v1153_v33 = vmul.f32 %v4654_v8, %v1137_v19  ;;  %v3600_v34 = vpop.f32.mrb[25].mxu0  ;;  %v3418_v16 = vld [vmem:[%s4601_s16 + $0x10] sm:$0xff]   ;;  %v3419_v19 = vld [vmem:[%s4601_s16 + $0x18] sm:$0xff]  }
 0x475   : > { %v1236_v9 = vpop.f32.mrb[26].mxu0  ;;  %v1274_v37 = vpop.f32.mrb[24].mxu1  ;;  %v3376_v17 = vunpack.c.l.bf16 %v3418_v16 }
 0x476   : > { %v1146_v7 = vadd.f32 %v1144_v25, %v1138_v22  ;;  %v1158_v38 = vsub.f32 %v1150_v23, %v1156_v26  ;;  %v1145_v39 = vsub.f32 %v1141_v20, %v1143_v29  ;;  %v1157_v40 = vadd.f32 %v1155_v21, %v1153_v33  ;;  %v3601_v41 = vpop.f32.mrb[27].mxu0  ;;  %v3606_v42 = vpop.f32.mrb[25].mxu1 }
 0x477   : > { %v1322_v44 = vsub.f32 %v1233_v24, %v1274_v37  ;;  %v1277_v45 = vpop.f32.mrb[26].mxu1  ;;  %v3377_v22 = vunpack.c.h.bf16 %v3418_v16  ;;  %v3380_v29 = vunpack.c.l.bf16 %v3419_v19 }
 0x478   : > { %1148 = vst.msk [vmem:[#allocation2] sm:$0xff] %vm473_vm0, %v1146_v7  ;;  %1160 = vst.msk [vmem:[#allocation3] sm:$0xff] %vm473_vm0, %v1158_v38  ;;  %v1147_v10 = vadd.f32 %v1145_v39, %v1139_v35  ;;  %v1159_v46 = vsub.f32 %v1151_v36, %v1157_v40  ;;  %v1323_v8 = vsub.f32 %v1236_v9, %v1277_v45  ;;  %v3607_v47 = vpop.f32.mrb[27].mxu1  ;;  %v3381_v7 = vunpack.c.h.bf16 %v3419_v19 }
 0x47a   : > { %1149 = vst.msk [vmem:[#allocation2 + $0x8] sm:$0xff] %vm473_vm0, %v1147_v10  ;;  %1161 = vst.msk [vmem:[#allocation3 + $0x8] sm:$0xff] %vm473_vm0, %v1159_v46  ;;  %v1328_v48 = vpack.c.bf16 %v1323_v8, %v1322_v44 }
 0x47b   : > { %v1315_v49 = vpop.f32.mrb[28].mxu0 }
 0x47c   : > { %v1324_v50 = vsub.f32 %v1315_v49, %v1233_v24  ;;  %v3612_v51 = vpop.f32.mrb[29].mxu0  ;;  %3617 = vmatmul.mubr.msk.bf16.vlgmr.msra.gmra.mrb[28].mxu1 %vm473_vm0, %v1328_v48 }
 0x47d   : > { %v1318_v52 = vpop.f32.mrb[30].mxu0  ;;  %3627 = vmatpush3.bf16.msra.mxu1 %v4705_v43  ;;  %3628 = vmatprep.mubr.msk.bf16.mxu1 %vm4221_vm1, %v4220_v0  ;;  %v3420_v51 = vld [vmem:[%s4610_s29 + $0x20] sm:$0xff]  }
 0x47e   : > { %v1326_v57 = vsub.f32 %v1324_v50, %v1274_v37  ;;  %v1325_v58 = vsub.f32 %v1318_v52, %v1236_v9  ;;  %v3613_v59 = vpop.f32.mrb[31].mxu0  ;;  %3638 = vmatprep.subr.bf16.mxu1 %v4220_v0  ;;  %v3421_v52 = vld [vmem:[%s4610_s29 + $0x28] sm:$0xff]  }
 0x480   : > { %v1418_v60 = vadd.f32 %v1326_v57, %v1322_v44  ;;  %v1327_v61 = vsub.f32 %v1325_v58, %v1277_v45 }
 0x482   : > { %v1373_v62 = vpack.c.bf16 %v1327_v61, %v1326_v57  ;;  %v1419_v63 = vadd.f32 %v1327_v61, %v1323_v8  ;;  %v4856_v61 = vunpack.c.h.bf16 %v3420_v51 }
 0x484   : > { %v1420_v5 = vpack.c.bf16 %v1419_v63, %v1418_v60  ;;  %3623 = vmatmul.mubr.msk.bf16.vlgmr.msra.gmra.mrb[32].mxu0 %vm473_vm0, %v1373_v62  ;;  %v4854_v60 = vunpack.c.l.bf16 %v3420_v51  ;;  %v4858_v62 = vunpack.c.l.bf16 %v3421_v52  ;;  %v4860_v63 = vunpack.c.h.bf16 %v3421_v52 }
 0x485   : > { %3634 = vmatprep.mubr.msk.bf16.mxu0 %vm4221_vm1, %v4220_v0 }
 0x486   : > { %3629 = vmatmul.mubr.msk.bf16.vlgmr.msra.gmra.mrb[32].mxu1 %vm473_vm0, %v1420_v5  ;;  %v1800_v16 = vmul.f32 %v4854_v60, %v4639_v1  ;;  %v1803_v19 = vmul.f32 %v4860_v63, %v4648_v4 }
 0x487   : > { %3640 = vmatprep.mubr.msk.bf16.mxu1 %vm4221_vm1, %v4220_v0 }
 0x54f   : > { %v1366_v6 = vpop.f32.mrb[28].mxu1 }
 0x550   : > { %v3618_v11 = vpop.f32.mrb[29].mxu1 }
 0x551   : > { %v1369_v12 = vpop.f32.mrb[30].mxu1 }
 0x552   : > { %v3619_v13 = vpop.f32.mrb[31].mxu1 }
 0x557   : > { %v1411_v18 = vpop.f32.mrb[32].mxu0 }
 0x558   : > { %v1465_v20 = vsub.f32 %v1366_v6, %v1411_v18  ;;  %v3624_v21 = vpop.f32.mrb[33].mxu0 }
 0x559   : > { %v1414_v23 = vpop.f32.mrb[34].mxu0  ;;  %v1458_v24 = vpop.f32.mrb[32].mxu1 }
 0x55a   : > { %v1471_v25 = vsub.f32 %v1465_v20, %v3376_v17  ;;  %v1466_v26 = vsub.f32 %v1369_v12, %v1414_v23  ;;  %v1467_v33 = vsub.f32 %v1458_v24, %v1366_v6  ;;  %v3625_v34 = vpop.f32.mrb[35].mxu0  ;;  %v3630_v35 = vpop.f32.mrb[33].mxu1  ;;  %v1801_v17 = vmul.f32 %v4856_v61, %v4642_v2 }
 0x55b   : > { %v1461_v36 = vpop.f32.mrb[34].mxu1  ;;  %v1807_v24 = vmul.f32 %v4856_v61, %v4648_v4 }
 0x55c   : > { %v1472_v9 = vsub.f32 %v1466_v26, %v3377_v22  ;;  %v1469_v37 = vsub.f32 %v1467_v33, %v1411_v18  ;;  %v1468_v38 = vsub.f32 %v1461_v36, %v1369_v12  ;;  %v3631_v39 = vpop.f32.mrb[35].mxu1  ;;  %v1473_v40 = vmul.f32 %v4721_v14, %v1471_v25 }
 0x55d   : > { %v1802_v18 = vmul.f32 %v4858_v62, %v4645_v3  ;;  %v1808_v25 = vmul.f32 %v4858_v62, %v4639_v1  ;;  %v1809_v26 = vmul.f32 %v4860_v63, %v4642_v2 }
 0x55e   : > { %v1474_v41 = vmul.f32 %v4723_v15, %v1472_v9  ;;  %v1475_v42 = vsub.f32 %v3380_v29, %v1469_v37  ;;  %v1470_v44 = vsub.f32 %v1468_v38, %v1414_v23  ;;  %v1806_v23 = vmul.f32 %v4854_v60, %v4645_v3 }
 0x55f   : > { %v1804_v36 = vsub.f32 %v1800_v16, %v1802_v18  ;;  %v1805_v9 = vsub.f32 %v1801_v17, %v1803_v19  ;;  %v1811_v3 = vadd.f32 %v1809_v26, %v1807_v24 }
 0x560   : > { %v1477_v45 = vmul.f32 %v4721_v14, %v1475_v42  ;;  %v1476_v10 = vsub.f32 %v3381_v7, %v1470_v44  ;;  %v1479_v46 = vpack.c.bf16 %v1474_v41, %v1473_v40  ;;  %v1810_v1 = vadd.f32 %v1808_v25, %v1806_v23 }
 0x561   : > { %v1812_v39 = vpack.c.bf16 %v1805_v9, %v1804_v36 }
 0x562   : > { %v1481_v8 = vadd.f32 %v1477_v45, %v1473_v40  ;;  %v1478_v47 = vmul.f32 %v4723_v15, %v1476_v10  ;;  %3633 = vmatpush3.bf16.msra.mxu0 %v1479_v46  ;;  %v1813_v42 = vpack.c.bf16 %v1811_v3, %v1810_v1  ;;  %v1815_v10 = vadd.f32 %v1811_v3, %v1805_v9  ;;  %v1768_v9 = vld [vmem:[#allocation3] sm:$0xff] }
 0x563   : > { %3644 = vmatprep.subr.bf16.mxu0 %v4220_v0 }
 0x564   : > { %v1482_v48 = vadd.f32 %v1478_v47, %v1474_v41  ;;  %v1480_v49 = vpack.c.bf16 %v1478_v47, %v1477_v45  ;;  %v1814_v45 = vadd.f32 %v1810_v1, %v1804_v36  ;;  %v1756_v36 = vld [vmem:[#allocation2] sm:$0xff] }
 0x565   : > { %3635 = vmatmul.mubr.msk.bf16.vlgmr.msra.gmra.mrb[36].mxu0 %vm473_vm0, %v4676_v27 }
 0x566   : > { %3639 = vmatpush3.bf16.msra.mxu1 %v1480_v49  ;;  %v1483_v50 = vpack.c.bf16 %v1482_v48, %v1481_v8  ;;  %3646 = vmatprep.mubr.msk.bf16.mxu0 %vm4221_vm1, %v4220_v0  ;;  %v1816_v46 = vpack.c.bf16 %v1815_v10, %v1814_v45 }
 0x567   : > { %3650 = vmatprep.subr.bf16.mxu1 %v4220_v0 }
 0x568   : > { %3645 = vmatpush3.bf16.msra.mxu0 %v1483_v50 }
 0x569   : > { %3641 = vmatmul.mubr.msk.bf16.vlgmr.msra.gmra.mrb[36].mxu1 %vm473_vm0, %v4678_v28  ;;  %3656 = vmatprep.subr.bf16.mxu0 %v4220_v0 }
 0x56a   : > { %3651 = vmatpush3.bf16.msra.mxu1 %v4697_v31  ;;  %3652 = vmatprep.mubr.msk.bf16.mxu1 %vm4221_vm1, %v4220_v0 }
 0x56b   : > { %3662 = vmatprep.subr.bf16.mxu1 %v4220_v0 }
 0x56d   : > { %3647 = vmatmul.mubr.msk.bf16.vlgmr.msra.gmra.mrb[40].mxu0 %vm473_vm0, %v4691_v30 }
 0x56e   : > { %3657 = vmatpush3.bf16.msra.mxu0 %v4701_v32  ;;  %3658 = vmatprep.mubr.msk.bf16.mxu0 %vm4221_vm1, %v4220_v0 }
 0x56f   : > { %3668 = vmatprep.subr.bf16.mxu0 %v4220_v0 }
 0x638   : > { %v1518_v57 = vpop.f32.mrb[36].mxu0 }
 0x639   : > { %v3636_v58 = vpop.f32.mrb[37].mxu0 }
 0x63a   : > { %v1521_v59 = vpop.f32.mrb[38].mxu0 }
 0x63b   : > { %v3637_v5 = vpop.f32.mrb[39].mxu0 }
 0x63c   : > { %v1559_v6 = vpop.f32.mrb[36].mxu1 }
 0x63d   : > { %v1607_v11 = vsub.f32 %v1518_v57, %v1559_v6  ;;  %v3642_v12 = vpop.f32.mrb[37].mxu1 }
 0x63e   : > { %v1562_v13 = vpop.f32.mrb[38].mxu1 }
 0x63f   : > { %v1608_v20 = vsub.f32 %v1521_v59, %v1562_v13  ;;  %v3643_v21 = vpop.f32.mrb[39].mxu1 }
 0x640   : > { %v1600_v22 = vpop.f32.mrb[40].mxu0 }
 0x641   : > { %v1613_v29 = vpack.c.bf16 %v1608_v20, %v1607_v11  ;;  %v1609_v33 = vsub.f32 %v1600_v22, %v1518_v57  ;;  %v3648_v34 = vpop.f32.mrb[41].mxu0 }
 0x642   : > { %v1603_v35 = vpop.f32.mrb[42].mxu0 }
 0x643   : > { %v1611_v37 = vsub.f32 %v1609_v33, %v1559_v6  ;;  %v1610_v7 = vsub.f32 %v1603_v35, %v1521_v59  ;;  %v3649_v38 = vpop.f32.mrb[43].mxu0  ;;  %3653 = vmatmul.mubr.msk.bf16.vlgmr.msra.gmra.mrb[40].mxu1 %vm473_vm0, %v1613_v29 }
 0x644   : > { %3663 = vmatpush3.bf16.msra.mxu1 %v4705_v43  ;;  %3664 = vmatprep.mubr.msk.bf16.mxu1 %vm4221_vm1, %v4220_v0 }
 0x645   : > { %v1703_v4 = vadd.f32 %v1611_v37, %v1607_v11  ;;  %v1612_v2 = vsub.f32 %v1610_v7, %v1562_v13  ;;  %3674 = vmatprep.subr.bf16.mxu1 %v4220_v0 }
 0x647   : > { %v1658_v40 = vpack.c.bf16 %v1612_v2, %v1611_v37  ;;  %v1704_v41 = vadd.f32 %v1612_v2, %v1608_v20  ;;  %v1757_v2 = vld [vmem:[#allocation2 + $0x8] sm:$0xff] }
 0x649   : > { %v1705_v44 = vpack.c.bf16 %v1704_v41, %v1703_v4  ;;  %3659 = vmatmul.mubr.msk.bf16.vlgmr.msra.gmra.mrb[44].mxu0 %vm473_vm0, %v1658_v40 }
 0x64a   : > { %3669 = vmatpush3.bf16.msra.mxu0 %v1812_v39  ;;  %3670 = vmatprep.mubr.msk.bf16.mxu0 %vm4221_vm1, %v4220_v0  ;;  %v1769_v39 = vld [vmem:[#allocation3 + $0x8] sm:$0xff] }
 0x64b   : > { %3665 = vmatmul.mubr.msk.bf16.vlgmr.msra.gmra.mrb[44].mxu1 %vm473_vm0, %v1705_v44  ;;  %3680 = vmatprep.subr.bf16.mxu0 %v4220_v0 }
 0x64c   : > { %3675 = vmatpush3.bf16.msra.mxu1 %v1813_v42  ;;  %3676 = vmatprep.mubr.msk.bf16.mxu1 %vm4221_vm1, %v4220_v0 }
 0x64d   : > { %3686 = vmatprep.subr.bf16.mxu1 %v4220_v0 }
 0x651   : > { %3671 = vmatmul.mubr.msk.bf16.vlgmr.msra.gmra.mrb[48].mxu0 %vm473_vm0, %v4676_v27 }
 0x652   : > { %3681 = vmatpush3.bf16.msra.mxu0 %v1816_v46  ;;  %3682 = vmatprep.mubr.msk.bf16.mxu0 %vm4221_vm1, %v4220_v0 }
 0x653   : > { %3677 = vmatmul.mubr.msk.bf16.vlgmr.msra.gmra.mrb[48].mxu1 %vm473_vm0, %v4678_v28  ;;  %3692 = vmatprep.subr.bf16.mxu0 %v4220_v0 }
 0x654   : > { %3687 = vmatpush3.bf16.msra.mxu1 %v4697_v31  ;;  %3688 = vmatprep.mubr.msk.bf16.mxu1 %vm4221_vm1, %v4220_v0 }
 0x655   : > { %3698 = vmatprep.subr.bf16.mxu1 %v4220_v0 }
 0x659   : > { %3683 = vmatmul.mubr.msk.bf16.vlgmr.msra.gmra.mrb[52].mxu0 %vm473_vm0, %v4691_v30 }
 0x65a   : > { %3693 = vmatpush3.bf16.msra.mxu0 %v4701_v32  ;;  %3694 = vmatprep.mubr.msk.bf16.mxu0 %vm4221_vm1, %v4220_v0 }
 0x65b   : > { %3704 = vmatprep.subr.bf16.mxu0 %v4220_v0 }
 0x716   : > { %v1651_v8 = vpop.f32.mrb[40].mxu1 }
 0x717   : > { %v3654_v47 = vpop.f32.mrb[41].mxu1 }
 0x718   : > { %v1654_v48 = vpop.f32.mrb[42].mxu1 }
 0x719   : > { %v3655_v49 = vpop.f32.mrb[43].mxu1 }
 0x71c   : > { %v1696_v50 = vpop.f32.mrb[44].mxu0 }
 0x71d   : > { %v1750_v51 = vsub.f32 %v1651_v8, %v1696_v50  ;;  %v3660_v52 = vpop.f32.mrb[45].mxu0 }
 0x71e   : > { %v1699_v57 = vpop.f32.mrb[46].mxu0  ;;  %v1743_v58 = vpop.f32.mrb[44].mxu1 }
 0x71f   : > { %v1751_v59 = vsub.f32 %v1654_v48, %v1699_v57  ;;  %v1752_v5 = vsub.f32 %v1743_v58, %v1651_v8  ;;  %v3661_v6 = vpop.f32.mrb[47].mxu0  ;;  %v3666_v11 = vpop.f32.mrb[45].mxu1  ;;  %v1758_v18 = vmul.f32 %v4750_v53, %v1750_v51  ;;  %v1772_v19 = vmul.f32 %v4754_v55, %v1750_v51 }
 0x720   : > { %v1746_v12 = vpop.f32.mrb[46].mxu1 }
 0x721   : > { %v1754_v13 = vsub.f32 %v1752_v5, %v1696_v50  ;;  %v1753_v16 = vsub.f32 %v1746_v12, %v1654_v48  ;;  %v3667_v17 = vpop.f32.mrb[47].mxu1  ;;  %v1759_v23 = vmul.f32 %v4752_v54, %v1751_v59  ;;  %v1773_v24 = vmul.f32 %v4756_v56, %v1751_v59 }
 0x723   : > { %v1760_v20 = vmul.f32 %v4754_v55, %v1754_v13  ;;  %v1770_v21 = vmul.f32 %v4750_v53, %v1754_v13  ;;  %v1755_v22 = vsub.f32 %v1753_v16, %v1699_v57  ;;  %v3422_v13 = vld [vmem:[%s4601_s16 + $0x20] sm:$0xff]  }
 0x724   : > { %v1851_v25 = vpop.f32.mrb[48].mxu0  ;;  %v3392_v16 = vunpack.c.l.bf16 %v3422_v13 }
 0x725   : > { %v1762_v26 = vsub.f32 %v1758_v18, %v1760_v20  ;;  %v1774_v29 = vadd.f32 %v1772_v19, %v1770_v21  ;;  %v1761_v33 = vmul.f32 %v4756_v56, %v1755_v22  ;;  %v1771_v34 = vmul.f32 %v4752_v54, %v1755_v22  ;;  %v3672_v35 = vpop.f32.mrb[49].mxu0  ;;  %v3423_v18 = vld [vmem:[%s4601_s16 + $0x28] sm:$0xff]  }
 0x726   : > { %v1854_v37 = vpop.f32.mrb[50].mxu0  ;;  %v1892_v7 = vpop.f32.mrb[48].mxu1  ;;  %v3393_v21 = vunpack.c.h.bf16 %v3422_v13 }
 0x727   : > { %v1764_v55 = vadd.f32 %v1762_v26, %v1756_v36  ;;  %v1776_v38 = vsub.f32 %v1768_v9, %v1774_v29  ;;  %v1763_v53 = vsub.f32 %v1759_v23, %v1761_v33  ;;  %v1775_v1 = vadd.f32 %v1773_v24, %v1771_v34  ;;  %v3673_v3 = vpop.f32.mrb[51].mxu0  ;;  %v3678_v4 = vpop.f32.mrb[49].mxu1 }
 0x728   : > { %v1940_v40 = vsub.f32 %v1851_v25, %v1892_v7  ;;  %v1895_v41 = vpop.f32.mrb[50].mxu1  ;;  %v3396_v26 = vunpack.c.l.bf16 %v3423_v18 }
 0x729   : > { %1766 = vst.msk [vmem:[#allocation2] sm:$0xff] %vm473_vm0, %v1764_v55  ;;  %1778 = vst.msk [vmem:[#allocation3] sm:$0xff] %vm473_vm0, %v1776_v38  ;;  %v1765_v54 = vadd.f32 %v1763_v53, %v1757_v2  ;;  %v1777_v56 = vsub.f32 %v1769_v39, %v1775_v1  ;;  %v1941_v42 = vsub.f32 %v1854_v37, %v1895_v41  ;;  %v3679_v44 = vpop.f32.mrb[51].mxu1 }
 0x72b   : > { %1767 = vst.msk [vmem:[#allocation2 + $0x8] sm:$0xff] %vm473_vm0, %v1765_v54  ;;  %1779 = vst.msk [vmem:[#allocation3 + $0x8] sm:$0xff] %vm473_vm0, %v1777_v56  ;;  %v1946_v45 = vpack.c.bf16 %v1941_v42, %v1940_v40 }
 0x72c   : > { %v1933_v10 = vpop.f32.mrb[52].mxu0 }
 0x72d   : > { %v1942_v46 = vsub.f32 %v1933_v10, %v1851_v25  ;;  %v3684_v8 = vpop.f32.mrb[53].mxu0  ;;  %3689 = vmatmul.mubr.msk.bf16.vlgmr.msra.gmra.mrb[52].mxu1 %vm473_vm0, %v1946_v45 }
 0x72e   : > { %v1936_v47 = vpop.f32.mrb[54].mxu0  ;;  %3699 = vmatpush3.bf16.msra.mxu1 %v4705_v43  ;;  %3700 = vmatprep.mubr.msk.bf16.mxu1 %vm4221_vm1, %v4220_v0 }
 0x72f   : > { %v1944_v48 = vsub.f32 %v1942_v46, %v1892_v7  ;;  %v1943_v49 = vsub.f32 %v1936_v47, %v1854_v37  ;;  %v3685_v50 = vpop.f32.mrb[55].mxu0  ;;  %3710 = vmatprep.subr.bf16.mxu1 %v4220_v0  ;;  %v3397_v37 = vunpack.c.h.bf16 %v3423_v18 }
 0x731   : > { %v2036_v51 = vadd.f32 %v1944_v48, %v1940_v40  ;;  %v1945_v52 = vsub.f32 %v1943_v49, %v1895_v41 }
 0x733   : > { %v1991_v57 = vpack.c.bf16 %v1945_v52, %v1944_v48  ;;  %v2037_v58 = vadd.f32 %v1945_v52, %v1941_v42 }
 0x735   : > { %v2038_v59 = vpack.c.bf16 %v2037_v58, %v2036_v51  ;;  %3695 = vmatmul.mubr.msk.bf16.vlgmr.msra.gmra.mrb[56].mxu0 %vm473_vm0, %v1991_v57  ;;  %v4967_v51 = vld [vmem:[%s4593_s9] sm:$0xff]  ;;  %v4972_v57 = vld [vmem:[%s4593_s9 + $0x8] sm:$0xff] }
 0x736   : > { %3706 = vmatprep.mubr.msk.bf16.mxu0 %vm4221_vm1, %v4220_v0 }
 0x737   : > { %3701 = vmatmul.mubr.msk.bf16.vlgmr.msra.gmra.mrb[56].mxu1 %vm473_vm0, %v2038_v59  ;;  %v4977_v59 = vld [vmem:[%s4593_s9 + $0x10] sm:$0xff] }
 0x738   : > { %3712 = vmatprep.mubr.msk.bf16.mxu1 %vm4221_vm1, %v4220_v0 }
 0x800   : > { %v1984_v5 = vpop.f32.mrb[52].mxu1 }
 0x801   : > { %v3690_v6 = vpop.f32.mrb[53].mxu1 }
 0x802   : > { %v1987_v11 = vpop.f32.mrb[54].mxu1  ;;  %v4982_v6 = vld [vmem:[%s4593_s9 + $0x18] sm:$0xff]  ;;  %s4114_s9 = sshll.u32 %s4222_s25, 4  ;;  %s4115_s9 = int_to_ptr.vmem [resolvable:$false] %s4114_s9 }
 0x803   : > { %v3691_v12 = vpop.f32.mrb[55].mxu1  ;;  %s4116_s2 = scalar_lea.vmem %s4115_s9, 1024  ;;  %p4117_p3 = scmp.lt.s32.totalorder %s5111_s11, %s4115_s9 }
 0x804   : > { %p4118_p12 = scmp.lt.s32.totalorder %s4116_s2, %s4110_s20 }
 0x806   : > { %p4119_p4 = por %p4118_p12, %p4117_p3 }
 0x808   : > { %v2029_v17 = vpop.f32.mrb[56].mxu0  ;;  %p4120_p0 = pnand %p4119_p4, %p4113_p5 }
 0x809   : > { %v2083_v19 = vsub.f32 %v1984_v5, %v2029_v17  ;;  %v3696_v20 = vpop.f32.mrb[57].mxu0 }
 0x80a   : > { %v2032_v22 = vpop.f32.mrb[58].mxu0  ;;  %v2076_v23 = vpop.f32.mrb[56].mxu1 }
 0x80b   : > { %v2089_v24 = vsub.f32 %v2083_v19, %v3392_v16  ;;  %v2084_v25 = vsub.f32 %v1987_v11, %v2032_v22  ;;  %v2085_v29 = vsub.f32 %v2076_v23, %v1984_v5  ;;  %v3697_v33 = vpop.f32.mrb[59].mxu0  ;;  %v3702_v34 = vpop.f32.mrb[57].mxu1 }
 0x80c   : > { %v2079_v35 = vpop.f32.mrb[58].mxu1 }
 0x80d   : > { %v2090_v36 = vsub.f32 %v2084_v25, %v3393_v21  ;;  %v2087_v9 = vsub.f32 %v2085_v29, %v2029_v17  ;;  %v2086_v7 = vsub.f32 %v2079_v35, %v1987_v11  ;;  %v3703_v55 = vpop.f32.mrb[59].mxu1  ;;  %v2091_v38 = vmul.f32 %v4721_v14, %v2089_v24 }
 0x80f   : > { %v2092_v53 = vmul.f32 %v4723_v15, %v2090_v36  ;;  %v2093_v1 = vsub.f32 %v3396_v26, %v2087_v9  ;;  %v2088_v3 = vsub.f32 %v2086_v7, %v2032_v22 }
 0x811   : > { %v2095_v4 = vmul.f32 %v4721_v14, %v2093_v1  ;;  %v2094_v2 = vsub.f32 %v3397_v37, %v2088_v3  ;;  %v2097_v39 = vpack.c.bf16 %v2092_v53, %v2091_v38 }
 0x813   : > { %v2099_v40 = vadd.f32 %v2095_v4, %v2091_v38  ;;  %v2096_v41 = vmul.f32 %v4723_v15, %v2094_v2  ;;  %3705 = vmatpush3.bf16.msra.mxu0 %v2097_v39  ;;  %v5007_v2 = vld [vmem:[#allocation13] sm:$0xff]   ;;  %v5013_v39 = vld [vmem:[#allocation13 + $0x8] sm:$0xff]  }
 0x814   : > { %3716 = vmatprep.subr.bf16.mxu0 %v4220_v0 }
 0x815   : > { %v2100_v54 = vadd.f32 %v2096_v41, %v2092_v53  ;;  %v2098_v56 = vpack.c.bf16 %v2096_v41, %v2095_v4  ;;  %v5024_v41 = vld [vmem:[#allocation13 + $0x10] sm:$0xff]  }
 0x816   : > { %3707 = vmatmul.mubr.msk.bf16.vlgmr.msra.gmra.mrb[60].mxu0 %vm473_vm0, %v4676_v27  ;;  %v3424_v27 = vld [vmem:[%s4610_s29 + $0x30] sm:$0xff]  }
 0x817   : > { %3711 = vmatpush3.bf16.msra.mxu1 %v2098_v56  ;;  %v2101_v42 = vpack.c.bf16 %v2100_v54, %v2099_v40  ;;  %3718 = vmatprep.mubr.msk.bf16.mxu0 %vm4221_vm1, %v4220_v0  ;;  %v4958_v10 = vunpack.c.l.bf16 %v3424_v27  ;;  %v4960_v46 = vunpack.c.h.bf16 %v3424_v27  ;;  %v5018_v40 = vld [vmem:[#allocation14] sm:$0xff]   ;;  %v5028_v54 = vld [vmem:[#allocation14 + $0x8] sm:$0xff]  }
 0x818   : > { %3722 = vmatprep.subr.bf16.mxu1 %v4220_v0 }
 0x819   : > { %3717 = vmatpush3.bf16.msra.mxu0 %v2101_v42  ;;  %v2418_v52 = vmul.f32 %v4967_v51, %v4958_v10  ;;  %v2419_v58 = vmul.f32 %v4972_v57, %v4960_v46  ;;  %v2424_v17 = vmul.f32 %v4977_v59, %v4958_v10  ;;  %v2425_v18 = vmul.f32 %v4982_v6, %v4960_v46 }
 0x81a   : > { %3713 = vmatmul.mubr.msk.bf16.vlgmr.msra.gmra.mrb[60].mxu1 %vm473_vm0, %v4678_v28  ;;  %3728 = vmatprep.subr.bf16.mxu0 %v4220_v0  ;;  %v3425_v28 = vld [vmem:[%s4610_s29 + $0x38] sm:$0xff]  }
 0x81b   : > { %3723 = vmatpush3.bf16.msra.mxu1 %v4697_v31  ;;  %3724 = vmatprep.mubr.msk.bf16.mxu1 %vm4221_vm1, %v4220_v0 }
 0x81c   : > { %3734 = vmatprep.subr.bf16.mxu1 %v4220_v0 }
 0x81e   : > { %3719 = vmatmul.mubr.msk.bf16.vlgmr.msra.gmra.mrb[64].mxu0 %vm473_vm0, %v4691_v30  ;;  %v4962_v30 = vunpack.c.l.bf16 %v3425_v28 }
 0x81f   : > { %3729 = vmatpush3.bf16.msra.mxu0 %v4701_v32  ;;  %3730 = vmatprep.mubr.msk.bf16.mxu0 %vm4221_vm1, %v4220_v0  ;;  %v4964_v32 = vunpack.c.h.bf16 %v3425_v28 }
 0x820   : > { %3740 = vmatprep.subr.bf16.mxu0 %v4220_v0  ;;  %v2420_v5 = vmul.f32 %v4977_v59, %v4962_v30  ;;  %v2426_v19 = vmul.f32 %v4967_v51, %v4962_v30 }
 0x821   : > { %v2421_v11 = vmul.f32 %v4982_v6, %v4964_v32  ;;  %v2427_v20 = vmul.f32 %v4972_v57, %v4964_v32 }
 0x822   : > { %v2422_v25 = vsub.f32 %v2418_v52, %v2420_v5  ;;  %v2428_v35 = vadd.f32 %v2426_v19, %v2424_v17 }
 0x823   : > { %v2423_v26 = vsub.f32 %v2419_v58, %v2421_v11  ;;  %v2429_v36 = vadd.f32 %v2427_v20, %v2425_v18 }
 0x825   : > { %v2430_v7 = vpack.c.bf16 %v2423_v26, %v2422_v25  ;;  %v2431_v53 = vpack.c.bf16 %v2429_v36, %v2428_v35  ;;  %v2433_v3 = vadd.f32 %v2429_v36, %v2423_v26 }
 0x8e9   : > { %v2136_v31 = vpop.f32.mrb[60].mxu0 }
 0x8ea   : > { %v3708_v44 = vpop.f32.mrb[61].mxu0 }
 0x8eb   : > { %v2139_v45 = vpop.f32.mrb[62].mxu0 }
 0x8ec   : > { %v3709_v8 = vpop.f32.mrb[63].mxu0 }
 0x8ed   : > { %v2177_v47 = vpop.f32.mrb[60].mxu1 }
 0x8ee   : > { %v2225_v48 = vsub.f32 %v2136_v31, %v2177_v47  ;;  %v3714_v49 = vpop.f32.mrb[61].mxu1 }
 0x8ef   : > { %v2180_v50 = vpop.f32.mrb[62].mxu1 }
 0x8f0   : > { %v2226_v12 = vsub.f32 %v2139_v45, %v2180_v50  ;;  %v3715_v13 = vpop.f32.mrb[63].mxu1 }
 0x8f1   : > { %v2218_v16 = vpop.f32.mrb[64].mxu0 }
 0x8f2   : > { %v2231_v21 = vpack.c.bf16 %v2226_v12, %v2225_v48  ;;  %v2227_v22 = vsub.f32 %v2218_v16, %v2136_v31  ;;  %v3720_v23 = vpop.f32.mrb[65].mxu0 }
 0x8f3   : > { %v2221_v24 = vpop.f32.mrb[66].mxu0 }
 0x8f4   : > { %v2229_v29 = vsub.f32 %v2227_v22, %v2177_v47  ;;  %v2228_v33 = vsub.f32 %v2221_v24, %v2139_v45  ;;  %v3721_v34 = vpop.f32.mrb[67].mxu0  ;;  %3725 = vmatmul.mubr.msk.bf16.vlgmr.msra.gmra.mrb[64].mxu1 %vm473_vm0, %v2231_v21 }
 0x8f5   : > { %3735 = vmatpush3.bf16.msra.mxu1 %v4705_v43  ;;  %3736 = vmatprep.mubr.msk.bf16.mxu1 %vm4221_vm1, %v4220_v0  ;;  %v2432_v43 = vadd.f32 %v2428_v35, %v2422_v25  ;;  %v2386_v34 = vld [vmem:[#allocation3] sm:$0xff] }
 0x8f6   : > { %v2321_v9 = vadd.f32 %v2229_v29, %v2225_v48  ;;  %v2230_v37 = vsub.f32 %v2228_v33, %v2180_v50  ;;  %3746 = vmatprep.subr.bf16.mxu1 %v4220_v0  ;;  %v2374_v33 = vld [vmem:[#allocation2] sm:$0xff] }
 0x8f7   : > { %v2434_v4 = vpack.c.bf16 %v2433_v3, %v2432_v43 }
 0x8f8   : > { %v2276_v55 = vpack.c.bf16 %v2230_v37, %v2229_v29  ;;  %v2322_v38 = vadd.f32 %v2230_v37, %v2226_v12 }
 0x8fa   : > { %v2323_v1 = vpack.c.bf16 %v2322_v38, %v2321_v9  ;;  %3731 = vmatmul.mubr.msk.bf16.vlgmr.msra.gmra.mrb[68].mxu0 %vm473_vm0, %v2276_v55  ;;  %v2375_v38 = vld [vmem:[#allocation2 + $0x8] sm:$0xff] }
 0x8fb   : > { %3741 = vmatpush3.bf16.msra.mxu0 %v2430_v7  ;;  %3742 = vmatprep.mubr.msk.bf16.mxu0 %vm4221_vm1, %v4220_v0 }
 0x8fc   : > { %3737 = vmatmul.mubr.msk.bf16.vlgmr.msra.gmra.mrb[68].mxu1 %vm473_vm0, %v2323_v1  ;;  %3752 = vmatprep.subr.bf16.mxu0 %v4220_v0 }
 0x8fd   : > { %3747 = vmatpush3.bf16.msra.mxu1 %v2431_v53  ;;  %3748 = vmatprep.mubr.msk.bf16.mxu1 %vm4221_vm1, %v4220_v0  ;;  %v2387_v53 = vld [vmem:[#allocation3 + $0x8] sm:$0xff] }
 0x8fe   : > { %3758 = vmatprep.subr.bf16.mxu1 %v4220_v0 }
 0x902   : > { %3743 = vmatmul.mubr.msk.bf16.vlgmr.msra.gmra.mrb[72].mxu0 %vm473_vm0, %v5007_v2 }
 0x903   : > { %3753 = vmatpush3.bf16.msra.mxu0 %v2434_v4  ;;  %3754 = vmatprep.mubr.msk.bf16.mxu0 %vm4221_vm1, %v4220_v0 }
 0x904   : > { %3749 = vmatmul.mubr.msk.bf16.vlgmr.msra.gmra.mrb[72].mxu1 %vm473_vm0, %v5013_v39  ;;  %3764 = vmatprep.subr.bf16.mxu0 %v4220_v0 }
 0x905   : > { %3759 = vmatpush3.bf16.msra.mxu1 %v5018_v40  ;;  %3760 = vmatprep.mubr.msk.bf16.mxu1 %vm4221_vm1, %v4220_v0 }
 0x906   : > { %3770 = vmatprep.subr.bf16.mxu1 %v4220_v0 }
 0x90a   : > { %3755 = vmatmul.mubr.msk.bf16.vlgmr.msra.gmra.mrb[76].mxu0 %vm473_vm0, %v5024_v41 }
 0x90b   : > { %3765 = vmatpush3.bf16.msra.mxu0 %v5028_v54  ;;  %3766 = vmatprep.mubr.msk.bf16.mxu0 %vm4221_vm1, %v4220_v0 }
 0x90c   : > { %3776 = vmatprep.subr.bf16.mxu0 %v4220_v0 }
 0x9c7   : > { %v2269_v56 = vpop.f32.mrb[64].mxu1 }
 0x9c8   : > { %v3726_v42 = vpop.f32.mrb[65].mxu1 }
 0x9c9   : > { %v2272_v27 = vpop.f32.mrb[66].mxu1 }
 0x9ca   : > { %v3727_v28 = vpop.f32.mrb[67].mxu1 }
 0x9cd   : > { %v2314_v31 = vpop.f32.mrb[68].mxu0 }
 0x9ce   : > { %v2368_v44 = vsub.f32 %v2269_v56, %v2314_v31  ;;  %v3732_v45 = vpop.f32.mrb[69].mxu0 }
 0x9cf   : > { %v2317_v8 = vpop.f32.mrb[70].mxu0  ;;  %v2361_v47 = vpop.f32.mrb[68].mxu1 }
 0x9d0   : > { %v2369_v48 = vsub.f32 %v2272_v27, %v2317_v8  ;;  %v2370_v49 = vsub.f32 %v2361_v47, %v2269_v56  ;;  %v3733_v50 = vpop.f32.mrb[71].mxu0  ;;  %v3738_v52 = vpop.f32.mrb[69].mxu1  ;;  %v2376_v13 = vmul.f32 %v4854_v60, %v2368_v44  ;;  %v2390_v16 = vmul.f32 %v4858_v62, %v2368_v44  ;;  %v5047_v44 = vld [vmem:[#allocation14 + $0x10] sm:$0xff]  }
 0x9d1   : > { %v2364_v58 = vpop.f32.mrb[70].mxu1 }
 0x9d2   : > { %v2372_v5 = vsub.f32 %v2370_v49, %v2314_v31  ;;  %v2371_v11 = vsub.f32 %v2364_v58, %v2272_v27  ;;  %v3739_v12 = vpop.f32.mrb[71].mxu1  ;;  %v2377_v20 = vmul.f32 %v4856_v61, %v2369_v48  ;;  %v2391_v21 = vmul.f32 %v4860_v63, %v2369_v48 }
 0x9d4   : > { %v2378_v17 = vmul.f32 %v4858_v62, %v2372_v5  ;;  %v2388_v18 = vmul.f32 %v4854_v60, %v2372_v5  ;;  %v2373_v19 = vsub.f32 %v2371_v11, %v2317_v8 }
 0x9d5   : > { %v2469_v22 = vpop.f32.mrb[72].mxu0 }
 0x9d6   : > { %v2380_v23 = vsub.f32 %v2376_v13, %v2378_v17  ;;  %v2392_v24 = vadd.f32 %v2390_v16, %v2388_v18  ;;  %v2379_v25 = vmul.f32 %v4860_v63, %v2373_v19  ;;  %v2389_v26 = vmul.f32 %v4856_v61, %v2373_v19  ;;  %v3744_v29 = vpop.f32.mrb[73].mxu0  ;;  %v3426_v16 = vld [vmem:[%s4601_s16 + $0x30] sm:$0xff]   ;;  %v3427_v19 = vld [vmem:[%s4601_s16 + $0x38] sm:$0xff]  }
 0x9d7   : > { %v2472_v35 = vpop.f32.mrb[74].mxu0  ;;  %v2510_v36 = vpop.f32.mrb[72].mxu1  ;;  %v3408_v17 = vunpack.c.l.bf16 %v3426_v16  ;;  %v3412_v29 = vunpack.c.l.bf16 %v3427_v19 }
 0x9d8   : > { %v2382_v62 = vadd.f32 %v2380_v23, %v2374_v33  ;;  %v2394_v9 = vsub.f32 %v2386_v34, %v2392_v24  ;;  %v2381_v60 = vsub.f32 %v2377_v20, %v2379_v25  ;;  %v2393_v37 = vadd.f32 %v2391_v21, %v2389_v26  ;;  %v3745_v7 = vpop.f32.mrb[75].mxu0  ;;  %v3750_v55 = vpop.f32.mrb[73].mxu1 }
 0x9d9   : > { %v2558_v1 = vsub.f32 %v2469_v22, %v2510_v36  ;;  %v2513_v43 = vpop.f32.mrb[74].mxu1 }
 0x9da   : > { %2384 = vst.msk [vmem:[#allocation2] sm:$0xff] %vm473_vm0, %v2382_v62  ;;  %2396 = vst.msk [vmem:[#allocation3] sm:$0xff] %vm473_vm0, %v2394_v9  ;;  %v2383_v61 = vadd.f32 %v2381_v60, %v2375_v38  ;;  %v2395_v63 = vsub.f32 %v2387_v53, %v2393_v37  ;;  %v2559_v3 = vsub.f32 %v2472_v35, %v2513_v43  ;;  %v3751_v4 = vpop.f32.mrb[75].mxu1  ;;  %v3413_v60 = vunpack.c.h.bf16 %v3427_v19 }
 0x9dc   : > { %2385 = vst.msk [vmem:[#allocation2 + $0x8] sm:$0xff] %vm473_vm0, %v2383_v61  ;;  %2397 = vst.msk [vmem:[#allocation3 + $0x8] sm:$0xff] %vm473_vm0, %v2395_v63  ;;  %v2564_v56 = vpack.c.bf16 %v2559_v3, %v2558_v1 }
 0x9dd   : > { %v2551_v42 = vpop.f32.mrb[76].mxu0 }
 0x9de   : > { %v2560_v27 = vsub.f32 %v2551_v42, %v2469_v22  ;;  %v3756_v28 = vpop.f32.mrb[77].mxu0  ;;  %3761 = vmatmul.mubr.msk.bf16.vlgmr.msra.gmra.mrb[76].mxu1 %vm473_vm0, %v2564_v56  ;;  %v3409_v22 = vunpack.c.h.bf16 %v3426_v16 }
 0x9df   : > { %v2554_v31 = vpop.f32.mrb[78].mxu0  ;;  %3771 = vmatpush3.bf16.msra.mxu1 %v5047_v44  ;;  %3772 = vmatprep.mubr.msk.bf16.mxu1 %vm4221_vm1, %v4220_v0 }
 0x9e0   : > { %v2562_v45 = vsub.f32 %v2560_v27, %v2510_v36  ;;  %v2561_v8 = vsub.f32 %v2554_v31, %v2472_v35  ;;  %v3757_v47 = vpop.f32.mrb[79].mxu0  ;;  %3782 = vmatprep.subr.bf16.mxu1 %v4220_v0 }
 0x9e2   : > { %v2654_v48 = vadd.f32 %v2562_v45, %v2558_v1  ;;  %v2563_v49 = vsub.f32 %v2561_v8, %v2513_v43 }
 0x9e4   : > { %v2609_v50 = vpack.c.bf16 %v2563_v49, %v2562_v45  ;;  %v2655_v52 = vadd.f32 %v2563_v49, %v2559_v3 }
 0x9e6   : > { %v2656_v58 = vpack.c.bf16 %v2655_v52, %v2654_v48  ;;  %3767 = vmatmul.mubr.msk.bf16.vlgmr.msra.gmra.mrb[80].mxu0 %vm473_vm0, %v2609_v50 }
 0x9e7   : > { %3778 = vmatprep.mubr.msk.bf16.mxu0 %vm4221_vm1, %v4220_v0 }
 0x9e8   : > { %3773 = vmatmul.mubr.msk.bf16.vlgmr.msra.gmra.mrb[80].mxu1 %vm473_vm0, %v2656_v58 }
 0x9e9   : > { %3784 = vmatprep.mubr.msk.bf16.mxu1 %vm4221_vm1, %v4220_v0 }
 0xab1   : > { %v2602_v5 = vpop.f32.mrb[76].mxu1 }
 0xab2   : > { %v3762_v11 = vpop.f32.mrb[77].mxu1 }
 0xab3   : > { %v2605_v12 = vpop.f32.mrb[78].mxu1 }
 0xab4   : > { %v3763_v13 = vpop.f32.mrb[79].mxu1 }
 0xab9   : > { %v2647_v18 = vpop.f32.mrb[80].mxu0 }
 0xaba   : > { %v2701_v20 = vsub.f32 %v2602_v5, %v2647_v18  ;;  %v3768_v21 = vpop.f32.mrb[81].mxu0 }
 0xabb   : > { %v2650_v23 = vpop.f32.mrb[82].mxu0  ;;  %v2694_v24 = vpop.f32.mrb[80].mxu1 }
 0xabc   : > { %v2707_v25 = vsub.f32 %v2701_v20, %v3408_v17  ;;  %v2702_v26 = vsub.f32 %v2605_v12, %v2650_v23  ;;  %v2703_v33 = vsub.f32 %v2694_v24, %v2602_v5  ;;  %v3769_v34 = vpop.f32.mrb[83].mxu0  ;;  %v3774_v35 = vpop.f32.mrb[81].mxu1 }
 0xabd   : > { %v2697_v36 = vpop.f32.mrb[82].mxu1 }
 0xabe   : > { %v2708_v62 = vsub.f32 %v2702_v26, %v3409_v22  ;;  %v2705_v9 = vsub.f32 %v2703_v33, %v2647_v18  ;;  %v2704_v37 = vsub.f32 %v2697_v36, %v2605_v12  ;;  %v3775_v7 = vpop.f32.mrb[83].mxu1  ;;  %v2709_v55 = vmul.f32 %v4721_v14, %v2707_v25 }
 0xac0   : > { %v2710_v38 = vmul.f32 %v4723_v15, %v2708_v62  ;;  %v2711_v53 = vsub.f32 %v3412_v29, %v2705_v9  ;;  %v2706_v1 = vsub.f32 %v2704_v37, %v2650_v23 }
 0xac2   : > { %v2713_v43 = vmul.f32 %v4721_v14, %v2711_v53  ;;  %v2712_v61 = vsub.f32 %v3413_v60, %v2706_v1  ;;  %v2715_v63 = vpack.c.bf16 %v2710_v38, %v2709_v55 }
 0xac4   : > { %v2717_v3 = vadd.f32 %v2713_v43, %v2709_v55  ;;  %v2714_v4 = vmul.f32 %v4723_v15, %v2712_v61  ;;  %3777 = vmatpush3.bf16.msra.mxu0 %v2715_v63 }
 0xac5   : > { %3788 = vmatprep.subr.bf16.mxu0 %v4220_v0 }
 0xac6   : > { %v2718_v56 = vadd.f32 %v2714_v4, %v2710_v38  ;;  %v2716_v42 = vpack.c.bf16 %v2714_v4, %v2713_v43  ;;  %v3004_v4 = vld [vmem:[#allocation3] sm:$0xff] }
 0xac7   : > { %3779 = vmatmul.mubr.msk.bf16.vlgmr.msra.gmra.mrb[84].mxu0 %vm473_vm0, %v5007_v2 }
 0xac8   : > { %3783 = vmatpush3.bf16.msra.mxu1 %v2716_v42  ;;  %v2719_v27 = vpack.c.bf16 %v2718_v56, %v2717_v3  ;;  %3790 = vmatprep.mubr.msk.bf16.mxu0 %vm4221_vm1, %v4220_v0  ;;  %v2992_v3 = vld [vmem:[#allocation2] sm:$0xff] }
 0xac9   : > { %3794 = vmatprep.subr.bf16.mxu1 %v4220_v0 }
 0xaca   : > { %3789 = vmatpush3.bf16.msra.mxu0 %v2719_v27  ;;  %v2993_v27 = vld [vmem:[#allocation2 + $0x8] sm:$0xff] }
 0xacb   : > { %3785 = vmatmul.mubr.msk.bf16.vlgmr.msra.gmra.mrb[84].mxu1 %vm473_vm0, %v5013_v39  ;;  %3800 = vmatprep.subr.bf16.mxu0 %v4220_v0 }
 0xacc   : > { %3795 = vmatpush3.bf16.msra.mxu1 %v5018_v40  ;;  %3796 = vmatprep.mubr.msk.bf16.mxu1 %vm4221_vm1, %v4220_v0 }
 0xacd   : > { %3806 = vmatprep.subr.bf16.mxu1 %v4220_v0 }
 0xacf   : > { %3791 = vmatmul.mubr.msk.bf16.vlgmr.msra.gmra.mrb[88].mxu0 %vm473_vm0, %v5024_v41 }
 0xad0   : > { %3801 = vmatpush3.bf16.msra.mxu0 %v5028_v54  ;;  %3802 = vmatprep.mubr.msk.bf16.mxu0 %vm4221_vm1, %v4220_v0 }
 0xb9a   : > { %v2754_v14 = vpop.f32.mrb[84].mxu0 }
 0xb9b   : > { %v3780_v15 = vpop.f32.mrb[85].mxu0 }
 0xb9c   : > { %v2757_v2 = vpop.f32.mrb[86].mxu0 }
 0xb9d   : > { %v3781_v39 = vpop.f32.mrb[87].mxu0 }
 0xb9e   : > { %v2795_v28 = vpop.f32.mrb[84].mxu1 }
 0xb9f   : > { %v2843_v31 = vsub.f32 %v2754_v14, %v2795_v28  ;;  %v3786_v40 = vpop.f32.mrb[85].mxu1 }
 0xba0   : > { %v2798_v45 = vpop.f32.mrb[86].mxu1 }
 0xba1   : > { %v2844_v8 = vsub.f32 %v2757_v2, %v2798_v45  ;;  %v3787_v47 = vpop.f32.mrb[87].mxu1 }
 0xba2   : > { %v2836_v48 = vpop.f32.mrb[88].mxu0 }
 0xba3   : > { %v2849_v49 = vpack.c.bf16 %v2844_v8, %v2843_v31  ;;  %v2845_v50 = vsub.f32 %v2836_v48, %v2754_v14  ;;  %v3792_v52 = vpop.f32.mrb[89].mxu0  ;;  %v3005_v14 = vld [vmem:[#allocation3 + $0x8] sm:$0xff] }
 0xba4   : > { %v2839_v41 = vpop.f32.mrb[90].mxu0 }
 0xba5   : > { %v2847_v58 = vsub.f32 %v2845_v50, %v2795_v28  ;;  %v2846_v54 = vsub.f32 %v2839_v41, %v2757_v2  ;;  %3797 = vmatmul.mubr.msk.bf16.vlgmr.msra.gmra.mrb[88].mxu1 %vm473_vm0, %v2849_v49  ;;  %v3793_v5 = vpop.f32.mrb[91].mxu0 }
 0xba6   : > { %3807 = vmatpush3.bf16.msra.mxu1 %v5047_v44  ;;  %3808 = vmatprep.mubr.msk.bf16.mxu1 %vm4221_vm1, %v4220_v0 }
 0xba7   : > { %v2939_v11 = vadd.f32 %v2847_v58, %v2843_v31  ;;  %v2848_v12 = vsub.f32 %v2846_v54, %v2798_v45 }
 0xba9   : > { %v2894_v13 = vpack.c.bf16 %v2848_v12, %v2847_v58  ;;  %v2940_v16 = vadd.f32 %v2848_v12, %v2844_v8 }
 0xbab   : > { %v2941_v17 = vpack.c.bf16 %v2940_v16, %v2939_v11  ;;  %3803 = vmatmul.mubr.msk.bf16.vlgmr.msra.gmra.mrb[92].mxu0 %vm473_vm0, %v2894_v13 }
 0xbad   : > { %3809 = vmatmul.mubr.msk.bf16.vlgmr.msra.gmra.mrb[92].mxu1 %vm473_vm0, %v2941_v17 }
 0xc78   : > { %v2887_v18 = vpop.f32.mrb[88].mxu1 }
 0xc79   : > { %v3798_v19 = vpop.f32.mrb[89].mxu1 }
 0xc7a   : > { %v2890_v20 = vpop.f32.mrb[90].mxu1 }
 0xc7b   : > { %v3799_v21 = vpop.f32.mrb[91].mxu1 }
 0xc7e   : > { %v2932_v22 = vpop.f32.mrb[92].mxu0 }
 0xc7f   : > { %v2986_v23 = vsub.f32 %v2887_v18, %v2932_v22  ;;  %v3804_v24 = vpop.f32.mrb[93].mxu0 }
 0xc80   : > { %v2935_v44 = vpop.f32.mrb[94].mxu0  ;;  %v2979_v25 = vpop.f32.mrb[92].mxu1 }
 0xc81   : > { %v2987_v26 = vsub.f32 %v2890_v20, %v2935_v44  ;;  %v2988_v0 = vsub.f32 %v2979_v25, %v2887_v18  ;;  %v3805_v29 = vpop.f32.mrb[95].mxu0  ;;  %v3810_v33 = vpop.f32.mrb[93].mxu1  ;;  %v2994_v9 = vmul.f32 %v4958_v10, %v2986_v23  ;;  %v3008_v60 = vmul.f32 %v4962_v30, %v2986_v23 }
 0xc82   : > { %v2982_v34 = vpop.f32.mrb[94].mxu1 }
 0xc83   : > { %v2990_v35 = vsub.f32 %v2988_v0, %v2932_v22  ;;  %v2989_v36 = vsub.f32 %v2982_v34, %v2890_v20  ;;  %v3811_v62 = vpop.f32.mrb[95].mxu1  ;;  %v2995_v38 = vmul.f32 %v4960_v46, %v2987_v26  ;;  %v3009_v53 = vmul.f32 %v4964_v32, %v2987_v26 }
 0xc85   : > { %v2996_v37 = vmul.f32 %v4962_v30, %v2990_v35  ;;  %v3006_v7 = vmul.f32 %v4958_v10, %v2990_v35  ;;  %v2991_v55 = vsub.f32 %v2989_v36, %v2935_v44 }
 0xc87   : > { %v2998_v1 = vsub.f32 %v2994_v9, %v2996_v37  ;;  %v3010_v43 = vadd.f32 %v3008_v60, %v3006_v7  ;;  %v2997_v61 = vmul.f32 %v4964_v32, %v2991_v55  ;;  %v3007_v63 = vmul.f32 %v4960_v46, %v2991_v55 }
 0xc88   : > { %v3022_v46 = vstv %s3019_s12 }
 0xc89   : > { %v3000_v56 = vadd.f32 %v2998_v1, %v2992_v3  ;;  %v3012_v42 = vsub.f32 %v3004_v4, %v3010_v43  ;;  %v2999_v30 = vsub.f32 %v2995_v38, %v2997_v61  ;;  %v3011_v10 = vadd.f32 %v3009_v53, %v3007_v63 }
 0xc8b   : > { %3002 = vst.msk [vmem:[#allocation2] sm:$0xff] %vm473_vm0, %v3000_v56  ;;  %3014 = vst.msk [vmem:[#allocation3] sm:$0xff] %vm473_vm0, %v3012_v42  ;;  %v3001_v15 = vadd.f32 %v2999_v30, %v2993_v27  ;;  %v3013_v2 = vsub.f32 %v3005_v14, %v3011_v10 }
 0xc8d   : > { %3003 = vst.msk [vmem:[#allocation2 + $0x8] sm:$0xff] %vm473_vm0, %v3001_v15  ;;  %3015 = vst.msk [vmem:[#allocation3 + $0x8] sm:$0xff] %vm473_vm0, %v3013_v2 }
 0xc92   : > { %v3020_v32 = vld [vmem:[#allocation2] sm:$0xff]  ;;  %v3029_v39 = vld [vmem:[#allocation3] sm:$0xff] }
 0xc93   : > { %v3023_v28 = vmul.f32 %v3022_v46, %v3020_v32  ;;  %v3031_v31 = vmul.f32 %v3029_v39, %v3022_v46 }
 0xc94   : > { %v3021_v40 = vld [vmem:[#allocation2 + $0x8] sm:$0xff]  ;;  %v3030_v45 = vld [vmem:[#allocation3 + $0x8] sm:$0xff] }
 0xc95   : > { %v3024_v8 = vmul.f32 %v3022_v46, %v3021_v40  ;;  %v3025_v47 = vsub.f32 %v4967_v51, %v3023_v28  ;;  %v3032_v48 = vmul.f32 %v3030_v45, %v3022_v46  ;;  %v3033_v49 = vsub.f32 %v4977_v59, %v3031_v31 }
 0xc97   : > { %v3026_v50 = vsub.f32 %v4972_v57, %v3024_v8  ;;  %3027 = vst.msk [vmem:[%s465_s26] sm:$0xff] %vm473_vm0, %v3025_v47  ;;  %v3034_v52 = vsub.f32 %v4982_v6, %v3032_v48  ;;  %3334 = vst.msk [vmem:[%s465_s26 + $0x10] sm:$0xff] %vm473_vm0, %v3033_v49 }
 0xc99   : > { %3028 = vst.msk [vmem:[%s465_s26 + $0x8] sm:$0xff] %vm473_vm0, %v3026_v50  ;;  %3335 = vst.msk [vmem:[%s465_s26 + $0x18] sm:$0xff] %vm473_vm0, %v3034_v52 }
 0xc9a   : > { %4123 = shalt.err (!%p4120_p0)
}
 0xc9b   : > { %s4124_s15 = scalar_lea.hbm %s5109_s17, 512  ;;  %s4128_s16 = scalar_lea.hbm %s5241_s8, 1024 }
 0xc9c   : > { %p4125_p9 = scmp.ne.s32.totalorder %s5109_s17, %s4124_s15  ;;  %p4129_p7 = scmp.lt.u32.totalorder %s5109_s17, %s5241_s8 }
 0xc9d   : > { %p4130_p2 = scmp.lt.u32.totalorder %s4128_s16, %s4124_s15  ;;  %p4132_p6 = scmp.lt.u32.totalorder %s4124_s15, %s5109_s17 }
 0xc9e   : > { %p4126_p1 = pnand %p4125_p9, %p5242_p11 }
 0xc9f   : > { %p4131_p13 = por %p4130_p2, %p4129_p7 }
 0xca0   : > { %p4127_p10 = pneg %p4126_p1 }
 0xca1   : > { %p4133_p8 = por %p4132_p6, %p4131_p13 }
 0xca3   : > { %p4134_p5 = pnand %p4133_p8, %p4127_p10 }
 0xca5   : > { %4137 = shalt.err (!%p4134_p5)
}
 0xca6   : > { %s4223_s28 = smov 128   ;;  %s4224_s29 = smov 8  }
 0xca7   : > { %3828 = dma.vmem_to_hbm [thread:$0]  (%p5242_p11), %s5111_s11, 512, %s5109_s17, %s3039_s24, %s4223_s28, %s4223_s28, %s4224_s29  }
 0xca8 PF: > { %s5243_s12 = sld [smem:[#allocation23_spill]]  ;;  %s5244_s13 = sld [smem:[#allocation28_spill]] }
 0xca9   : > { %p5246_p12 = scmp.ge.s32.totalorder %s4208_s0, 2 }
 0xcae   : > { %s3067_s21 = sand.u32 1, %s5243_s12   ;;  %p5245_p3 = scmp.ne.s32.totalorder %s5244_s13, 0 }
 0xcaf   : > { %s3068_s26 = scalar_lea.sflag [#allocation7], %s3067_s21 }
 0xcb0   : > { %p3851_p4 = pnand %p5246_p12, %p5245_p3 }
 0xcb2   : > { %4183 = dma.done.wait (!%p3851_p4), %s3068_s26, 512  }
 0xcb3   : > { %4185 = vsyncadd (!%p3851_p4), %s3068_s26, 4294966784  ;;  %s31_s0 = sadd.s32 1, %s4208_s0   ;;  %s5247_s18 = sld [smem:[#allocation24_spill]] }
 0xcb4   : > { %p28_p0 = scmp.ge.s32.totalorder %s31_s0, 4   ;;  %s5248_s28 = sld [smem:[#allocation30_spill]] }
 0xcb5   : > { %s5249_s10 = sld [smem:[#allocation29_spill]]  ;;  %s5250_s26 = smov %s4192_s27 }
 0xcb6   : > { %s5252_s29 = smov %s4204_s30  ;;  %30 = sbr.rel (!%p28_p0) target bundleno = 16 (0x10), region = 166 }
 0xcb9   : > { %s5251_s27 = smov %s5247_s18 }
 0xcbb   : > { %s5253_s30 = smov %s5249_s10 }
 0xcbd   :  { %3073 = vsyncpa [#allocation6], 1 }
 0xcbe   :  { %3075 = vsyncpa [#allocation6 + $0x1], 1 }
 0xcbf   :  { %3076 = vsyncpa [#allocation9], 1 }
 0xcc0   :  { %3078 = vsyncpa [#allocation9 + $0x1], 1 }
 0xcc1   :  { %3079 = vsyncpa [#allocation12], 1 }
 0xcc2   :  { %3081 = vsyncpa [#allocation12 + $0x1], 1 }
 0xcc3   :  { %3082 = vsyncpa [#allocation15], 1 }
 0xcc4   :  { %3083 = vsyncpa [#allocation7], 1 }
 0xcc5   :  { %3085 = vsyncpa [#allocation7 + $0x1], 1 }

// kernel: tpu_custom_call.1
= control target key start
LH: loop header
LB: loop body
LE: loop exit
PB: predicated region body
PF: predicated region fallthrough
CT: control target
= control target key end

     0   :  { %s5166_s0 = inlined_call_operand.<no memory space> [shape: f32[1], index: 0, kind: input, shape index: {}]   ;;  %s5167_s1 = inlined_call_operand.hbm [shape: f32[2,2,16,16], index: 1, kind: input, shape index: {}]   ;;  %s5168_s2 = inlined_call_operand.hbm [shape: bf16[2,4,2,16,16], index: 2, kind: input, shape index: {}]   ;;  %s5169_s3 = inlined_call_operand.hbm [shape: bf16[2,16,16], index: 3, kind: input, shape index: {}]   ;;  %s5170_s4 = inlined_call_operand.hbm [shape: bf16[2,4,2,16,16], index: 4, kind: input, shape index: {}]   ;;  %s5171_s5 = inlined_call_operand.hbm [shape: bf16[3,16,16], index: 5, kind: input, shape index: {}]   ;;  %s5172_s6 = inlined_call_operand.hbm [shape: bf16[3,16,16], index: 6, kind: input, shape index: {}]   ;;  %s5173_s7 = inlined_call_operand.hbm [shape: f32[2,2,16,16], index: 7, kind: output, shape index: {}]  }
   0x1   :  { %5199 = sst [smem:[#allocation31_spill]] %s5168_s2 }
   0x2   :  { %5200 = sst [smem:[#allocation32_spill]] %s5171_s5 }
   0x3   :  { %5201 = sst [smem:[#allocation33_spill]] %s5173_s7 }
   0x4   :  { %12 = sst [smem:[#allocation4]] %s5166_s0 }
   0x5   :  { %13 = vsyncpa [#allocation6], 0 }
   0x6   :  { %15 = vsyncpa [#allocation6 + $0x1], 0 }
   0x7   :  { %16 = vsyncpa [#allocation9], 0 }
   0x8   :  { %18 = vsyncpa [#allocation9 + $0x1], 0 }
   0x9   :  { %19 = vsyncpa [#allocation12], 0 }
   0xa   :  { %21 = vsyncpa [#allocation12 + $0x1], 0 }
   0xb   :  { %22 = vsyncpa [#allocation15], 0 }
   0xc   :  { %23 = vsyncpa [#allocation7], 0 }
   0xd   :  { %25 = vsyncpa [#allocation7 + $0x1], 0  ;;  %s4268_s26 = smov 0   ;;  %s4270_s27 = smov 0  }
   0xe   :  { %s4272_s28 = smov 0   ;;  %s4274_s29 = smov 0  }
   0xf   :  { %s4276_s30 = smov 0   ;;  %s4278_s0 = smov 0  }
  0x10 LB: > { %5202 = sst [smem:[#allocation23_spill]] %s4188_s26  ;;  %s4299_s8 = sadd.s32 4294967295, %s4208_s0   ;;  %s4208_s0 = sphi %s4278_s0, %s31_s0   ;;  %s4204_s30 = sphi %s4276_s30, %s5253_s30   ;;  %s4200_s29 = sphi %s4274_s29, %s5252_s29   ;;  %s4196_s28 = sphi %s4272_s28, %s5248_s28   ;;  %s4192_s27 = sphi %s4270_s27, %s5251_s27   ;;  %s4188_s26 = sphi %s4268_s26, %s5250_s26  }
  0x11   : > { %5203 = sst [smem:[#allocation24_spill]] %s4196_s28  ;;  %s3225_s9 = sadd.s32 4294967294, %s4208_s0  }
  0x12   : > { %5204 = sst [smem:[#allocation25_spill]] %s4200_s29  ;;  %p78_p0 = scmp.ne.s32.totalorder %s4196_s28, %s4192_s27 }
  0x13   : > { %5205 = sst [smem:[#allocation26_spill]] %s4299_s8  ;;  %p79_p1 = scmp.eq.s32.totalorder %s4208_s0, 0 }
  0x14   : > { %p84_p2 = scmp.ne.s32.totalorder %s4192_s27, %s4188_s26  ;;  %p5174_p3 = scmp.eq.s32.totalorder %s4299_s8, 0 }
  0x15   : > { %p232_p4 = scmp.eq.s32.totalorder %s4299_s8, 1  ;;  %p4310_p5 = por %p79_p1, %p78_p0 }
  0x16   : > { %p238_p6 = scmp.eq.s32.totalorder %s3225_s9, 1  ;;  %p4316_p7 = por %p5174_p3, %p84_p2 }
  0x17   : > { %p4320_p8 = por %p232_p4, %p78_p0  ;;  %p3226_p10 = scmp.ge.s32.totalorder %s4208_s0, 1 }
  0x18   : > { %s5207_s12 = scalar_select %p4316_p7, 1, 0 }
  0x19   : > { %s5208_s13 = scalar_select %p4320_p8, 1, 0 }
  0x1a   : > { %p4324_p9 = por %p238_p6, %p84_p2  ;;  %p245_p11 = scmp.lt.s32.totalorder %s4208_s0, 3 }
  0x1b   : > { %5209 = sst [smem:[#allocation27_spill]] %s5208_s13  ;;  %s4210_s16 = smov [#allocation13]  }
  0x1c   : > { %s5210_s14 = scalar_select %p4324_p9, 1, 0 }
  0x1d   : > { %p4330_p12 = pnand %p3226_p10, %p245_p11  ;;  %s260_s17 = sshll.u32 %s4210_s16, 4  ;;  %s4334_s17 = int_to_ptr.vmem [resolvable:$true] %s260_s17 }
  0x1e   : > { %5211 = sst [smem:[#allocation28_spill]] %s5210_s14  ;;  %s43_s19 = sadd.s32 1, %s4204_s30 }
  0x1f   : > { %s5212_s15 = scalar_select %p4330_p12, 1, 0 }
  0x20   : > { %p3830_p13 = pneg %p4330_p12  ;;  %s4348_s20 = sand.u32 1, %s4196_s28  }
  0x21   : > { %p4350_p4 = scmp.ge.s32.totalorder %s43_s19, 2  ;;  %s5215_s5 = sld [smem:[#allocation32_spill]] }
  0x22   : > { %p4342_p2 = pnand %p3830_p13, %p5174_p3 }
  0x24   : > { %s5213_s18 = scalar_select %p4342_p2, 1, 0 }
  0x25   : > { %p5188_p10 = pneg %p4342_p2 }
  0x27   : > { %s3934_s24 = scalar_lea.hbm %s5215_s5, 384 }
  0x28   : > { %p3935_p6 = scmp.ne.s32.totalorder %s5215_s5, %s3934_s24  ;;  %p3941_p0 = scmp.lt.u32.totalorder %s3934_s24, %s5215_s5 }
  0x2a   : > { %p3937_p11 = pnand %p5188_p10, %p3935_p6 }
  0x2c   : > { %p3938_p13 = pneg %p3937_p11 }
  0x2e   : > { %p3943_p3 = pnand %p3941_p0, %p3938_p13 }
  0x30   : > { %3946 = shalt.err (!%p3943_p3)
}
  0x31   : > { %s3947_s22 = scalar_lea.vmem %s4334_s17, 384  ;;  %p3955_p7 = scmp.lt.s32.totalorder %s4334_s17, %s4334_s17 }
  0x32   : > { %p3948_p1 = scmp.ne.s32.totalorder %s4334_s17, %s3947_s22  ;;  %p3956_p6 = scmp.lt.s32.totalorder %s3947_s22, %s3947_s22 }
  0x34   : > { %p3950_p9 = pnand %p3948_p1, %p5188_p10  ;;  %p3957_p11 = por %p3956_p6, %p3955_p7 }
  0x36   : > { %p3951_p8 = pneg %p3950_p9 }
  0x38   : > { %p3958_p12 = pnand %p3957_p11, %p3951_p8 }
  0x3a   : > { %3961 = shalt.err (!%p3958_p12)
}
  0x3b   : > { %s5183_s10 = smov 64   ;;  %s4212_s23 = smov 4  }
  0x3c   : > { %3833 = dma.hbm_to_vmem [thread:$0]  (!%p4342_p2), %s5215_s5, 384, %s4334_s17, [#allocation12], %s5183_s10, %s5183_s10, %s4212_s23  }
  0x3d   : > { %s5255_s19 = smov (%p4350_p4, %s43_s19), 0  ;;  %p5217_p3 = scmp.lt.s32.totalorder %s4208_s0, 2 }
  0x3e   : > { %5216 = sst [smem:[#allocation29_spill]] %s5255_s19  ;;  %s5187_s16 = sand.u32 1, %s4208_s0  }
  0x3f   : > { %p4392_p7 = pnand %p5217_p3, %p4310_p5  ;;  %s68_s22 = ssub.s32 %s4204_s30, %s5255_s19 }
  0x40   : > { %p69_p8 = scmp.eq.s32.totalorder %s68_s22, 0  ;;  %s5185_s14 = sshll.u32 %s4348_s20, 6 }
  0x41   : > { %s5218_s9 = scalar_select %p4392_p7, 1, 0 }
  0x42   : > { %s5186_s26 = sshll.u32 %s4204_s30, 10  ;;  %s5219_s7 = sadd.s32 1, %s4196_s28 }
  0x43   : > { %s4404_s13 = scalar_select %p69_p8, %s4196_s28, %s5219_s7  }
  0x44   : > { %s5221_s2 = sld [smem:[#allocation31_spill]]  ;;  %s312_s24 = scalar_lea.vmem [#allocation8], %s5185_s14 }
  0x45   : > { %5220 = sst [smem:[#allocation30_spill]] %s4404_s13  ;;  %s322_s25 = sshll.u32 %s312_s24, 4  ;;  %s4415_s25 = int_to_ptr.vmem [resolvable:$true] %s322_s25 }
  0x46   : > { %s4419_s22 = scalar_lea.sflag [#allocation9], %s5187_s16  ;;  %p4425_p9 = pneg %p4392_p7 }
  0x48   : > { %s5222_s10 = scalar_select %p4425_p9, 1, 0 }
  0x4a   : > { %s4411_s11 = scalar_lea.hbm %s5221_s2, %s5186_s26  ;;  %s3967_s24 = scalar_lea.hbm %s5221_s2, 2048 }
  0x4b   : > { %s3962_s7 = scalar_lea.hbm %s4411_s11, 1024  ;;  %p3968_p1 = scmp.lt.u32.totalorder %s4411_s11, %s5221_s2 }
  0x4c   : > { %p3963_p5 = scmp.ne.s32.totalorder %s4411_s11, %s3962_s7  ;;  %p3969_p4 = scmp.lt.u32.totalorder %s3967_s24, %s3962_s7 }
  0x4d   : > { %p3971_p6 = scmp.lt.u32.totalorder %s3962_s7, %s4411_s11 }
  0x4e   : > { %p3965_p12 = pnand %p4425_p9, %p3963_p5  ;;  %p3970_p13 = por %p3969_p4, %p3968_p1 }
  0x50   : > { %p3966_p0 = pneg %p3965_p12  ;;  %p3972_p11 = por %p3971_p6, %p3970_p13 }
  0x52   : > { %p3973_p3 = pnand %p3972_p11, %p3966_p0 }
  0x54   : > { %3976 = shalt.err (!%p3973_p3)
}
  0x55   : > { %s3977_s16 = scalar_lea.vmem %s4415_s25, 1024  ;;  %s4213_s17 = smov [#allocation8]  }
  0x56   : > { %p3978_p8 = scmp.ne.s32.totalorder %s4415_s25, %s3977_s16  ;;  %s3982_s21 = sshll.u32 %s4213_s17, 4  ;;  %s3983_s21 = int_to_ptr.vmem [resolvable:$false] %s3982_s21 }
  0x57   : > { %s3984_s26 = scalar_lea.vmem %s3983_s21, 2048  ;;  %p3985_p10 = scmp.lt.s32.totalorder %s4415_s25, %s3983_s21 }
  0x58   : > { %p3980_p5 = pnand %p3978_p8, %p4425_p9  ;;  %p3986_p2 = scmp.lt.s32.totalorder %s3984_s26, %s3977_s16 }
  0x5a   : > { %p3981_p12 = pneg %p3980_p5  ;;  %p3987_p1 = por %p3986_p2, %p3985_p10 }
  0x5c   : > { %p3988_p4 = pnand %p3987_p1, %p3981_p12 }
  0x5e   : > { %3991 = shalt.err (!%p3988_p4)
}
  0x5f   : > { %s5223_s14 = smov 64   ;;  %s5224_s7 = sshll.u32 %s4204_s30, 10 }
  0x60   : > { %3843 = dma.hbm_to_vmem [thread:$0]  (!%p4392_p7), %s4411_s11, 1024, %s4415_s25, %s4419_s22, %s5223_s14, %s5223_s14, %s4212_s23  }
  0x61   : > { %s4457_s16 = scalar_lea.hbm %s5170_s4, %s5224_s7  ;;  %s5225_s21 = sshll.u32 %s4348_s20, 6 }
  0x62   : > { %s357_s26 = scalar_lea.vmem [#allocation11], %s5225_s21  ;;  %s4214_s5 = smov [#allocation14]  }
  0x63   : > { %s367_s2 = sshll.u32 %s357_s26, 4  ;;  %s273_s19 = sshll.u32 %s4214_s5, 4  ;;  %s4461_s2 = int_to_ptr.vmem [resolvable:$true] %s367_s2  ;;  %s274_s19 = int_to_ptr.vmem [resolvable:$true] %s273_s19 }
  0x64   : > { %s3230_s13 = sshll.u32 %s4348_s20, 5  ;;  %s3992_s8 = scalar_lea.hbm %s5172_s6, 384 }
  0x65   : > { %p3993_p2 = scmp.ne.s32.totalorder %s5172_s6, %s3992_s8  ;;  %p5226_p10 = scmp.ne.s32.totalorder %s5213_s18, 0 }
  0x66   : > { %p3999_p11 = scmp.lt.u32.totalorder %s3992_s8, %s5172_s6 }
  0x67   : > { %p5227_p0 = pneg %p5226_p10 }
  0x69   : > { %p3995_p13 = pnand %p3993_p2, %p5227_p0 }
  0x6b   : > { %p3996_p6 = pneg %p3995_p13 }
  0x6d   : > { %p4001_p3 = pnand %p3999_p11, %p3996_p6 }
  0x6f   : > { %4004 = shalt.err (!%p4001_p3)
}
  0x70   : > { %s4005_s5 = scalar_lea.vmem %s274_s19, 384  ;;  %p5228_p5 = pmov %p5227_p0 }
  0x71   : > { %p4006_p8 = scmp.ne.s32.totalorder %s274_s19, %s4005_s5  ;;  %p4013_p4 = scmp.lt.s32.totalorder %s274_s19, %s274_s19 }
  0x72   : > { %p4014_p7 = scmp.lt.s32.totalorder %s4005_s5, %s4005_s5 }
  0x73   : > { %p4008_p12 = pnand %p4006_p8, %p5228_p5 }
  0x74   : > { %p4015_p9 = por %p4014_p7, %p4013_p4 }
  0x75   : > { %p4009_p1 = pneg %p4008_p12 }
  0x77   : > { %p4016_p0 = pnand %p4015_p9, %p4009_p1 }
  0x79   : > { %4019 = shalt.err (!%p4016_p0)
}
  0x7a   : > { %3836 = dma.hbm_to_vmem [thread:$0]  (!%p5226_p10), %s5172_s6, 384, %s274_s19, [#allocation15], %s5223_s14, %s5223_s14, %s4212_s23  }
  0x7b   : > { %s3341_s8 = sshll.u32 %s4204_s30, 9  ;;  %s291_s18 = scalar_lea.vmem [#allocation5], %s3230_s13 }
  0x7c   : > { %s4491_s26 = scalar_lea.hbm %s5167_s1, %s3341_s8  ;;  %s298_s11 = sshll.u32 %s291_s18, 4  ;;  %s4493_s11 = int_to_ptr.vmem [resolvable:$true] %s298_s11 }
  0x7d   : > { %s3236_s25 = sshll.u32 %s4348_s20, 3  ;;  %s288_s7 = scalar_lea.sflag [#allocation6], %s4348_s20 }
  0x7e   : > { %s4020_s24 = scalar_lea.hbm %s4491_s26, 512  ;;  %p5229_p9 = scmp.ne.s32.totalorder %s5222_s10, 0 }
  0x7f   : > { %p4021_p7 = scmp.ne.s32.totalorder %s4491_s26, %s4020_s24  ;;  %s4025_s28 = scalar_lea.hbm %s5167_s1, 1024 }
  0x80   : > { %p4026_p13 = scmp.lt.u32.totalorder %s4491_s26, %s5167_s1  ;;  %p4027_p6 = scmp.lt.u32.totalorder %s4025_s28, %s4020_s24 }
  0x81   : > { %p4023_p2 = pnand %p4021_p7, %p5229_p9  ;;  %p4029_p3 = scmp.lt.u32.totalorder %s4020_s24, %s4491_s26 }
  0x82   : > { %p4028_p11 = por %p4027_p6, %p4026_p13 }
  0x83   : > { %p4024_p10 = pneg %p4023_p2 }
  0x84   : > { %p4030_p8 = por %p4029_p3, %p4028_p11 }
  0x86   : > { %p4031_p5 = pnand %p4030_p8, %p4024_p10 }
  0x88   : > { %4034 = shalt.err (!%p4031_p5)
}
  0x89   : > { %s4035_s13 = scalar_lea.vmem %s4493_s11, 512  ;;  %s4215_s17 = smov [#allocation5]  }
  0x8a   : > { %p4036_p12 = scmp.ne.s32.totalorder %s4493_s11, %s4035_s13  ;;  %s4040_s21 = sshll.u32 %s4215_s17, 4  ;;  %s4041_s21 = int_to_ptr.vmem [resolvable:$false] %s4040_s21 }
  0x8b   : > { %s4042_s18 = scalar_lea.vmem %s4041_s21, 1024  ;;  %p4043_p0 = scmp.lt.s32.totalorder %s4493_s11, %s4041_s21 }
  0x8c   : > { %p4038_p1 = pnand %p4036_p12, %p5229_p9  ;;  %p4044_p7 = scmp.lt.s32.totalorder %s4042_s18, %s4035_s13 }
  0x8e   : > { %p4039_p4 = pneg %p4038_p1  ;;  %p4045_p2 = por %p4044_p7, %p4043_p0 }
  0x90   : > { %p4046_p13 = pnand %p4045_p2, %p4039_p4 }
  0x92   : > { %4049 = shalt.err (!%p4046_p13)
}
  0x93   : > { %s4216_s24 = smov 128   ;;  %s4217_s19 = smov 8  }
  0x94   : > { %p5230_p10 = scmp.ne.s32.totalorder %s5218_s9, 0  ;;  %s3343_s5 = sshll.u32 %s4204_s30, 7 }
  0x95   : > { %s4524_s8 = scalar_lea.hbm %s5169_s3, %s3343_s5  ;;  %s336_s13 = scalar_lea.vmem [#allocation10], %s3236_s25 }
  0x96   : > { %3840 = dma.hbm_to_vmem [thread:$0]  (!%p5230_p10), %s4491_s26, 512, %s4493_s11, %s288_s7, %s4216_s24, %s4216_s24, %s4217_s19  }
  0x97   : > { %s343_s17 = sshll.u32 %s336_s13, 4  ;;  %s4050_s21 = scalar_lea.hbm %s4524_s8, 128  ;;  %s4528_s17 = int_to_ptr.vmem [resolvable:$true] %s343_s17 }
  0x98   : > { %p4051_p6 = scmp.ne.s32.totalorder %s4524_s8, %s4050_s21  ;;  %s4055_s7 = scalar_lea.hbm %s5169_s3, 256 }
  0x99   : > { %p4056_p8 = scmp.lt.u32.totalorder %s4524_s8, %s5169_s3  ;;  %p4057_p5 = scmp.lt.u32.totalorder %s4055_s7, %s4050_s21 }
  0x9a   : > { %p4053_p11 = pnand %p4051_p6, %p5229_p9  ;;  %p4059_p1 = scmp.lt.u32.totalorder %s4050_s21, %s4524_s8 }
  0x9b   : > { %p4058_p12 = por %p4057_p5, %p4056_p8 }
  0x9c   : > { %p4054_p3 = pneg %p4053_p11 }
  0x9d   : > { %p4060_p4 = por %p4059_p1, %p4058_p12 }
  0x9f   : > { %p4061_p0 = pnand %p4060_p4, %p4054_p3 }
  0xa1   : > { %4064 = shalt.err (!%p4061_p0)
}
  0xa2   : > { %s4065_s20 = scalar_lea.vmem %s4528_s17, 128  ;;  %s4218_s25 = smov [#allocation10]  }
  0xa3   : > { %p4066_p7 = scmp.ne.s32.totalorder %s4528_s17, %s4065_s20  ;;  %s4070_s19 = sshll.u32 %s4218_s25, 4  ;;  %s4071_s19 = int_to_ptr.vmem [resolvable:$false] %s4070_s19 }
  0xa4   : > { %s4072_s5 = scalar_lea.vmem %s4071_s19, 256  ;;  %p4073_p6 = scmp.lt.s32.totalorder %s4528_s17, %s4071_s19 }
  0xa5   : > { %p4068_p2 = pnand %p4066_p7, %p5229_p9  ;;  %p4074_p11 = scmp.lt.s32.totalorder %s4072_s5, %s4065_s20 }
  0xa7   : > { %p4069_p13 = pneg %p4068_p2  ;;  %p4075_p8 = por %p4074_p11, %p4073_p6 }
  0xa9   : > { %p4076_p5 = pnand %p4075_p8, %p4069_p13 }
  0xab   : > { %4079 = shalt.err (!%p4076_p5)
}
  0xac   : > { %3846 = dma.hbm_to_vmem [thread:$0]  (!%p5230_p10), %s4524_s8, 128, %s4528_s17, %s4419_s22, %s5223_s14, %s5223_s14, %s4212_s23  }
  0xad   : > { %s5231_s28 = sand.u32 1, %s4208_s0   ;;  %s4080_s13 = scalar_lea.hbm %s4457_s16, 1024 }
  0xae   : > { %s4557_s29 = scalar_lea.sflag [#allocation12], %s5231_s28  ;;  %p4081_p3 = scmp.ne.s32.totalorder %s4457_s16, %s4080_s13 }
  0xaf   : > { %s4085_s11 = scalar_lea.hbm %s5170_s4, 2048  ;;  %p4086_p4 = scmp.lt.u32.totalorder %s4457_s16, %s5170_s4 }
  0xb0   : > { %p4083_p12 = pnand %p4081_p3, %p5229_p9  ;;  %p4087_p0 = scmp.lt.u32.totalorder %s4085_s11, %s4080_s13 }
  0xb1   : > { %p4089_p2 = scmp.lt.u32.totalorder %s4080_s13, %s4457_s16 }
  0xb2   : > { %p4084_p1 = pneg %p4083_p12  ;;  %p4088_p7 = por %p4087_p0, %p4086_p4 }
  0xb4   : > { %p4090_p13 = por %p4089_p2, %p4088_p7 }
  0xb6   : > { %p4091_p6 = pnand %p4090_p13, %p4084_p1 }
  0xb8   : > { %4094 = shalt.err (!%p4091_p6)
}
  0xb9   : > { %s4095_s22 = scalar_lea.vmem %s4461_s2, 1024  ;;  %s4219_s8 = smov [#allocation11]  }
  0xba   : > { %p4096_p11 = scmp.ne.s32.totalorder %s4461_s2, %s4095_s22  ;;  %s4100_s17 = sshll.u32 %s4219_s8, 4  ;;  %s4101_s17 = int_to_ptr.vmem [resolvable:$false] %s4100_s17 }
  0xbb   : > { %s4102_s24 = scalar_lea.vmem %s4101_s17, 2048  ;;  %p4103_p3 = scmp.lt.s32.totalorder %s4461_s2, %s4101_s17 }
  0xbc   : > { %p4098_p8 = pnand %p4096_p11, %p5229_p9  ;;  %p4104_p12 = scmp.lt.s32.totalorder %s4102_s24, %s4095_s22 }
  0xbe   : > { %p4099_p5 = pneg %p4098_p8  ;;  %p4105_p4 = por %p4104_p12, %p4103_p3 }
  0xc0   : > { %p4106_p0 = pnand %p4105_p4, %p4099_p5 }
  0xc2   : > { %4109 = shalt.err (!%p4106_p0)
}
  0xc3   : > { %3849 = dma.hbm_to_vmem [thread:$0]  (!%p5230_p10), %s4457_s16, 1024, %s4461_s2, %s4557_s29, %s5223_s14, %s5223_s14, %s4212_s23  }
  0xc4   : > { %p5232_p9 = scmp.ne.s32.totalorder %s5212_s15, 0 }
  0xc5   : > { %s4587_s10 = sand.u32 (!%p5232_p9), 1, %s4192_s27   ;;  %p5233_p1 = scmp.ne.s32.totalorder (!%p5232_p9), %s5207_s12, 0 }
  0xc6   : > { %379 = sbr.rel (%p5232_p9) target bundleno = 3240 (0xca8), region = 48  ;;  %s3243_s20 = sshll.u32 (!%p5232_p9), %s4587_s10, 5 }
  0xc7   : > { %s382_s25 = scalar_lea.sflag (!%p5232_p9), [#allocation6], %s4587_s10  ;;  %s4593_s9 = scalar_lea.vmem (!%p5232_p9), [#allocation5], %s3243_s20 }
  0xcd   : > { %4163 = dma.done.wait (%p5233_p1), %s382_s25, 512  }
  0xce   : > { %4165 = vsyncadd (%p5233_p1), %s382_s25, 4294966784  ;;  %s5234_s2 = sld [smem:[#allocation26_spill]]  ;;  %s3244_s23 = sshll.u32 %s4587_s10, 6 }
  0xcf   : > { %s4601_s16 = scalar_lea.vmem [#allocation8], %s3244_s23 }
  0xd4   : > { %s390_s15 = sand.u32 1, %s5234_s2  }
  0xd5   : > { %s391_s14 = scalar_lea.sflag [#allocation9], %s390_s15 }
  0xd6   : > { %4167 = dma.done.wait (%p5233_p1), %s391_s14, 1152  }
  0xd7   : > { %4169 = vsyncadd (%p5233_p1), %s391_s14, 4294966144  ;;  %s3245_s19 = sshll.u32 %s4587_s10, 3  ;;  %s409_s28 = scalar_lea.sflag [#allocation12], %s390_s15 }
  0xd8   : > { %s4608_s5 = scalar_lea.vmem [#allocation10], %s3245_s19  ;;  %s4610_s29 = scalar_lea.vmem [#allocation11], %s3244_s23 }
  0xd9   : > { %4171 = dma.done.wait (%p5233_p1), %s409_s28, 1024  }
  0xda   : > { %4173 = vsyncadd (%p5233_p1), %s409_s28, 4294966272  ;;  %p5235_p10 = scmp.eq.s32.totalorder %s5234_s2, 0 }
  0xdc   : > { %4175 = dma.done.wait (%p5235_p10), [#allocation12], 384   ;;  %p5236_p7 = pmov %p5235_p10 }
  0xde   : > { %4177 = vsyncadd (%p5236_p7), [#allocation12], 4294966912  ;;  %p5237_p2 = pmov %p5236_p7 }
  0xe0   : > { %4179 = dma.done.wait (%p5237_p2), [#allocation15], 384   ;;  %p5238_p13 = pmov %p5237_p2 }
  0xe1   : > { %vm473_vm0 = vcmask 130048   ;;  %v4220_v0 = vmov 0.0   ;;  %vm4221_vm1 = vmmov 0   ;;  %v4639_v1 = vld [vmem:[%s4593_s9] sm:$0xff]  ;;  %v4642_v2 = vld [vmem:[%s4593_s9 + $0x8] sm:$0xff]  ;;  %v4645_v3 = vld [vmem:[%s4593_s9 + $0x10] sm:$0xff] }
  0xe2   : > { %4181 = vsyncadd (%p5238_p13), [#allocation15], 4294966912  ;;  %3524 = vmatprep.subr.bf16.mxu0 %v4220_v0  ;;  %3530 = vmatprep.subr.bf16.mxu1 %v4220_v0  ;;  %474 = vst.msk [vmem:[#allocation2] sm:$0xff] %vm473_vm0, %v4220_v0  ;;  %v4648_v4 = vld [vmem:[%s4593_s9 + $0x18] sm:$0xff]  ;;  %v3351_v5 = vld [vmem:[%s4610_s29] sm:$0xff]   ;;  %s3019_s12 = sld [smem:[#allocation4]] }
  0xe3   : > { %475 = vst.msk [vmem:[#allocation2 + $0x8] sm:$0xff] %vm473_vm0, %v4220_v0  ;;  %476 = vst.msk [vmem:[#allocation3] sm:$0xff] %vm473_vm0, %v4220_v0  ;;  %3526 = vmatprep.mubr.msk.bf16.mxu0 %vm4221_vm1, %v4220_v0  ;;  %3532 = vmatprep.mubr.msk.bf16.mxu1 %vm4221_vm1, %v4220_v0  ;;  %v3414_v6 = vld [vmem:[%s4610_s29 + $0x8] sm:$0xff]   ;;  %v4652_v7 = vunpack.c.l.bf16 %v3351_v5  ;;  %v4654_v8 = vunpack.c.h.bf16 %v3351_v5  ;;  %v4676_v27 = vld [vmem:[#allocation13] sm:$0xff]   ;;  %s5239_s13 = sld [smem:[#allocation25_spill]]  ;;  %s465_s26 = scalar_lea.vmem [#allocation16], %s3243_s20 }
  0xe4   : > { %477 = vst.msk [vmem:[#allocation3 + $0x8] sm:$0xff] %vm473_vm0, %v4220_v0  ;;  %v4656_v9 = vunpack.c.l.bf16 %v3414_v6  ;;  %v4658_v10 = vunpack.c.h.bf16 %v3414_v6  ;;  %v4678_v28 = vld [vmem:[#allocation13 + $0x8] sm:$0xff]   ;;  %v4691_v30 = vld [vmem:[#allocation13 + $0x10] sm:$0xff]   ;;  %v4697_v31 = vld [vmem:[#allocation14] sm:$0xff]   ;;  %s3052_s11 = sshll.u32 %s465_s26, 4  ;;  %s5240_s7 = sld [smem:[#allocation27_spill]]  ;;  %s5111_s11 = int_to_ptr.vmem [resolvable:$true] %s3052_s11 }
  0xe5   : > { %v521_v11 = vmul.f32 %v4652_v7, %v4639_v1  ;;  %v522_v12 = vmul.f32 %v4654_v8, %v4642_v2  ;;  %v527_v15 = vmul.f32 %v4652_v7, %v4645_v3  ;;  %v528_v16 = vmul.f32 %v4654_v8, %v4648_v4  ;;  %v4701_v32 = vld [vmem:[#allocation14 + $0x8] sm:$0xff]   ;;  %v4705_v43 = vld [vmem:[#allocation14 + $0x10] sm:$0xff]   ;;  %v3359_v61 = vld [vmem:[%s4601_s16] sm:$0xff]   ;;  %s5241_s8 = sld [smem:[#allocation33_spill]]  ;;  %s3039_s24 = scalar_lea.sflag [#allocation7], %s4587_s10 }
  0xe6   : > { %v523_v13 = vmul.f32 %v4656_v9, %v4645_v3  ;;  %v524_v14 = vmul.f32 %v4658_v10, %v4648_v4  ;;  %v529_v17 = vmul.f32 %v4656_v9, %v4639_v1  ;;  %v530_v18 = vmul.f32 %v4658_v10, %v4642_v2  ;;  %v3347_v62 = vld [vmem:[%s4608_s5] sm:$0xff]   ;;  %s4110_s20 = scalar_lea.vmem %s5111_s11, 512  ;;  %s4222_s25 = smov [#allocation16]  }
  0xe7   : > { %v3360_v63 = vunpack.c.l.bf16 %v3359_v61  ;;  %v3415_v6 = vld [vmem:[%s4601_s16 + $0x8] sm:$0xff]   ;;  %p4111_p6 = scmp.ne.s32.totalorder %s5111_s11, %s4110_s20 }
  0xe8   : > { %v525_v19 = vsub.f32 %v521_v11, %v523_v13  ;;  %v526_v20 = vsub.f32 %v522_v12, %v524_v14  ;;  %v531_v21 = vadd.f32 %v529_v17, %v527_v15  ;;  %v532_v22 = vadd.f32 %v530_v18, %v528_v16 }
  0xe9   : > { %v3361_v13 = vunpack.c.h.bf16 %v3359_v61  ;;  %v4721_v14 = vunpack.c.l.bf16 %v3347_v62  ;;  %v4723_v15 = vunpack.c.h.bf16 %v3347_v62  ;;  %s3345_s21 = sshll.u32 %s5239_s13, 9 }
  0xea   : > { %v533_v23 = vpack.c.bf16 %v526_v20, %v525_v19  ;;  %v534_v24 = vpack.c.bf16 %v532_v22, %v531_v21  ;;  %v535_v25 = vadd.f32 %v531_v21, %v525_v19  ;;  %v536_v26 = vadd.f32 %v532_v22, %v526_v20  ;;  %p5242_p11 = scmp.ne.s32.totalorder %s5240_s7, 0 }
  0xeb   : > { %v3364_v20 = vunpack.c.l.bf16 %v3415_v6  ;;  %s5109_s17 = scalar_lea.hbm %s5241_s8, %s3345_s21 }
  0xec   : > { %3525 = vmatpush3.bf16.msra.mxu0 %v533_v23  ;;  %3531 = vmatpush3.bf16.msra.mxu1 %v534_v24  ;;  %v537_v29 = vpack.c.bf16 %v536_v26, %v535_v25  ;;  %p4112_p8 = pnand %p4111_p6, %p5242_p11 }
  0xed   : > { %3536 = vmatprep.subr.bf16.mxu0 %v4220_v0  ;;  %3542 = vmatprep.subr.bf16.mxu1 %v4220_v0 }
  0xee   : > { %p4113_p5 = pneg %p4112_p8 }
  0xef   : > { %3527 = vmatmul.mubr.msk.bf16.vlgmr.msra.gmra.mrb[0].mxu0 %vm473_vm0, %v4676_v27  ;;  %3533 = vmatmul.mubr.msk.bf16.vlgmr.msra.gmra.mrb[0].mxu1 %vm473_vm0, %v4678_v28 }
  0xf0   : > { %3537 = vmatpush3.bf16.msra.mxu0 %v537_v29  ;;  %3538 = vmatprep.mubr.msk.bf16.mxu0 %vm4221_vm1, %v4220_v0  ;;  %v3365_v29 = vunpack.c.h.bf16 %v3415_v6 }
  0xf1   : > { %3544 = vmatprep.mubr.msk.bf16.mxu1 %vm4221_vm1, %v4220_v0  ;;  %3548 = vmatprep.subr.bf16.mxu0 %v4220_v0 }
  0xf2   : > { %3543 = vmatpush3.bf16.msra.mxu1 %v4697_v31 }
  0xf3   : > { %3554 = vmatprep.subr.bf16.mxu1 %v4220_v0 }
  0xf7   : > { %3539 = vmatmul.mubr.msk.bf16.vlgmr.msra.gmra.mrb[4].mxu0 %vm473_vm0, %v4691_v30 }
  0xf8   : > { %3550 = vmatprep.mubr.msk.bf16.mxu0 %vm4221_vm1, %v4220_v0  ;;  %3549 = vmatpush3.bf16.msra.mxu0 %v4701_v32 }
  0xf9   : > { %3560 = vmatprep.subr.bf16.mxu0 %v4220_v0 }
 0x1c2   : > { %v581_v33 = vpop.f32.mrb[0].mxu0  ;;  %v630_v34 = vpop.f32.mrb[0].mxu1 }
 0x1c3   : > { %v3528_v35 = vpop.f32.mrb[1].mxu0  ;;  %v686_v36 = vsub.f32 %v581_v33, %v630_v34  ;;  %v3534_v37 = vpop.f32.mrb[1].mxu1 }
 0x1c4   : > { %v584_v38 = vpop.f32.mrb[2].mxu0  ;;  %v633_v39 = vpop.f32.mrb[2].mxu1 }
 0x1c5   : > { %v3529_v40 = vpop.f32.mrb[3].mxu0  ;;  %v687_v41 = vsub.f32 %v584_v38, %v633_v39  ;;  %v3535_v42 = vpop.f32.mrb[3].mxu1 }
 0x1c7   : > { %v692_v44 = vpack.c.bf16 %v687_v41, %v686_v36 }
 0x1c9   : > { %3545 = vmatmul.mubr.msk.bf16.vlgmr.msra.gmra.mrb[4].mxu1 %vm473_vm0, %v692_v44 }
 0x1ca   : > { %v679_v45 = vpop.f32.mrb[4].mxu0  ;;  %3555 = vmatpush3.bf16.msra.mxu1 %v4705_v43  ;;  %3556 = vmatprep.mubr.msk.bf16.mxu1 %vm4221_vm1, %v4220_v0 }
 0x1cb   : > { %v688_v46 = vsub.f32 %v679_v45, %v581_v33  ;;  %v3540_v47 = vpop.f32.mrb[5].mxu0  ;;  %3566 = vmatprep.subr.bf16.mxu1 %v4220_v0 }
 0x1cc   : > { %v682_v48 = vpop.f32.mrb[6].mxu0 }
 0x1cd   : > { %v690_v49 = vsub.f32 %v688_v46, %v630_v34  ;;  %v689_v50 = vsub.f32 %v682_v48, %v584_v38  ;;  %v3541_v51 = vpop.f32.mrb[7].mxu0  ;;  %v3416_v48 = vld [vmem:[%s4610_s29 + $0x10] sm:$0xff]  }
 0x1cf   : > { %v794_v52 = vadd.f32 %v690_v49, %v686_v36  ;;  %v691_v53 = vsub.f32 %v689_v50, %v633_v39 }
 0x1d1   : > { %v743_v54 = vpack.c.bf16 %v691_v53, %v690_v49  ;;  %v795_v55 = vadd.f32 %v691_v53, %v687_v41  ;;  %v3417_v49 = vld [vmem:[%s4610_s29 + $0x18] sm:$0xff]   ;;  %v4750_v53 = vunpack.c.l.bf16 %v3416_v48 }
 0x1d3   : > { %v796_v56 = vpack.c.bf16 %v795_v55, %v794_v52  ;;  %3551 = vmatmul.mubr.msk.bf16.vlgmr.msra.gmra.mrb[8].mxu0 %vm473_vm0, %v743_v54  ;;  %v4752_v54 = vunpack.c.h.bf16 %v3416_v48  ;;  %v4754_v55 = vunpack.c.l.bf16 %v3417_v49  ;;  %v1182_v62 = vmul.f32 %v4750_v53, %v4639_v1 }
 0x1d4   : > { %3562 = vmatprep.mubr.msk.bf16.mxu0 %vm4221_vm1, %v4220_v0 }
 0x1d5   : > { %3557 = vmatmul.mubr.msk.bf16.vlgmr.msra.gmra.mrb[8].mxu1 %vm473_vm0, %v796_v56  ;;  %v4756_v56 = vunpack.c.h.bf16 %v3417_v49 }
 0x1d6   : > { %3568 = vmatprep.mubr.msk.bf16.mxu1 %vm4221_vm1, %v4220_v0 }
 0x1d7   : > { %v1185_v6 = vmul.f32 %v4756_v56, %v4648_v4 }
 0x29c   : > { %v736_v57 = vpop.f32.mrb[4].mxu1 }
 0x29d   : > { %v3546_v58 = vpop.f32.mrb[5].mxu1 }
 0x29e   : > { %v739_v59 = vpop.f32.mrb[6].mxu1 }
 0x29f   : > { %v3547_v60 = vpop.f32.mrb[7].mxu1 }
 0x2a6   : > { %v787_v5 = vpop.f32.mrb[8].mxu0 }
 0x2a7   : > { %v847_v11 = vsub.f32 %v736_v57, %v787_v5  ;;  %v3552_v12 = vpop.f32.mrb[9].mxu0 }
 0x2a8   : > { %v790_v16 = vpop.f32.mrb[10].mxu0  ;;  %v840_v17 = vpop.f32.mrb[8].mxu1 }
 0x2a9   : > { %v853_v18 = vsub.f32 %v847_v11, %v3360_v63  ;;  %v848_v19 = vsub.f32 %v739_v59, %v790_v16  ;;  %v849_v21 = vsub.f32 %v840_v17, %v736_v57  ;;  %v3553_v22 = vpop.f32.mrb[11].mxu0  ;;  %v3558_v23 = vpop.f32.mrb[9].mxu1  ;;  %v1183_v63 = vmul.f32 %v4752_v54, %v4642_v2 }
 0x2aa   : > { %v843_v24 = vpop.f32.mrb[10].mxu1  ;;  %v1189_v17 = vmul.f32 %v4752_v54, %v4648_v4 }
 0x2ab   : > { %v854_v25 = vsub.f32 %v848_v19, %v3361_v13  ;;  %v851_v26 = vsub.f32 %v849_v21, %v787_v5  ;;  %v850_v33 = vsub.f32 %v843_v24, %v739_v59  ;;  %v3559_v34 = vpop.f32.mrb[11].mxu1  ;;  %v855_v35 = vmul.f32 %v4721_v14, %v853_v18 }
 0x2ac   : > { %v1184_v5 = vmul.f32 %v4754_v55, %v4645_v3  ;;  %v1190_v18 = vmul.f32 %v4754_v55, %v4639_v1  ;;  %v1191_v19 = vmul.f32 %v4756_v56, %v4642_v2 }
 0x2ad   : > { %v856_v36 = vmul.f32 %v4723_v15, %v854_v25  ;;  %v857_v37 = vsub.f32 %v3364_v20, %v851_v26  ;;  %v852_v38 = vsub.f32 %v850_v33, %v790_v16  ;;  %v1188_v16 = vmul.f32 %v4750_v53, %v4645_v3 }
 0x2ae   : > { %v1186_v24 = vsub.f32 %v1182_v62, %v1184_v5  ;;  %v1187_v25 = vsub.f32 %v1183_v63, %v1185_v6 }
 0x2af   : > { %v859_v39 = vmul.f32 %v4721_v14, %v857_v37  ;;  %v858_v40 = vsub.f32 %v3365_v29, %v852_v38  ;;  %v861_v41 = vpack.c.bf16 %v856_v36, %v855_v35  ;;  %v1192_v34 = vadd.f32 %v1190_v18, %v1188_v16 }
 0x2b0   : > { %v1194_v38 = vpack.c.bf16 %v1187_v25, %v1186_v24 }
 0x2b1   : > { %v863_v42 = vadd.f32 %v859_v39, %v855_v35  ;;  %v860_v44 = vmul.f32 %v4723_v15, %v858_v40  ;;  %3561 = vmatpush3.bf16.msra.mxu0 %v861_v41  ;;  %v1193_v35 = vadd.f32 %v1191_v19, %v1189_v17 }
 0x2b2   : > { %3572 = vmatprep.subr.bf16.mxu0 %v4220_v0 }
 0x2b3   : > { %v864_v45 = vadd.f32 %v860_v44, %v856_v36  ;;  %v862_v46 = vpack.c.bf16 %v860_v44, %v859_v39  ;;  %v1195_v41 = vpack.c.bf16 %v1193_v35, %v1192_v34  ;;  %v1196_v44 = vadd.f32 %v1192_v34, %v1186_v24 }
 0x2b4   : > { %3563 = vmatmul.mubr.msk.bf16.vlgmr.msra.gmra.mrb[12].mxu0 %vm473_vm0, %v4676_v27 }
 0x2b5   : > { %3567 = vmatpush3.bf16.msra.mxu1 %v862_v46  ;;  %v865_v47 = vpack.c.bf16 %v864_v45, %v863_v42  ;;  %3574 = vmatprep.mubr.msk.bf16.mxu0 %vm4221_vm1, %v4220_v0  ;;  %v1197_v45 = vadd.f32 %v1193_v35, %v1187_v25  ;;  %v1139_v35 = vld [vmem:[#allocation2 + $0x8] sm:$0xff] }
 0x2b6   : > { %3578 = vmatprep.subr.bf16.mxu1 %v4220_v0 }
 0x2b7   : > { %3573 = vmatpush3.bf16.msra.mxu0 %v865_v47  ;;  %v1198_v46 = vpack.c.bf16 %v1197_v45, %v1196_v44 }
 0x2b8   : > { %3569 = vmatmul.mubr.msk.bf16.vlgmr.msra.gmra.mrb[12].mxu1 %vm473_vm0, %v4678_v28  ;;  %3584 = vmatprep.subr.bf16.mxu0 %v4220_v0 }
 0x2b9   : > { %3579 = vmatpush3.bf16.msra.mxu1 %v4697_v31  ;;  %3580 = vmatprep.mubr.msk.bf16.mxu1 %vm4221_vm1, %v4220_v0 }
 0x2ba   : > { %3590 = vmatprep.subr.bf16.mxu1 %v4220_v0 }
 0x2bc   : > { %3575 = vmatmul.mubr.msk.bf16.vlgmr.msra.gmra.mrb[16].mxu0 %vm473_vm0, %v4691_v30 }
 0x2bd   : > { %3585 = vmatpush3.bf16.msra.mxu0 %v4701_v32  ;;  %3586 = vmatprep.mubr.msk.bf16.mxu0 %vm4221_vm1, %v4220_v0 }
 0x2be   : > { %3596 = vmatprep.subr.bf16.mxu0 %v4220_v0 }
 0x387   : > { %v900_v50 = vpop.f32.mrb[12].mxu0 }
 0x388   : > { %v3564_v51 = vpop.f32.mrb[13].mxu0 }
 0x389   : > { %v903_v52 = vpop.f32.mrb[14].mxu0 }
 0x38a   : > { %v3565_v57 = vpop.f32.mrb[15].mxu0 }
 0x38b   : > { %v941_v58 = vpop.f32.mrb[12].mxu1 }
 0x38c   : > { %v989_v59 = vsub.f32 %v900_v50, %v941_v58  ;;  %v3570_v60 = vpop.f32.mrb[13].mxu1 }
 0x38d   : > { %v944_v61 = vpop.f32.mrb[14].mxu1 }
 0x38e   : > { %v990_v11 = vsub.f32 %v903_v52, %v944_v61  ;;  %v3571_v12 = vpop.f32.mrb[15].mxu1 }
 0x38f   : > { %v982_v13 = vpop.f32.mrb[16].mxu0 }
 0x390   : > { %v995_v20 = vpack.c.bf16 %v990_v11, %v989_v59  ;;  %v991_v21 = vsub.f32 %v982_v13, %v900_v50  ;;  %v3576_v22 = vpop.f32.mrb[17].mxu0 }
 0x391   : > { %v985_v23 = vpop.f32.mrb[18].mxu0  ;;  %v1138_v22 = vld [vmem:[#allocation2] sm:$0xff] }
 0x392   : > { %v993_v26 = vsub.f32 %v991_v21, %v941_v58  ;;  %v992_v29 = vsub.f32 %v985_v23, %v903_v52  ;;  %v3577_v33 = vpop.f32.mrb[19].mxu0  ;;  %3581 = vmatmul.mubr.msk.bf16.vlgmr.msra.gmra.mrb[16].mxu1 %vm473_vm0, %v995_v20  ;;  %v1150_v23 = vld [vmem:[#allocation3] sm:$0xff] }
 0x393   : > { %3591 = vmatpush3.bf16.msra.mxu1 %v4705_v43  ;;  %3592 = vmatprep.mubr.msk.bf16.mxu1 %vm4221_vm1, %v4220_v0 }
 0x394   : > { %v1085_v36 = vadd.f32 %v993_v26, %v989_v59  ;;  %v994_v37 = vsub.f32 %v992_v29, %v944_v61  ;;  %3602 = vmatprep.subr.bf16.mxu1 %v4220_v0 }
 0x396   : > { %v1040_v39 = vpack.c.bf16 %v994_v37, %v993_v26  ;;  %v1086_v40 = vadd.f32 %v994_v37, %v990_v11 }
 0x398   : > { %v1087_v42 = vpack.c.bf16 %v1086_v40, %v1085_v36  ;;  %3587 = vmatmul.mubr.msk.bf16.vlgmr.msra.gmra.mrb[20].mxu0 %vm473_vm0, %v1040_v39  ;;  %v1151_v36 = vld [vmem:[#allocation3 + $0x8] sm:$0xff] }
 0x399   : > { %3597 = vmatpush3.bf16.msra.mxu0 %v1194_v38  ;;  %3598 = vmatprep.mubr.msk.bf16.mxu0 %vm4221_vm1, %v4220_v0 }
 0x39a   : > { %3593 = vmatmul.mubr.msk.bf16.vlgmr.msra.gmra.mrb[20].mxu1 %vm473_vm0, %v1087_v42  ;;  %3608 = vmatprep.subr.bf16.mxu0 %v4220_v0 }
 0x39b   : > { %3603 = vmatpush3.bf16.msra.mxu1 %v1195_v41  ;;  %3604 = vmatprep.mubr.msk.bf16.mxu1 %vm4221_vm1, %v4220_v0 }
 0x39c   : > { %3614 = vmatprep.subr.bf16.mxu1 %v4220_v0 }
 0x3a0   : > { %3599 = vmatmul.mubr.msk.bf16.vlgmr.msra.gmra.mrb[24].mxu0 %vm473_vm0, %v4676_v27 }
 0x3a1   : > { %3609 = vmatpush3.bf16.msra.mxu0 %v1198_v46  ;;  %3610 = vmatprep.mubr.msk.bf16.mxu0 %vm4221_vm1, %v4220_v0 }
 0x3a2   : > { %3605 = vmatmul.mubr.msk.bf16.vlgmr.msra.gmra.mrb[24].mxu1 %vm473_vm0, %v4678_v28  ;;  %3620 = vmatprep.subr.bf16.mxu0 %v4220_v0 }
 0x3a3   : > { %3615 = vmatpush3.bf16.msra.mxu1 %v4697_v31  ;;  %3616 = vmatprep.mubr.msk.bf16.mxu1 %vm4221_vm1, %v4220_v0 }
 0x3a4   : > { %3626 = vmatprep.subr.bf16.mxu1 %v4220_v0 }
 0x3a8   : > { %3611 = vmatmul.mubr.msk.bf16.vlgmr.msra.gmra.mrb[28].mxu0 %vm473_vm0, %v4691_v30 }
 0x3a9   : > { %3621 = vmatpush3.bf16.msra.mxu0 %v4701_v32  ;;  %3622 = vmatprep.mubr.msk.bf16.mxu0 %vm4221_vm1, %v4220_v0 }
 0x3aa   : > { %3632 = vmatprep.subr.bf16.mxu0 %v4220_v0 }
 0x465   : > { %v1033_v47 = vpop.f32.mrb[16].mxu1 }
 0x466   : > { %v3582_v48 = vpop.f32.mrb[17].mxu1 }
 0x467   : > { %v1036_v49 = vpop.f32.mrb[18].mxu1 }
 0x468   : > { %v3583_v50 = vpop.f32.mrb[19].mxu1 }
 0x46b   : > { %v1078_v51 = vpop.f32.mrb[20].mxu0 }
 0x46c   : > { %v1132_v52 = vsub.f32 %v1033_v47, %v1078_v51  ;;  %v3588_v57 = vpop.f32.mrb[21].mxu0 }
 0x46d   : > { %v1081_v58 = vpop.f32.mrb[22].mxu0  ;;  %v1125_v59 = vpop.f32.mrb[20].mxu1 }
 0x46e   : > { %v1133_v60 = vsub.f32 %v1036_v49, %v1081_v58  ;;  %v1134_v61 = vsub.f32 %v1125_v59, %v1033_v47  ;;  %v3589_v62 = vpop.f32.mrb[23].mxu0  ;;  %v3594_v63 = vpop.f32.mrb[21].mxu1  ;;  %v1140_v13 = vmul.f32 %v4652_v7, %v1132_v52  ;;  %v1154_v16 = vmul.f32 %v4656_v9, %v1132_v52 }
 0x46f   : > { %v1128_v5 = vpop.f32.mrb[22].mxu1 }
 0x470   : > { %v1136_v6 = vsub.f32 %v1134_v61, %v1078_v51  ;;  %v1135_v11 = vsub.f32 %v1128_v5, %v1036_v49  ;;  %v3595_v12 = vpop.f32.mrb[23].mxu1  ;;  %v1141_v20 = vmul.f32 %v4654_v8, %v1133_v60  ;;  %v1155_v21 = vmul.f32 %v4658_v10, %v1133_v60 }
 0x472   : > { %v1142_v17 = vmul.f32 %v4656_v9, %v1136_v6  ;;  %v1152_v18 = vmul.f32 %v4652_v7, %v1136_v6  ;;  %v1137_v19 = vsub.f32 %v1135_v11, %v1081_v58 }
 0x473   : > { %v1233_v24 = vpop.f32.mrb[24].mxu0 }
 0x474   : > { %v1144_v25 = vsub.f32 %v1140_v13, %v1142_v17  ;;  %v1156_v26 = vadd.f32 %v1154_v16, %v1152_v18  ;;  %v1143_v29 = vmul.f32 %v4658_v10, %v1137_v19  ;;  %v1153_v33 = vmul.f32 %v4654_v8, %v1137_v19  ;;  %v3600_v34 = vpop.f32.mrb[25].mxu0  ;;  %v3418_v16 = vld [vmem:[%s4601_s16 + $0x10] sm:$0xff]   ;;  %v3419_v19 = vld [vmem:[%s4601_s16 + $0x18] sm:$0xff]  }
 0x475   : > { %v1236_v9 = vpop.f32.mrb[26].mxu0  ;;  %v1274_v37 = vpop.f32.mrb[24].mxu1  ;;  %v3376_v17 = vunpack.c.l.bf16 %v3418_v16 }
 0x476   : > { %v1146_v7 = vadd.f32 %v1144_v25, %v1138_v22  ;;  %v1158_v38 = vsub.f32 %v1150_v23, %v1156_v26  ;;  %v1145_v39 = vsub.f32 %v1141_v20, %v1143_v29  ;;  %v1157_v40 = vadd.f32 %v1155_v21, %v1153_v33  ;;  %v3601_v41 = vpop.f32.mrb[27].mxu0  ;;  %v3606_v42 = vpop.f32.mrb[25].mxu1 }
 0x477   : > { %v1322_v44 = vsub.f32 %v1233_v24, %v1274_v37  ;;  %v1277_v45 = vpop.f32.mrb[26].mxu1  ;;  %v3377_v22 = vunpack.c.h.bf16 %v3418_v16  ;;  %v3380_v29 = vunpack.c.l.bf16 %v3419_v19 }
 0x478   : > { %1148 = vst.msk [vmem:[#allocation2] sm:$0xff] %vm473_vm0, %v1146_v7  ;;  %1160 = vst.msk [vmem:[#allocation3] sm:$0xff] %vm473_vm0, %v1158_v38  ;;  %v1147_v10 = vadd.f32 %v1145_v39, %v1139_v35  ;;  %v1159_v46 = vsub.f32 %v1151_v36, %v1157_v40  ;;  %v1323_v8 = vsub.f32 %v1236_v9, %v1277_v45  ;;  %v3607_v47 = vpop.f32.mrb[27].mxu1  ;;  %v3381_v7 = vunpack.c.h.bf16 %v3419_v19 }
 0x47a   : > { %1149 = vst.msk [vmem:[#allocation2 + $0x8] sm:$0xff] %vm473_vm0, %v1147_v10  ;;  %1161 = vst.msk [vmem:[#allocation3 + $0x8] sm:$0xff] %vm473_vm0, %v1159_v46  ;;  %v1328_v48 = vpack.c.bf16 %v1323_v8, %v1322_v44 }
 0x47b   : > { %v1315_v49 = vpop.f32.mrb[28].mxu0 }
 0x47c   : > { %v1324_v50 = vsub.f32 %v1315_v49, %v1233_v24  ;;  %v3612_v51 = vpop.f32.mrb[29].mxu0  ;;  %3617 = vmatmul.mubr.msk.bf16.vlgmr.msra.gmra.mrb[28].mxu1 %vm473_vm0, %v1328_v48 }
 0x47d   : > { %v1318_v52 = vpop.f32.mrb[30].mxu0  ;;  %3627 = vmatpush3.bf16.msra.mxu1 %v4705_v43  ;;  %3628 = vmatprep.mubr.msk.bf16.mxu1 %vm4221_vm1, %v4220_v0  ;;  %v3420_v51 = vld [vmem:[%s4610_s29 + $0x20] sm:$0xff]  }
 0x47e   : > { %v1326_v57 = vsub.f32 %v1324_v50, %v1274_v37  ;;  %v1325_v58 = vsub.f32 %v1318_v52, %v1236_v9  ;;  %v3613_v59 = vpop.f32.mrb[31].mxu0  ;;  %3638 = vmatprep.subr.bf16.mxu1 %v4220_v0  ;;  %v3421_v52 = vld [vmem:[%s4610_s29 + $0x28] sm:$0xff]  }
 0x480   : > { %v1418_v60 = vadd.f32 %v1326_v57, %v1322_v44  ;;  %v1327_v61 = vsub.f32 %v1325_v58, %v1277_v45 }
 0x482   : > { %v1373_v62 = vpack.c.bf16 %v1327_v61, %v1326_v57  ;;  %v1419_v63 = vadd.f32 %v1327_v61, %v1323_v8  ;;  %v4856_v61 = vunpack.c.h.bf16 %v3420_v51 }
 0x484   : > { %v1420_v5 = vpack.c.bf16 %v1419_v63, %v1418_v60  ;;  %3623 = vmatmul.mubr.msk.bf16.vlgmr.msra.gmra.mrb[32].mxu0 %vm473_vm0, %v1373_v62  ;;  %v4854_v60 = vunpack.c.l.bf16 %v3420_v51  ;;  %v4858_v62 = vunpack.c.l.bf16 %v3421_v52  ;;  %v4860_v63 = vunpack.c.h.bf16 %v3421_v52 }
 0x485   : > { %3634 = vmatprep.mubr.msk.bf16.mxu0 %vm4221_vm1, %v4220_v0 }
 0x486   : > { %3629 = vmatmul.mubr.msk.bf16.vlgmr.msra.gmra.mrb[32].mxu1 %vm473_vm0, %v1420_v5  ;;  %v1800_v16 = vmul.f32 %v4854_v60, %v4639_v1  ;;  %v1803_v19 = vmul.f32 %v4860_v63, %v4648_v4 }
 0x487   : > { %3640 = vmatprep.mubr.msk.bf16.mxu1 %vm4221_vm1, %v4220_v0 }
 0x54f   : > { %v1366_v6 = vpop.f32.mrb[28].mxu1 }
 0x550   : > { %v3618_v11 = vpop.f32.mrb[29].mxu1 }
 0x551   : > { %v1369_v12 = vpop.f32.mrb[30].mxu1 }
 0x552   : > { %v3619_v13 = vpop.f32.mrb[31].mxu1 }
 0x557   : > { %v1411_v18 = vpop.f32.mrb[32].mxu0 }
 0x558   : > { %v1465_v20 = vsub.f32 %v1366_v6, %v1411_v18  ;;  %v3624_v21 = vpop.f32.mrb[33].mxu0 }
 0x559   : > { %v1414_v23 = vpop.f32.mrb[34].mxu0  ;;  %v1458_v24 = vpop.f32.mrb[32].mxu1 }
 0x55a   : > { %v1471_v25 = vsub.f32 %v1465_v20, %v3376_v17  ;;  %v1466_v26 = vsub.f32 %v1369_v12, %v1414_v23  ;;  %v1467_v33 = vsub.f32 %v1458_v24, %v1366_v6  ;;  %v3625_v34 = vpop.f32.mrb[35].mxu0  ;;  %v3630_v35 = vpop.f32.mrb[33].mxu1  ;;  %v1801_v17 = vmul.f32 %v4856_v61, %v4642_v2 }
 0x55b   : > { %v1461_v36 = vpop.f32.mrb[34].mxu1  ;;  %v1807_v24 = vmul.f32 %v4856_v61, %v4648_v4 }
 0x55c   : > { %v1472_v9 = vsub.f32 %v1466_v26, %v3377_v22  ;;  %v1469_v37 = vsub.f32 %v1467_v33, %v1411_v18  ;;  %v1468_v38 = vsub.f32 %v1461_v36, %v1369_v12  ;;  %v3631_v39 = vpop.f32.mrb[35].mxu1  ;;  %v1473_v40 = vmul.f32 %v4721_v14, %v1471_v25 }
 0x55d   : > { %v1802_v18 = vmul.f32 %v4858_v62, %v4645_v3  ;;  %v1808_v25 = vmul.f32 %v4858_v62, %v4639_v1  ;;  %v1809_v26 = vmul.f32 %v4860_v63, %v4642_v2 }
 0x55e   : > { %v1474_v41 = vmul.f32 %v4723_v15, %v1472_v9  ;;  %v1475_v42 = vsub.f32 %v3380_v29, %v1469_v37  ;;  %v1470_v44 = vsub.f32 %v1468_v38, %v1414_v23  ;;  %v1806_v23 = vmul.f32 %v4854_v60, %v4645_v3 }
 0x55f   : > { %v1804_v36 = vsub.f32 %v1800_v16, %v1802_v18  ;;  %v1805_v9 = vsub.f32 %v1801_v17, %v1803_v19  ;;  %v1811_v3 = vadd.f32 %v1809_v26, %v1807_v24 }
 0x560   : > { %v1477_v45 = vmul.f32 %v4721_v14, %v1475_v42  ;;  %v1476_v10 = vsub.f32 %v3381_v7, %v1470_v44  ;;  %v1479_v46 = vpack.c.bf16 %v1474_v41, %v1473_v40  ;;  %v1810_v1 = vadd.f32 %v1808_v25, %v1806_v23 }
 0x561   : > { %v1812_v39 = vpack.c.bf16 %v1805_v9, %v1804_v36 }
 0x562   : > { %v1481_v8 = vadd.f32 %v1477_v45, %v1473_v40  ;;  %v1478_v47 = vmul.f32 %v4723_v15, %v1476_v10  ;;  %3633 = vmatpush3.bf16.msra.mxu0 %v1479_v46  ;;  %v1813_v42 = vpack.c.bf16 %v1811_v3, %v1810_v1  ;;  %v1815_v10 = vadd.f32 %v1811_v3, %v1805_v9  ;;  %v1768_v9 = vld [vmem:[#allocation3] sm:$0xff] }
 0x563   : > { %3644 = vmatprep.subr.bf16.mxu0 %v4220_v0 }
 0x564   : > { %v1482_v48 = vadd.f32 %v1478_v47, %v1474_v41  ;;  %v1480_v49 = vpack.c.bf16 %v1478_v47, %v1477_v45  ;;  %v1814_v45 = vadd.f32 %v1810_v1, %v1804_v36  ;;  %v1756_v36 = vld [vmem:[#allocation2] sm:$0xff] }
 0x565   : > { %3635 = vmatmul.mubr.msk.bf16.vlgmr.msra.gmra.mrb[36].mxu0 %vm473_vm0, %v4676_v27 }
 0x566   : > { %3639 = vmatpush3.bf16.msra.mxu1 %v1480_v49  ;;  %v1483_v50 = vpack.c.bf16 %v1482_v48, %v1481_v8  ;;  %3646 = vmatprep.mubr.msk.bf16.mxu0 %vm4221_vm1, %v4220_v0  ;;  %v1816_v46 = vpack.c.bf16 %v1815_v10, %v1814_v45 }
 0x567   : > { %3650 = vmatprep.subr.bf16.mxu1 %v4220_v0 }
 0x568   : > { %3645 = vmatpush3.bf16.msra.mxu0 %v1483_v50 }
 0x569   : > { %3641 = vmatmul.mubr.msk.bf16.vlgmr.msra.gmra.mrb[36].mxu1 %vm473_vm0, %v4678_v28  ;;  %3656 = vmatprep.subr.bf16.mxu0 %v4220_v0 }
 0x56a   : > { %3651 = vmatpush3.bf16.msra.mxu1 %v4697_v31  ;;  %3652 = vmatprep.mubr.msk.bf16.mxu1 %vm4221_vm1, %v4220_v0 }
 0x56b   : > { %3662 = vmatprep.subr.bf16.mxu1 %v4220_v0 }
 0x56d   : > { %3647 = vmatmul.mubr.msk.bf16.vlgmr.msra.gmra.mrb[40].mxu0 %vm473_vm0, %v4691_v30 }
 0x56e   : > { %3657 = vmatpush3.bf16.msra.mxu0 %v4701_v32  ;;  %3658 = vmatprep.mubr.msk.bf16.mxu0 %vm4221_vm1, %v4220_v0 }
 0x56f   : > { %3668 = vmatprep.subr.bf16.mxu0 %v4220_v0 }
 0x638   : > { %v1518_v57 = vpop.f32.mrb[36].mxu0 }
 0x639   : > { %v3636_v58 = vpop.f32.mrb[37].mxu0 }
 0x63a   : > { %v1521_v59 = vpop.f32.mrb[38].mxu0 }
 0x63b   : > { %v3637_v5 = vpop.f32.mrb[39].mxu0 }
 0x63c   : > { %v1559_v6 = vpop.f32.mrb[36].mxu1 }
 0x63d   : > { %v1607_v11 = vsub.f32 %v1518_v57, %v1559_v6  ;;  %v3642_v12 = vpop.f32.mrb[37].mxu1 }
 0x63e   : > { %v1562_v13 = vpop.f32.mrb[38].mxu1 }
 0x63f   : > { %v1608_v20 = vsub.f32 %v1521_v59, %v1562_v13  ;;  %v3643_v21 = vpop.f32.mrb[39].mxu1 }
 0x640   : > { %v1600_v22 = vpop.f32.mrb[40].mxu0 }
 0x641   : > { %v1613_v29 = vpack.c.bf16 %v1608_v20, %v1607_v11  ;;  %v1609_v33 = vsub.f32 %v1600_v22, %v1518_v57  ;;  %v3648_v34 = vpop.f32.mrb[41].mxu0 }
 0x642   : > { %v1603_v35 = vpop.f32.mrb[42].mxu0 }
 0x643   : > { %v1611_v37 = vsub.f32 %v1609_v33, %v1559_v6  ;;  %v1610_v7 = vsub.f32 %v1603_v35, %v1521_v59  ;;  %v3649_v38 = vpop.f32.mrb[43].mxu0  ;;  %3653 = vmatmul.mubr.msk.bf16.vlgmr.msra.gmra.mrb[40].mxu1 %vm473_vm0, %v1613_v29 }
 0x644   : > { %3663 = vmatpush3.bf16.msra.mxu1 %v4705_v43  ;;  %3664 = vmatprep.mubr.msk.bf16.mxu1 %vm4221_vm1, %v4220_v0 }
 0x645   : > { %v1703_v4 = vadd.f32 %v1611_v37, %v1607_v11  ;;  %v1612_v2 = vsub.f32 %v1610_v7, %v1562_v13  ;;  %3674 = vmatprep.subr.bf16.mxu1 %v4220_v0 }
 0x647   : > { %v1658_v40 = vpack.c.bf16 %v1612_v2, %v1611_v37  ;;  %v1704_v41 = vadd.f32 %v1612_v2, %v1608_v20  ;;  %v1757_v2 = vld [vmem:[#allocation2 + $0x8] sm:$0xff] }
 0x649   : > { %v1705_v44 = vpack.c.bf16 %v1704_v41, %v1703_v4  ;;  %3659 = vmatmul.mubr.msk.bf16.vlgmr.msra.gmra.mrb[44].mxu0 %vm473_vm0, %v1658_v40 }
 0x64a   : > { %3669 = vmatpush3.bf16.msra.mxu0 %v1812_v39  ;;  %3670 = vmatprep.mubr.msk.bf16.mxu0 %vm4221_vm1, %v4220_v0  ;;  %v1769_v39 = vld [vmem:[#allocation3 + $0x8] sm:$0xff] }
 0x64b   : > { %3665 = vmatmul.mubr.msk.bf16.vlgmr.msra.gmra.mrb[44].mxu1 %vm473_vm0, %v1705_v44  ;;  %3680 = vmatprep.subr.bf16.mxu0 %v4220_v0 }
 0x64c   : > { %3675 = vmatpush3.bf16.msra.mxu1 %v1813_v42  ;;  %3676 = vmatprep.mubr.msk.bf16.mxu1 %vm4221_vm1, %v4220_v0 }
 0x64d   : > { %3686 = vmatprep.subr.bf16.mxu1 %v4220_v0 }
 0x651   : > { %3671 = vmatmul.mubr.msk.bf16.vlgmr.msra.gmra.mrb[48].mxu0 %vm473_vm0, %v4676_v27 }
 0x652   : > { %3681 = vmatpush3.bf16.msra.mxu0 %v1816_v46  ;;  %3682 = vmatprep.mubr.msk.bf16.mxu0 %vm4221_vm1, %v4220_v0 }
 0x653   : > { %3677 = vmatmul.mubr.msk.bf16.vlgmr.msra.gmra.mrb[48].mxu1 %vm473_vm0, %v4678_v28  ;;  %3692 = vmatprep.subr.bf16.mxu0 %v4220_v0 }
 0x654   : > { %3687 = vmatpush3.bf16.msra.mxu1 %v4697_v31  ;;  %3688 = vmatprep.mubr.msk.bf16.mxu1 %vm4221_vm1, %v4220_v0 }
 0x655   : > { %3698 = vmatprep.subr.bf16.mxu1 %v4220_v0 }
 0x659   : > { %3683 = vmatmul.mubr.msk.bf16.vlgmr.msra.gmra.mrb[52].mxu0 %vm473_vm0, %v4691_v30 }
 0x65a   : > { %3693 = vmatpush3.bf16.msra.mxu0 %v4701_v32  ;;  %3694 = vmatprep.mubr.msk.bf16.mxu0 %vm4221_vm1, %v4220_v0 }
 0x65b   : > { %3704 = vmatprep.subr.bf16.mxu0 %v4220_v0 }
 0x716   : > { %v1651_v8 = vpop.f32.mrb[40].mxu1 }
 0x717   : > { %v3654_v47 = vpop.f32.mrb[41].mxu1 }
 0x718   : > { %v1654_v48 = vpop.f32.mrb[42].mxu1 }
 0x719   : > { %v3655_v49 = vpop.f32.mrb[43].mxu1 }
 0x71c   : > { %v1696_v50 = vpop.f32.mrb[44].mxu0 }
 0x71d   : > { %v1750_v51 = vsub.f32 %v1651_v8, %v1696_v50  ;;  %v3660_v52 = vpop.f32.mrb[45].mxu0 }
 0x71e   : > { %v1699_v57 = vpop.f32.mrb[46].mxu0  ;;  %v1743_v58 = vpop.f32.mrb[44].mxu1 }
 0x71f   : > { %v1751_v59 = vsub.f32 %v1654_v48, %v1699_v57  ;;  %v1752_v5 = vsub.f32 %v1743_v58, %v1651_v8  ;;  %v3661_v6 = vpop.f32.mrb[47].mxu0  ;;  %v3666_v11 = vpop.f32.mrb[45].mxu1  ;;  %v1758_v18 = vmul.f32 %v4750_v53, %v1750_v51  ;;  %v1772_v19 = vmul.f32 %v4754_v55, %v1750_v51 }
 0x720   : > { %v1746_v12 = vpop.f32.mrb[46].mxu1 }
 0x721   : > { %v1754_v13 = vsub.f32 %v1752_v5, %v1696_v50  ;;  %v1753_v16 = vsub.f32 %v1746_v12, %v1654_v48  ;;  %v3667_v17 = vpop.f32.mrb[47].mxu1  ;;  %v1759_v23 = vmul.f32 %v4752_v54, %v1751_v59  ;;  %v1773_v24 = vmul.f32 %v4756_v56, %v1751_v59 }
 0x723   : > { %v1760_v20 = vmul.f32 %v4754_v55, %v1754_v13  ;;  %v1770_v21 = vmul.f32 %v4750_v53, %v1754_v13  ;;  %v1755_v22 = vsub.f32 %v1753_v16, %v1699_v57  ;;  %v3422_v13 = vld [vmem:[%s4601_s16 + $0x20] sm:$0xff]  }
 0x724   : > { %v1851_v25 = vpop.f32.mrb[48].mxu0  ;;  %v3392_v16 = vunpack.c.l.bf16 %v3422_v13 }
 0x725   : > { %v1762_v26 = vsub.f32 %v1758_v18, %v1760_v20  ;;  %v1774_v29 = vadd.f32 %v1772_v19, %v1770_v21  ;;  %v1761_v33 = vmul.f32 %v4756_v56, %v1755_v22  ;;  %v1771_v34 = vmul.f32 %v4752_v54, %v1755_v22  ;;  %v3672_v35 = vpop.f32.mrb[49].mxu0  ;;  %v3423_v18 = vld [vmem:[%s4601_s16 + $0x28] sm:$0xff]  }
 0x726   : > { %v1854_v37 = vpop.f32.mrb[50].mxu0  ;;  %v1892_v7 = vpop.f32.mrb[48].mxu1  ;;  %v3393_v21 = vunpack.c.h.bf16 %v3422_v13 }
 0x727   : > { %v1764_v55 = vadd.f32 %v1762_v26, %v1756_v36  ;;  %v1776_v38 = vsub.f32 %v1768_v9, %v1774_v29  ;;  %v1763_v53 = vsub.f32 %v1759_v23, %v1761_v33  ;;  %v1775_v1 = vadd.f32 %v1773_v24, %v1771_v34  ;;  %v3673_v3 = vpop.f32.mrb[51].mxu0  ;;  %v3678_v4 = vpop.f32.mrb[49].mxu1 }
 0x728   : > { %v1940_v40 = vsub.f32 %v1851_v25, %v1892_v7  ;;  %v1895_v41 = vpop.f32.mrb[50].mxu1  ;;  %v3396_v26 = vunpack.c.l.bf16 %v3423_v18 }
 0x729   : > { %1766 = vst.msk [vmem:[#allocation2] sm:$0xff] %vm473_vm0, %v1764_v55  ;;  %1778 = vst.msk [vmem:[#allocation3] sm:$0xff] %vm473_vm0, %v1776_v38  ;;  %v1765_v54 = vadd.f32 %v1763_v53, %v1757_v2  ;;  %v1777_v56 = vsub.f32 %v1769_v39, %v1775_v1  ;;  %v1941_v42 = vsub.f32 %v1854_v37, %v1895_v41  ;;  %v3679_v44 = vpop.f32.mrb[51].mxu1 }
 0x72b   : > { %1767 = vst.msk [vmem:[#allocation2 + $0x8] sm:$0xff] %vm473_vm0, %v1765_v54  ;;  %1779 = vst.msk [vmem:[#allocation3 + $0x8] sm:$0xff] %vm473_vm0, %v1777_v56  ;;  %v1946_v45 = vpack.c.bf16 %v1941_v42, %v1940_v40 }
 0x72c   : > { %v1933_v10 = vpop.f32.mrb[52].mxu0 }
 0x72d   : > { %v1942_v46 = vsub.f32 %v1933_v10, %v1851_v25  ;;  %v3684_v8 = vpop.f32.mrb[53].mxu0  ;;  %3689 = vmatmul.mubr.msk.bf16.vlgmr.msra.gmra.mrb[52].mxu1 %vm473_vm0, %v1946_v45 }
 0x72e   : > { %v1936_v47 = vpop.f32.mrb[54].mxu0  ;;  %3699 = vmatpush3.bf16.msra.mxu1 %v4705_v43  ;;  %3700 = vmatprep.mubr.msk.bf16.mxu1 %vm4221_vm1, %v4220_v0 }
 0x72f   : > { %v1944_v48 = vsub.f32 %v1942_v46, %v1892_v7  ;;  %v1943_v49 = vsub.f32 %v1936_v47, %v1854_v37  ;;  %v3685_v50 = vpop.f32.mrb[55].mxu0  ;;  %3710 = vmatprep.subr.bf16.mxu1 %v4220_v0  ;;  %v3397_v37 = vunpack.c.h.bf16 %v3423_v18 }
 0x731   : > { %v2036_v51 = vadd.f32 %v1944_v48, %v1940_v40  ;;  %v1945_v52 = vsub.f32 %v1943_v49, %v1895_v41 }
 0x733   : > { %v1991_v57 = vpack.c.bf16 %v1945_v52, %v1944_v48  ;;  %v2037_v58 = vadd.f32 %v1945_v52, %v1941_v42 }
 0x735   : > { %v2038_v59 = vpack.c.bf16 %v2037_v58, %v2036_v51  ;;  %3695 = vmatmul.mubr.msk.bf16.vlgmr.msra.gmra.mrb[56].mxu0 %vm473_vm0, %v1991_v57  ;;  %v4967_v51 = vld [vmem:[%s4593_s9] sm:$0xff]  ;;  %v4972_v57 = vld [vmem:[%s4593_s9 + $0x8] sm:$0xff] }
 0x736   : > { %3706 = vmatprep.mubr.msk.bf16.mxu0 %vm4221_vm1, %v4220_v0 }
 0x737   : > { %3701 = vmatmul.mubr.msk.bf16.vlgmr.msra.gmra.mrb[56].mxu1 %vm473_vm0, %v2038_v59  ;;  %v4977_v59 = vld [vmem:[%s4593_s9 + $0x10] sm:$0xff] }
 0x738   : > { %3712 = vmatprep.mubr.msk.bf16.mxu1 %vm4221_vm1, %v4220_v0 }
 0x800   : > { %v1984_v5 = vpop.f32.mrb[52].mxu1 }
 0x801   : > { %v3690_v6 = vpop.f32.mrb[53].mxu1 }
 0x802   : > { %v1987_v11 = vpop.f32.mrb[54].mxu1  ;;  %v4982_v6 = vld [vmem:[%s4593_s9 + $0x18] sm:$0xff]  ;;  %s4114_s9 = sshll.u32 %s4222_s25, 4  ;;  %s4115_s9 = int_to_ptr.vmem [resolvable:$false] %s4114_s9 }
 0x803   : > { %v3691_v12 = vpop.f32.mrb[55].mxu1  ;;  %s4116_s2 = scalar_lea.vmem %s4115_s9, 1024  ;;  %p4117_p3 = scmp.lt.s32.totalorder %s5111_s11, %s4115_s9 }
 0x804   : > { %p4118_p12 = scmp.lt.s32.totalorder %s4116_s2, %s4110_s20 }
 0x806   : > { %p4119_p4 = por %p4118_p12, %p4117_p3 }
 0x808   : > { %v2029_v17 = vpop.f32.mrb[56].mxu0  ;;  %p4120_p0 = pnand %p4119_p4, %p4113_p5 }
 0x809   : > { %v2083_v19 = vsub.f32 %v1984_v5, %v2029_v17  ;;  %v3696_v20 = vpop.f32.mrb[57].mxu0 }
 0x80a   : > { %v2032_v22 = vpop.f32.mrb[58].mxu0  ;;  %v2076_v23 = vpop.f32.mrb[56].mxu1 }
 0x80b   : > { %v2089_v24 = vsub.f32 %v2083_v19, %v3392_v16  ;;  %v2084_v25 = vsub.f32 %v1987_v11, %v2032_v22  ;;  %v2085_v29 = vsub.f32 %v2076_v23, %v1984_v5  ;;  %v3697_v33 = vpop.f32.mrb[59].mxu0  ;;  %v3702_v34 = vpop.f32.mrb[57].mxu1 }
 0x80c   : > { %v2079_v35 = vpop.f32.mrb[58].mxu1 }
 0x80d   : > { %v2090_v36 = vsub.f32 %v2084_v25, %v3393_v21  ;;  %v2087_v9 = vsub.f32 %v2085_v29, %v2029_v17  ;;  %v2086_v7 = vsub.f32 %v2079_v35, %v1987_v11  ;;  %v3703_v55 = vpop.f32.mrb[59].mxu1  ;;  %v2091_v38 = vmul.f32 %v4721_v14, %v2089_v24 }
 0x80f   : > { %v2092_v53 = vmul.f32 %v4723_v15, %v2090_v36  ;;  %v2093_v1 = vsub.f32 %v3396_v26, %v2087_v9  ;;  %v2088_v3 = vsub.f32 %v2086_v7, %v2032_v22 }
 0x811   : > { %v2095_v4 = vmul.f32 %v4721_v14, %v2093_v1  ;;  %v2094_v2 = vsub.f32 %v3397_v37, %v2088_v3  ;;  %v2097_v39 = vpack.c.bf16 %v2092_v53, %v2091_v38 }
 0x813   : > { %v2099_v40 = vadd.f32 %v2095_v4, %v2091_v38  ;;  %v2096_v41 = vmul.f32 %v4723_v15, %v2094_v2  ;;  %3705 = vmatpush3.bf16.msra.mxu0 %v2097_v39  ;;  %v5007_v2 = vld [vmem:[#allocation13] sm:$0xff]   ;;  %v5013_v39 = vld [vmem:[#allocation13 + $0x8] sm:$0xff]  }
 0x814   : > { %3716 = vmatprep.subr.bf16.mxu0 %v4220_v0 }
 0x815   : > { %v2100_v54 = vadd.f32 %v2096_v41, %v2092_v53  ;;  %v2098_v56 = vpack.c.bf16 %v2096_v41, %v2095_v4  ;;  %v5024_v41 = vld [vmem:[#allocation13 + $0x10] sm:$0xff]  }
 0x816   : > { %3707 = vmatmul.mubr.msk.bf16.vlgmr.msra.gmra.mrb[60].mxu0 %vm473_vm0, %v4676_v27  ;;  %v3424_v27 = vld [vmem:[%s4610_s29 + $0x30] sm:$0xff]  }
 0x817   : > { %3711 = vmatpush3.bf16.msra.mxu1 %v2098_v56  ;;  %v2101_v42 = vpack.c.bf16 %v2100_v54, %v2099_v40  ;;  %3718 = vmatprep.mubr.msk.bf16.mxu0 %vm4221_vm1, %v4220_v0  ;;  %v4958_v10 = vunpack.c.l.bf16 %v3424_v27  ;;  %v4960_v46 = vunpack.c.h.bf16 %v3424_v27  ;;  %v5018_v40 = vld [vmem:[#allocation14] sm:$0xff]   ;;  %v5028_v54 = vld [vmem:[#allocation14 + $0x8] sm:$0xff]  }
 0x818   : > { %3722 = vmatprep.subr.bf16.mxu1 %v4220_v0 }
 0x819   : > { %3717 = vmatpush3.bf16.msra.mxu0 %v2101_v42  ;;  %v2418_v52 = vmul.f32 %v4967_v51, %v4958_v10  ;;  %v2419_v58 = vmul.f32 %v4972_v57, %v4960_v46  ;;  %v2424_v17 = vmul.f32 %v4977_v59, %v4958_v10  ;;  %v2425_v18 = vmul.f32 %v4982_v6, %v4960_v46 }
 0x81a   : > { %3713 = vmatmul.mubr.msk.bf16.vlgmr.msra.gmra.mrb[60].mxu1 %vm473_vm0, %v4678_v28  ;;  %3728 = vmatprep.subr.bf16.mxu0 %v4220_v0  ;;  %v3425_v28 = vld [vmem:[%s4610_s29 + $0x38] sm:$0xff]  }
 0x81b   : > { %3723 = vmatpush3.bf16.msra.mxu1 %v4697_v31  ;;  %3724 = vmatprep.mubr.msk.bf16.mxu1 %vm4221_vm1, %v4220_v0 }
 0x81c   : > { %3734 = vmatprep.subr.bf16.mxu1 %v4220_v0 }
 0x81e   : > { %3719 = vmatmul.mubr.msk.bf16.vlgmr.msra.gmra.mrb[64].mxu0 %vm473_vm0, %v4691_v30  ;;  %v4962_v30 = vunpack.c.l.bf16 %v3425_v28 }
 0x81f   : > { %3729 = vmatpush3.bf16.msra.mxu0 %v4701_v32  ;;  %3730 = vmatprep.mubr.msk.bf16.mxu0 %vm4221_vm1, %v4220_v0  ;;  %v4964_v32 = vunpack.c.h.bf16 %v3425_v28 }
 0x820   : > { %3740 = vmatprep.subr.bf16.mxu0 %v4220_v0  ;;  %v2420_v5 = vmul.f32 %v4977_v59, %v4962_v30  ;;  %v2426_v19 = vmul.f32 %v4967_v51, %v4962_v30 }
 0x821   : > { %v2421_v11 = vmul.f32 %v4982_v6, %v4964_v32  ;;  %v2427_v20 = vmul.f32 %v4972_v57, %v4964_v32 }
 0x822   : > { %v2422_v25 = vsub.f32 %v2418_v52, %v2420_v5  ;;  %v2428_v35 = vadd.f32 %v2426_v19, %v2424_v17 }
 0x823   : > { %v2423_v26 = vsub.f32 %v2419_v58, %v2421_v11  ;;  %v2429_v36 = vadd.f32 %v2427_v20, %v2425_v18 }
 0x825   : > { %v2430_v7 = vpack.c.bf16 %v2423_v26, %v2422_v25  ;;  %v2431_v53 = vpack.c.bf16 %v2429_v36, %v2428_v35  ;;  %v2433_v3 = vadd.f32 %v2429_v36, %v2423_v26 }
 0x8e9   : > { %v2136_v31 = vpop.f32.mrb[60].mxu0 }
 0x8ea   : > { %v3708_v44 = vpop.f32.mrb[61].mxu0 }
 0x8eb   : > { %v2139_v45 = vpop.f32.mrb[62].mxu0 }
 0x8ec   : > { %v3709_v8 = vpop.f32.mrb[63].mxu0 }
 0x8ed   : > { %v2177_v47 = vpop.f32.mrb[60].mxu1 }
 0x8ee   : > { %v2225_v48 = vsub.f32 %v2136_v31, %v2177_v47  ;;  %v3714_v49 = vpop.f32.mrb[61].mxu1 }
 0x8ef   : > { %v2180_v50 = vpop.f32.mrb[62].mxu1 }
 0x8f0   : > { %v2226_v12 = vsub.f32 %v2139_v45, %v2180_v50  ;;  %v3715_v13 = vpop.f32.mrb[63].mxu1 }
 0x8f1   : > { %v2218_v16 = vpop.f32.mrb[64].mxu0 }
 0x8f2   : > { %v2231_v21 = vpack.c.bf16 %v2226_v12, %v2225_v48  ;;  %v2227_v22 = vsub.f32 %v2218_v16, %v2136_v31  ;;  %v3720_v23 = vpop.f32.mrb[65].mxu0 }
 0x8f3   : > { %v2221_v24 = vpop.f32.mrb[66].mxu0 }
 0x8f4   : > { %v2229_v29 = vsub.f32 %v2227_v22, %v2177_v47  ;;  %v2228_v33 = vsub.f32 %v2221_v24, %v2139_v45  ;;  %v3721_v34 = vpop.f32.mrb[67].mxu0  ;;  %3725 = vmatmul.mubr.msk.bf16.vlgmr.msra.gmra.mrb[64].mxu1 %vm473_vm0, %v2231_v21 }
 0x8f5   : > { %3735 = vmatpush3.bf16.msra.mxu1 %v4705_v43  ;;  %3736 = vmatprep.mubr.msk.bf16.mxu1 %vm4221_vm1, %v4220_v0  ;;  %v2432_v43 = vadd.f32 %v2428_v35, %v2422_v25  ;;  %v2386_v34 = vld [vmem:[#allocation3] sm:$0xff] }
 0x8f6   : > { %v2321_v9 = vadd.f32 %v2229_v29, %v2225_v48  ;;  %v2230_v37 = vsub.f32 %v2228_v33, %v2180_v50  ;;  %3746 = vmatprep.subr.bf16.mxu1 %v4220_v0  ;;  %v2374_v33 = vld [vmem:[#allocation2] sm:$0xff] }
 0x8f7   : > { %v2434_v4 = vpack.c.bf16 %v2433_v3, %v2432_v43 }
 0x8f8   : > { %v2276_v55 = vpack.c.bf16 %v2230_v37, %v2229_v29  ;;  %v2322_v38 = vadd.f32 %v2230_v37, %v2226_v12 }
 0x8fa   : > { %v2323_v1 = vpack.c.bf16 %v2322_v38, %v2321_v9  ;;  %3731 = vmatmul.mubr.msk.bf16.vlgmr.msra.gmra.mrb[68].mxu0 %vm473_vm0, %v2276_v55  ;;  %v2375_v38 = vld [vmem:[#allocation2 + $0x8] sm:$0xff] }
 0x8fb   : > { %3741 = vmatpush3.bf16.msra.mxu0 %v2430_v7  ;;  %3742 = vmatprep.mubr.msk.bf16.mxu0 %vm4221_vm1, %v4220_v0 }
 0x8fc   : > { %3737 = vmatmul.mubr.msk.bf16.vlgmr.msra.gmra.mrb[68].mxu1 %vm473_vm0, %v2323_v1  ;;  %3752 = vmatprep.subr.bf16.mxu0 %v4220_v0 }
 0x8fd   : > { %3747 = vmatpush3.bf16.msra.mxu1 %v2431_v53  ;;  %3748 = vmatprep.mubr.msk.bf16.mxu1 %vm4221_vm1, %v4220_v0  ;;  %v2387_v53 = vld [vmem:[#allocation3 + $0x8] sm:$0xff] }
 0x8fe   : > { %3758 = vmatprep.subr.bf16.mxu1 %v4220_v0 }
 0x902   : > { %3743 = vmatmul.mubr.msk.bf16.vlgmr.msra.gmra.mrb[72].mxu0 %vm473_vm0, %v5007_v2 }
 0x903   : > { %3753 = vmatpush3.bf16.msra.mxu0 %v2434_v4  ;;  %3754 = vmatprep.mubr.msk.bf16.mxu0 %vm4221_vm1, %v4220_v0 }
 0x904   : > { %3749 = vmatmul.mubr.msk.bf16.vlgmr.msra.gmra.mrb[72].mxu1 %vm473_vm0, %v5013_v39  ;;  %3764 = vmatprep.subr.bf16.mxu0 %v4220_v0 }
 0x905   : > { %3759 = vmatpush3.bf16.msra.mxu1 %v5018_v40  ;;  %3760 = vmatprep.mubr.msk.bf16.mxu1 %vm4221_vm1, %v4220_v0 }
 0x906   : > { %3770 = vmatprep.subr.bf16.mxu1 %v4220_v0 }
 0x90a   : > { %3755 = vmatmul.mubr.msk.bf16.vlgmr.msra.gmra.mrb[76].mxu0 %vm473_vm0, %v5024_v41 }
 0x90b   : > { %3765 = vmatpush3.bf16.msra.mxu0 %v5028_v54  ;;  %3766 = vmatprep.mubr.msk.bf16.mxu0 %vm4221_vm1, %v4220_v0 }
 0x90c   : > { %3776 = vmatprep.subr.bf16.mxu0 %v4220_v0 }
 0x9c7   : > { %v2269_v56 = vpop.f32.mrb[64].mxu1 }
 0x9c8   : > { %v3726_v42 = vpop.f32.mrb[65].mxu1 }
 0x9c9   : > { %v2272_v27 = vpop.f32.mrb[66].mxu1 }
 0x9ca   : > { %v3727_v28 = vpop.f32.mrb[67].mxu1 }
 0x9cd   : > { %v2314_v31 = vpop.f32.mrb[68].mxu0 }
 0x9ce   : > { %v2368_v44 = vsub.f32 %v2269_v56, %v2314_v31  ;;  %v3732_v45 = vpop.f32.mrb[69].mxu0 }
 0x9cf   : > { %v2317_v8 = vpop.f32.mrb[70].mxu0  ;;  %v2361_v47 = vpop.f32.mrb[68].mxu1 }
 0x9d0   : > { %v2369_v48 = vsub.f32 %v2272_v27, %v2317_v8  ;;  %v2370_v49 = vsub.f32 %v2361_v47, %v2269_v56  ;;  %v3733_v50 = vpop.f32.mrb[71].mxu0  ;;  %v3738_v52 = vpop.f32.mrb[69].mxu1  ;;  %v2376_v13 = vmul.f32 %v4854_v60, %v2368_v44  ;;  %v2390_v16 = vmul.f32 %v4858_v62, %v2368_v44  ;;  %v5047_v44 = vld [vmem:[#allocation14 + $0x10] sm:$0xff]  }
 0x9d1   : > { %v2364_v58 = vpop.f32.mrb[70].mxu1 }
 0x9d2   : > { %v2372_v5 = vsub.f32 %v2370_v49, %v2314_v31  ;;  %v2371_v11 = vsub.f32 %v2364_v58, %v2272_v27  ;;  %v3739_v12 = vpop.f32.mrb[71].mxu1  ;;  %v2377_v20 = vmul.f32 %v4856_v61, %v2369_v48  ;;  %v2391_v21 = vmul.f32 %v4860_v63, %v2369_v48 }
 0x9d4   : > { %v2378_v17 = vmul.f32 %v4858_v62, %v2372_v5  ;;  %v2388_v18 = vmul.f32 %v4854_v60, %v2372_v5  ;;  %v2373_v19 = vsub.f32 %v2371_v11, %v2317_v8 }
 0x9d5   : > { %v2469_v22 = vpop.f32.mrb[72].mxu0 }
 0x9d6   : > { %v2380_v23 = vsub.f32 %v2376_v13, %v2378_v17  ;;  %v2392_v24 = vadd.f32 %v2390_v16, %v2388_v18  ;;  %v2379_v25 = vmul.f32 %v4860_v63, %v2373_v19  ;;  %v2389_v26 = vmul.f32 %v4856_v61, %v2373_v19  ;;  %v3744_v29 = vpop.f32.mrb[73].mxu0  ;;  %v3426_v16 = vld [vmem:[%s4601_s16 + $0x30] sm:$0xff]   ;;  %v3427_v19 = vld [vmem:[%s4601_s16 + $0x38] sm:$0xff]  }
 0x9d7   : > { %v2472_v35 = vpop.f32.mrb[74].mxu0  ;;  %v2510_v36 = vpop.f32.mrb[72].mxu1  ;;  %v3408_v17 = vunpack.c.l.bf16 %v3426_v16  ;;  %v3412_v29 = vunpack.c.l.bf16 %v3427_v19 }
 0x9d8   : > { %v2382_v62 = vadd.f32 %v2380_v23, %v2374_v33  ;;  %v2394_v9 = vsub.f32 %v2386_v34, %v2392_v24  ;;  %v2381_v60 = vsub.f32 %v2377_v20, %v2379_v25  ;;  %v2393_v37 = vadd.f32 %v2391_v21, %v2389_v26  ;;  %v3745_v7 = vpop.f32.mrb[75].mxu0  ;;  %v3750_v55 = vpop.f32.mrb[73].mxu1 }
 0x9d9   : > { %v2558_v1 = vsub.f32 %v2469_v22, %v2510_v36  ;;  %v2513_v43 = vpop.f32.mrb[74].mxu1 }
 0x9da   : > { %2384 = vst.msk [vmem:[#allocation2] sm:$0xff] %vm473_vm0, %v2382_v62  ;;  %2396 = vst.msk [vmem:[#allocation3] sm:$0xff] %vm473_vm0, %v2394_v9  ;;  %v2383_v61 = vadd.f32 %v2381_v60, %v2375_v38  ;;  %v2395_v63 = vsub.f32 %v2387_v53, %v2393_v37  ;;  %v2559_v3 = vsub.f32 %v2472_v35, %v2513_v43  ;;  %v3751_v4 = vpop.f32.mrb[75].mxu1  ;;  %v3413_v60 = vunpack.c.h.bf16 %v3427_v19 }
 0x9dc   : > { %2385 = vst.msk [vmem:[#allocation2 + $0x8] sm:$0xff] %vm473_vm0, %v2383_v61  ;;  %2397 = vst.msk [vmem:[#allocation3 + $0x8] sm:$0xff] %vm473_vm0, %v2395_v63  ;;  %v2564_v56 = vpack.c.bf16 %v2559_v3, %v2558_v1 }
 0x9dd   : > { %v2551_v42 = vpop.f32.mrb[76].mxu0 }
 0x9de   : > { %v2560_v27 = vsub.f32 %v2551_v42, %v2469_v22  ;;  %v3756_v28 = vpop.f32.mrb[77].mxu0  ;;  %3761 = vmatmul.mubr.msk.bf16.vlgmr.msra.gmra.mrb[76].mxu1 %vm473_vm0, %v2564_v56  ;;  %v3409_v22 = vunpack.c.h.bf16 %v3426_v16 }
 0x9df   : > { %v2554_v31 = vpop.f32.mrb[78].mxu0  ;;  %3771 = vmatpush3.bf16.msra.mxu1 %v5047_v44  ;;  %3772 = vmatprep.mubr.msk.bf16.mxu1 %vm4221_vm1, %v4220_v0 }
 0x9e0   : > { %v2562_v45 = vsub.f32 %v2560_v27, %v2510_v36  ;;  %v2561_v8 = vsub.f32 %v2554_v31, %v2472_v35  ;;  %v3757_v47 = vpop.f32.mrb[79].mxu0  ;;  %3782 = vmatprep.subr.bf16.mxu1 %v4220_v0 }
 0x9e2   : > { %v2654_v48 = vadd.f32 %v2562_v45, %v2558_v1  ;;  %v2563_v49 = vsub.f32 %v2561_v8, %v2513_v43 }
 0x9e4   : > { %v2609_v50 = vpack.c.bf16 %v2563_v49, %v2562_v45  ;;  %v2655_v52 = vadd.f32 %v2563_v49, %v2559_v3 }
 0x9e6   : > { %v2656_v58 = vpack.c.bf16 %v2655_v52, %v2654_v48  ;;  %3767 = vmatmul.mubr.msk.bf16.vlgmr.msra.gmra.mrb[80].mxu0 %vm473_vm0, %v2609_v50 }
 0x9e7   : > { %3778 = vmatprep.mubr.msk.bf16.mxu0 %vm4221_vm1, %v4220_v0 }
 0x9e8   : > { %3773 = vmatmul.mubr.msk.bf16.vlgmr.msra.gmra.mrb[80].mxu1 %vm473_vm0, %v2656_v58 }
 0x9e9   : > { %3784 = vmatprep.mubr.msk.bf16.mxu1 %vm4221_vm1, %v4220_v0 }
 0xab1   : > { %v2602_v5 = vpop.f32.mrb[76].mxu1 }
 0xab2   : > { %v3762_v11 = vpop.f32.mrb[77].mxu1 }
 0xab3   : > { %v2605_v12 = vpop.f32.mrb[78].mxu1 }
 0xab4   : > { %v3763_v13 = vpop.f32.mrb[79].mxu1 }
 0xab9   : > { %v2647_v18 = vpop.f32.mrb[80].mxu0 }
 0xaba   : > { %v2701_v20 = vsub.f32 %v2602_v5, %v2647_v18  ;;  %v3768_v21 = vpop.f32.mrb[81].mxu0 }
 0xabb   : > { %v2650_v23 = vpop.f32.mrb[82].mxu0  ;;  %v2694_v24 = vpop.f32.mrb[80].mxu1 }
 0xabc   : > { %v2707_v25 = vsub.f32 %v2701_v20, %v3408_v17  ;;  %v2702_v26 = vsub.f32 %v2605_v12, %v2650_v23  ;;  %v2703_v33 = vsub.f32 %v2694_v24, %v2602_v5  ;;  %v3769_v34 = vpop.f32.mrb[83].mxu0  ;;  %v3774_v35 = vpop.f32.mrb[81].mxu1 }
 0xabd   : > { %v2697_v36 = vpop.f32.mrb[82].mxu1 }
 0xabe   : > { %v2708_v62 = vsub.f32 %v2702_v26, %v3409_v22  ;;  %v2705_v9 = vsub.f32 %v2703_v33, %v2647_v18  ;;  %v2704_v37 = vsub.f32 %v2697_v36, %v2605_v12  ;;  %v3775_v7 = vpop.f32.mrb[83].mxu1  ;;  %v2709_v55 = vmul.f32 %v4721_v14, %v2707_v25 }
 0xac0   : > { %v2710_v38 = vmul.f32 %v4723_v15, %v2708_v62  ;;  %v2711_v53 = vsub.f32 %v3412_v29, %v2705_v9  ;;  %v2706_v1 = vsub.f32 %v2704_v37, %v2650_v23 }
 0xac2   : > { %v2713_v43 = vmul.f32 %v4721_v14, %v2711_v53  ;;  %v2712_v61 = vsub.f32 %v3413_v60, %v2706_v1  ;;  %v2715_v63 = vpack.c.bf16 %v2710_v38, %v2709_v55 }
 0xac4   : > { %v2717_v3 = vadd.f32 %v2713_v43, %v2709_v55  ;;  %v2714_v4 = vmul.f32 %v4723_v15, %v2712_v61  ;;  %3777 = vmatpush3.bf16.msra.mxu0 %v2715_v63 }
 0xac5   : > { %3788 = vmatprep.subr.bf16.mxu0 %v4220_v0 }
 0xac6   : > { %v2718_v56 = vadd.f32 %v2714_v4, %v2710_v38  ;;  %v2716_v42 = vpack.c.bf16 %v2714_v4, %v2713_v43  ;;  %v3004_v4 = vld [vmem:[#allocation3] sm:$0xff] }
 0xac7   : > { %3779 = vmatmul.mubr.msk.bf16.vlgmr.msra.gmra.mrb[84].mxu0 %vm473_vm0, %v5007_v2 }
 0xac8   : > { %3783 = vmatpush3.bf16.msra.mxu1 %v2716_v42  ;;  %v2719_v27 = vpack.c.bf16 %v2718_v56, %v2717_v3  ;;  %3790 = vmatprep.mubr.msk.bf16.mxu0 %vm4221_vm1, %v4220_v0  ;;  %v2992_v3 = vld [vmem:[#allocation2] sm:$0xff] }
 0xac9   : > { %3794 = vmatprep.subr.bf16.mxu1 %v4220_v0 }
 0xaca   : > { %3789 = vmatpush3.bf16.msra.mxu0 %v2719_v27  ;;  %v2993_v27 = vld [vmem:[#allocation2 + $0x8] sm:$0xff] }
 0xacb   : > { %3785 = vmatmul.mubr.msk.bf16.vlgmr.msra.gmra.mrb[84].mxu1 %vm473_vm0, %v5013_v39  ;;  %3800 = vmatprep.subr.bf16.mxu0 %v4220_v0 }
 0xacc   : > { %3795 = vmatpush3.bf16.msra.mxu1 %v5018_v40  ;;  %3796 = vmatprep.mubr.msk.bf16.mxu1 %vm4221_vm1, %v4220_v0 }
 0xacd   : > { %3806 = vmatprep.subr.bf16.mxu1 %v4220_v0 }
 0xacf   : > { %3791 = vmatmul.mubr.msk.bf16.vlgmr.msra.gmra.mrb[88].mxu0 %vm473_vm0, %v5024_v41 }
 0xad0   : > { %3801 = vmatpush3.bf16.msra.mxu0 %v5028_v54  ;;  %3802 = vmatprep.mubr.msk.bf16.mxu0 %vm4221_vm1, %v4220_v0 }
 0xb9a   : > { %v2754_v14 = vpop.f32.mrb[84].mxu0 }
 0xb9b   : > { %v3780_v15 = vpop.f32.mrb[85].mxu0 }
 0xb9c   : > { %v2757_v2 = vpop.f32.mrb[86].mxu0 }
 0xb9d   : > { %v3781_v39 = vpop.f32.mrb[87].mxu0 }
 0xb9e   : > { %v2795_v28 = vpop.f32.mrb[84].mxu1 }
 0xb9f   : > { %v2843_v31 = vsub.f32 %v2754_v14, %v2795_v28  ;;  %v3786_v40 = vpop.f32.mrb[85].mxu1 }
 0xba0   : > { %v2798_v45 = vpop.f32.mrb[86].mxu1 }
 0xba1   : > { %v2844_v8 = vsub.f32 %v2757_v2, %v2798_v45  ;;  %v3787_v47 = vpop.f32.mrb[87].mxu1 }
 0xba2   : > { %v2836_v48 = vpop.f32.mrb[88].mxu0 }
 0xba3   : > { %v2849_v49 = vpack.c.bf16 %v2844_v8, %v2843_v31  ;;  %v2845_v50 = vsub.f32 %v2836_v48, %v2754_v14  ;;  %v3792_v52 = vpop.f32.mrb[89].mxu0  ;;  %v3005_v14 = vld [vmem:[#allocation3 + $0x8] sm:$0xff] }
 0xba4   : > { %v2839_v41 = vpop.f32.mrb[90].mxu0 }
 0xba5   : > { %v2847_v58 = vsub.f32 %v2845_v50, %v2795_v28  ;;  %v2846_v54 = vsub.f32 %v2839_v41, %v2757_v2  ;;  %3797 = vmatmul.mubr.msk.bf16.vlgmr.msra.gmra.mrb[88].mxu1 %vm473_vm0, %v2849_v49  ;;  %v3793_v5 = vpop.f32.mrb[91].mxu0 }
 0xba6   : > { %3807 = vmatpush3.bf16.msra.mxu1 %v5047_v44  ;;  %3808 = vmatprep.mubr.msk.bf16.mxu1 %vm4221_vm1, %v4220_v0 }
 0xba7   : > { %v2939_v11 = vadd.f32 %v2847_v58, %v2843_v31  ;;  %v2848_v12 = vsub.f32 %v2846_v54, %v2798_v45 }
 0xba9   : > { %v2894_v13 = vpack.c.bf16 %v2848_v12, %v2847_v58  ;;  %v2940_v16 = vadd.f32 %v2848_v12, %v2844_v8 }
 0xbab   : > { %v2941_v17 = vpack.c.bf16 %v2940_v16, %v2939_v11  ;;  %3803 = vmatmul.mubr.msk.bf16.vlgmr.msra.gmra.mrb[92].mxu0 %vm473_vm0, %v2894_v13 }
 0xbad   : > { %3809 = vmatmul.mubr.msk.bf16.vlgmr.msra.gmra.mrb[92].mxu1 %vm473_vm0, %v2941_v17 }
 0xc78   : > { %v2887_v18 = vpop.f32.mrb[88].mxu1 }
 0xc79   : > { %v3798_v19 = vpop.f32.mrb[89].mxu1 }
 0xc7a   : > { %v2890_v20 = vpop.f32.mrb[90].mxu1 }
 0xc7b   : > { %v3799_v21 = vpop.f32.mrb[91].mxu1 }
 0xc7e   : > { %v2932_v22 = vpop.f32.mrb[92].mxu0 }
 0xc7f   : > { %v2986_v23 = vsub.f32 %v2887_v18, %v2932_v22  ;;  %v3804_v24 = vpop.f32.mrb[93].mxu0 }
 0xc80   : > { %v2935_v44 = vpop.f32.mrb[94].mxu0  ;;  %v2979_v25 = vpop.f32.mrb[92].mxu1 }
 0xc81   : > { %v2987_v26 = vsub.f32 %v2890_v20, %v2935_v44  ;;  %v2988_v0 = vsub.f32 %v2979_v25, %v2887_v18  ;;  %v3805_v29 = vpop.f32.mrb[95].mxu0  ;;  %v3810_v33 = vpop.f32.mrb[93].mxu1  ;;  %v2994_v9 = vmul.f32 %v4958_v10, %v2986_v23  ;;  %v3008_v60 = vmul.f32 %v4962_v30, %v2986_v23 }
 0xc82   : > { %v2982_v34 = vpop.f32.mrb[94].mxu1 }
 0xc83   : > { %v2990_v35 = vsub.f32 %v2988_v0, %v2932_v22  ;;  %v2989_v36 = vsub.f32 %v2982_v34, %v2890_v20  ;;  %v3811_v62 = vpop.f32.mrb[95].mxu1  ;;  %v2995_v38 = vmul.f32 %v4960_v46, %v2987_v26  ;;  %v3009_v53 = vmul.f32 %v4964_v32, %v2987_v26 }
 0xc85   : > { %v2996_v37 = vmul.f32 %v4962_v30, %v2990_v35  ;;  %v3006_v7 = vmul.f32 %v4958_v10, %v2990_v35  ;;  %v2991_v55 = vsub.f32 %v2989_v36, %v2935_v44 }
 0xc87   : > { %v2998_v1 = vsub.f32 %v2994_v9, %v2996_v37  ;;  %v3010_v43 = vadd.f32 %v3008_v60, %v3006_v7  ;;  %v2997_v61 = vmul.f32 %v4964_v32, %v2991_v55  ;;  %v3007_v63 = vmul.f32 %v4960_v46, %v2991_v55 }
 0xc88   : > { %v3022_v46 = vstv %s3019_s12 }
 0xc89   : > { %v3000_v56 = vadd.f32 %v2998_v1, %v2992_v3  ;;  %v3012_v42 = vsub.f32 %v3004_v4, %v3010_v43  ;;  %v2999_v30 = vsub.f32 %v2995_v38, %v2997_v61  ;;  %v3011_v10 = vadd.f32 %v3009_v53, %v3007_v63 }
 0xc8b   : > { %3002 = vst.msk [vmem:[#allocation2] sm:$0xff] %vm473_vm0, %v3000_v56  ;;  %3014 = vst.msk [vmem:[#allocation3] sm:$0xff] %vm473_vm0, %v3012_v42  ;;  %v3001_v15 = vadd.f32 %v2999_v30, %v2993_v27  ;;  %v3013_v2 = vsub.f32 %v3005_v14, %v3011_v10 }
 0xc8d   : > { %3003 = vst.msk [vmem:[#allocation2 + $0x8] sm:$0xff] %vm473_vm0, %v3001_v15  ;;  %3015 = vst.msk [vmem:[#allocation3 + $0x8] sm:$0xff] %vm473_vm0, %v3013_v2 }
 0xc92   : > { %v3020_v32 = vld [vmem:[#allocation2] sm:$0xff]  ;;  %v3029_v39 = vld [vmem:[#allocation3] sm:$0xff] }
 0xc93   : > { %v3023_v28 = vmul.f32 %v3022_v46, %v3020_v32  ;;  %v3031_v31 = vmul.f32 %v3029_v39, %v3022_v46 }
 0xc94   : > { %v3021_v40 = vld [vmem:[#allocation2 + $0x8] sm:$0xff]  ;;  %v3030_v45 = vld [vmem:[#allocation3 + $0x8] sm:$0xff] }
 0xc95   : > { %v3024_v8 = vmul.f32 %v3022_v46, %v3021_v40  ;;  %v3025_v47 = vsub.f32 %v4967_v51, %v3023_v28  ;;  %v3032_v48 = vmul.f32 %v3030_v45, %v3022_v46  ;;  %v3033_v49 = vsub.f32 %v4977_v59, %v3031_v31 }
 0xc97   : > { %v3026_v50 = vsub.f32 %v4972_v57, %v3024_v8  ;;  %3027 = vst.msk [vmem:[%s465_s26] sm:$0xff] %vm473_vm0, %v3025_v47  ;;  %v3034_v52 = vsub.f32 %v4982_v6, %v3032_v48  ;;  %3334 = vst.msk [vmem:[%s465_s26 + $0x10] sm:$0xff] %vm473_vm0, %v3033_v49 }
 0xc99   : > { %3028 = vst.msk [vmem:[%s465_s26 + $0x8] sm:$0xff] %vm473_vm0, %v3026_v50  ;;  %3335 = vst.msk [vmem:[%s465_s26 + $0x18] sm:$0xff] %vm473_vm0, %v3034_v52 }
 0xc9a   : > { %4123 = shalt.err (!%p4120_p0)
}
 0xc9b   : > { %s4124_s15 = scalar_lea.hbm %s5109_s17, 512  ;;  %s4128_s16 = scalar_lea.hbm %s5241_s8, 1024 }
 0xc9c   : > { %p4125_p9 = scmp.ne.s32.totalorder %s5109_s17, %s4124_s15  ;;  %p4129_p7 = scmp.lt.u32.totalorder %s5109_s17, %s5241_s8 }
 0xc9d   : > { %p4130_p2 = scmp.lt.u32.totalorder %s4128_s16, %s4124_s15  ;;  %p4132_p6 = scmp.lt.u32.totalorder %s4124_s15, %s5109_s17 }
 0xc9e   : > { %p4126_p1 = pnand %p4125_p9, %p5242_p11 }
 0xc9f   : > { %p4131_p13 = por %p4130_p2, %p4129_p7 }
 0xca0   : > { %p4127_p10 = pneg %p4126_p1 }
 0xca1   : > { %p4133_p8 = por %p4132_p6, %p4131_p13 }
 0xca3   : > { %p4134_p5 = pnand %p4133_p8, %p4127_p10 }
 0xca5   : > { %4137 = shalt.err (!%p4134_p5)
}
 0xca6   : > { %s4223_s28 = smov 128   ;;  %s4224_s29 = smov 8  }
 0xca7   : > { %3828 = dma.vmem_to_hbm [thread:$0]  (%p5242_p11), %s5111_s11, 512, %s5109_s17, %s3039_s24, %s4223_s28, %s4223_s28, %s4224_s29  }
 0xca8 PF: > { %s5243_s12 = sld [smem:[#allocation23_spill]]  ;;  %s5244_s13 = sld [smem:[#allocation28_spill]] }
 0xca9   : > { %p5246_p12 = scmp.ge.s32.totalorder %s4208_s0, 2 }
 0xcae   : > { %s3067_s21 = sand.u32 1, %s5243_s12   ;;  %p5245_p3 = scmp.ne.s32.totalorder %s5244_s13, 0 }
 0xcaf   : > { %s3068_s26 = scalar_lea.sflag [#allocation7], %s3067_s21 }
 0xcb0   : > { %p3851_p4 = pnand %p5246_p12, %p5245_p3 }
 0xcb2   : > { %4183 = dma.done.wait (!%p3851_p4), %s3068_s26, 512  }
 0xcb3   : > { %4185 = vsyncadd (!%p3851_p4), %s3068_s26, 4294966784  ;;  %s31_s0 = sadd.s32 1, %s4208_s0   ;;  %s5247_s18 = sld [smem:[#allocation24_spill]] }
 0xcb4   : > { %p28_p0 = scmp.ge.s32.totalorder %s31_s0, 4   ;;  %s5248_s28 = sld [smem:[#allocation30_spill]] }
 0xcb5   : > { %s5249_s10 = sld [smem:[#allocation29_spill]]  ;;  %s5250_s26 = smov %s4192_s27 }
 0xcb6   : > { %s5252_s29 = smov %s4204_s30  ;;  %30 = sbr.rel (!%p28_p0) target bundleno = 16 (0x10), region = 166 }
 0xcb9   : > { %s5251_s27 = smov %s5247_s18 }
 0xcbb   : > { %s5253_s30 = smov %s5249_s10 }
 0xcbd   :  { %3073 = vsyncpa [#allocation6], 1 }
 0xcbe   :  { %3075 = vsyncpa [#allocation6 + $0x1], 1 }
 0xcbf   :  { %3076 = vsyncpa [#allocation9], 1 }
 0xcc0   :  { %3078 = vsyncpa [#allocation9 + $0x1], 1 }
 0xcc1   :  { %3079 = vsyncpa [#allocation12], 1 }
 0xcc2   :  { %3081 = vsyncpa [#allocation12 + $0x1], 1 }
 0xcc3   :  { %3082 = vsyncpa [#allocation15], 1 }
 0xcc4   :  { %3083 = vsyncpa [#allocation7], 1 }
 0xcc5   :  { %3085 = vsyncpa [#allocation7 + $0x1], 1 }

</bundles_post_ra>
